<compile_context>
chip_gen: v5e
topology: v5e:2x2
jax: 0.10.0
libtpu: 0.0.40
codegen_flags: <defaults>
</compile_context>

<pallas_src>
import jax
import jax.numpy as jnp
from jax.experimental import pallas as pl
from jax.experimental.pallas import tpu as pltpu

PREC = jax.lax.Precision.HIGHEST  # pinned single, well-defined f32 matmul behavior


def maglev_rnn_kernel(x_ref,      # (T, Bp, In)  time-major input, batch padded to sublane multiple
                      wih0_ref,   # (In, 4H)     layer-0 input weights (transposed)
                      b0_ref,     # (1, 4H)      layer-0 pre-summed bias (b_ih0 + b_hh0)
                      whh0_ref,   # (H, 4H)      layer-0 recurrent weights (transposed)
                      wih1_ref,   # (H, 4H)      layer-1 input weights (transposed)
                      whh1_ref,   # (H, 4H)      layer-1 recurrent weights (transposed)
                      b1_ref,     # (1, 4H)      layer-1 pre-summed bias (b_ih1 + b_hh1)
                      wfc_ref,    # (H, 128)     fc weight, lane-padded (only column 0 live)
                      bfc_ref,    # (1, 128)     fc bias, lane-padded
                      out_ref):   # (Bp, 128)    out[:, 0] = fc(h1 at last timestep)
    T, Bp, _ = x_ref.shape
    four_h = wih0_ref.shape[1]
    H = four_h // 4

    wih0 = wih0_ref[...]
    whh0 = whh0_ref[...]
    wih1 = wih1_ref[...]
    whh1 = whh1_ref[...]
    # Hoist bias broadcasts out of the unrolled loop (JAX does not CSE broadcast_in_dim).
    b0 = jnp.broadcast_to(b0_ref[...], (Bp, four_h))
    b1 = jnp.broadcast_to(b1_ref[...], (Bp, four_h))

    def dot(a, b):
        return jnp.dot(a, b, preferred_element_type=jnp.float32, precision=PREC)

    def cell(z, c):
        # Full-width transcendentals: 2 EUP ops on the whole (Bp, 4H) tile, slice after.
        sig = jax.nn.sigmoid(z)
        th = jnp.tanh(z)
        i = sig[:, 0 * H:1 * H]
        f = sig[:, 1 * H:2 * H]
        g = th[:, 2 * H:3 * H]
        o = sig[:, 3 * H:4 * H]
        c_new = f * c + i * g
        h_new = o * jnp.tanh(c_new)
        return h_new, c_new

    def cell_first(z):
        # Peeled first step: h_prev = c_prev = 0  =>  f * c == 0, c_new = i * g.
        sig = jax.nn.sigmoid(z)
        th = jnp.tanh(z)
        i = sig[:, 0 * H:1 * H]
        g = th[:, 2 * H:3 * H]
        o = sig[:, 3 * H:4 * H]
        c_new = i * g
        h_new = o * jnp.tanh(c_new)
        return h_new, c_new

    # ---- t = 0 (peeled: recurrent matmuls are identically zero) ----
    h0, c0 = cell_first(dot(x_ref[0], wih0) + b0)
    h1, c1 = cell_first(dot(h0, wih1) + b1)

    # ---- t = 1 .. T-1: fully unrolled, state kept in vregs (no VMEM round-trip) ----
    for t in range(1, T):
        # Layer 0: input projection (independent of the recurrence, schedules freely)
        # plus its own recurrent term only — does NOT wait on h1(t-1).
        z0 = dot(x_ref[t], wih0) + b0 + dot(h0, whh0)
        h0, c0 = cell(z0, c0)
        # Layer 1: h1's recurrent dot depends only on h1(t-1) and overlaps with layer 0.
        z1 = dot(h0, wih1) + b1 + dot(h1, whh1)
        h1, c1 = cell(z1, c1)

    # ---- fc epilogue: (Bp,H) @ (H,128) lane-padded -> unmasked full-width store ----
    out = dot(h1, wfc_ref[...]) + jnp.broadcast_to(bfc_ref[...], (Bp, 128))
    out_ref[...] = out.astype(out_ref.dtype)


def init_params(key, input_size=4, hidden_size=32):
    # Deterministic synthetic init (PyTorch-style uniform(-k, k), k = 1/sqrt(H)).
    H = hidden_size
    k = 1.0 / jnp.sqrt(jnp.float32(H))
    ks = jax.random.split(key, 11)

    def u(kk, shape):
        return jax.random.uniform(kk, shape, jnp.float32, -k, k)

    return {
        # layer 0
        "w_ih0": u(ks[0], (4 * H, input_size)),
        "w_hh0": u(ks[1], (4 * H, H)),
        "b_ih0": u(ks[2], (4 * H,)),
        "b_hh0": u(ks[3], (4 * H,)),
        # layer 1
        "w_ih1": u(ks[4], (4 * H, H)),
        "w_hh1": u(ks[5], (4 * H, H)),
        "b_ih1": u(ks[6], (4 * H,)),
        "b_hh1": u(ks[7], (4 * H,)),
        # fc: Linear(H, 1)
        "w_fc": u(ks[8], (1, H)),
        "b_fc": u(ks[9], (1,)),
    }


def maglev_rnn_forward(x, params):
    """x: (B, T, input_size) float32, batch_first (PyTorch convention). Returns (B,)."""
    B, T, In = x.shape
    H = params["w_hh0"].shape[1]
    Bp = ((B + 7) // 8) * 8                                   # pad batch to f32 sublane multiple

    # --- tiny, constant-foldable glue: weight transposes / padding + time-major input ---
    xk = jnp.pad(x.astype(jnp.float32), ((0, Bp - B), (0, 0), (0, 0))).transpose(1, 0, 2)  # (T, Bp, In)

    wih0 = params["w_ih0"].T                                  # (In, 4H)
    b0 = (params["b_ih0"] + params["b_hh0"]).reshape(1, 4 * H)
    whh0 = params["w_hh0"].T                                  # (H, 4H)
    wih1 = params["w_ih1"].T                                  # (H, 4H)
    whh1 = params["w_hh1"].T                                  # (H, 4H)
    b1 = (params["b_ih1"] + params["b_hh1"]).reshape(1, 4 * H)
    # fc weight/bias lane-padded to 128 so the kernel epilogue writes a full-width tile.
    wfc = jnp.zeros((H, 128), jnp.float32).at[:, 0].set(params["w_fc"][0])
    bfc = jnp.zeros((1, 128), jnp.float32).at[0, 0].set(params["b_fc"][0])

    vmem = pl.BlockSpec(memory_space=pltpu.MemorySpace.VMEM)
    y = pl.pallas_call(
        maglev_rnn_kernel,
        out_shape=jax.ShapeDtypeStruct((Bp, 128), jnp.float32),
        in_specs=[vmem] * 9,
        out_specs=vmem,
    )(xk, wih0, b0, whh0, wih1, whh1, b1, wfc, bfc)

    return y[:B, 0]                                           # (B,), matches torch .squeeze()


def maglev_rnn_reference(x, params):
    """Pure-JAX reference of the PyTorch forward (same pinned matmul precision)."""
    B, T, In = x.shape
    H = params["w_hh0"].shape[1]

    def mm(a, b):
        return jnp.dot(a, b, precision=PREC)

    def cell(x_t, h, c, wih, whh, bih, bhh):
        z = mm(x_t, wih.T) + bih + mm(h, whh.T) + bhh
        i = jax.nn.sigmoid(z[:, 0 * H:1 * H])
        f = jax.nn.sigmoid(z[:, 1 * H:2 * H])
        g = jnp.tanh(z[:, 2 * H:3 * H])
        o = jax.nn.sigmoid(z[:, 3 * H:4 * H])
        c = f * c + i * g
        h = o * jnp.tanh(c)
        return h, c

    h0 = c0 = h1 = c1 = jnp.zeros((B, H), jnp.float32)
    for t in range(T):
        h0, c0 = cell(x[:, t, :], h0, c0,
                      params["w_ih0"], params["w_hh0"], params["b_ih0"], params["b_hh0"])
        h1, c1 = cell(h0, h1, c1,
                      params["w_ih1"], params["w_hh1"], params["b_ih1"], params["b_hh1"])
    out = mm(h1, params["w_fc"].T) + params["b_fc"]
    return out.squeeze()


if __name__ == "__main__":
    B, T, In, H = 2, 8, 4, 32
    key = jax.random.PRNGKey(0)
    kx, kp = jax.random.split(key)
    x = jax.random.normal(kx, (B, T, In), jnp.float32)
    params = init_params(kp, input_size=In, hidden_size=H)

    y = jax.jit(maglev_rnn_forward)(x, params)
    y = jax.block_until_ready(y)

    y_ref = maglev_rnn_reference(x, params)
    assert y.shape == (B,), y.shape
    assert jnp.allclose(y, y_ref, atol=1e-5, rtol=1e-5), (y, y_ref)

    print("KERNEL_OK")
</pallas_src>

<mosaic_0001>
module attributes {stable_mosaic.version = 11 : i64} {
  func.func @maglev_rnn_kernel(%arg0: memref<8x8x4xf32, #tpu.memory_space<vmem>>, %arg1: memref<4x128xf32, #tpu.memory_space<vmem>>, %arg2: memref<1x128xf32, #tpu.memory_space<vmem>>, %arg3: memref<32x128xf32, #tpu.memory_space<vmem>>, %arg4: memref<32x128xf32, #tpu.memory_space<vmem>>, %arg5: memref<32x128xf32, #tpu.memory_space<vmem>>, %arg6: memref<1x128xf32, #tpu.memory_space<vmem>>, %arg7: memref<32x128xf32, #tpu.memory_space<vmem>>, %arg8: memref<1x128xf32, #tpu.memory_space<vmem>>, %arg9: memref<8x128xf32, #tpu.memory_space<vmem>>) attributes {dimension_semantics = [], scalar_prefetch = 0 : i64, scratch_operands = 0 : i64, tpu.core_type = #tpu.core_type<tc>} {
    %c0 = arith.constant 0 : index
    %c0_0 = arith.constant 0 : index
    %0 = vector.load %arg1[%c0, %c0_0] : memref<4x128xf32, #tpu.memory_space<vmem>>, vector<4x128xf32>
    %c0_1 = arith.constant 0 : index
    %c0_2 = arith.constant 0 : index
    %1 = vector.load %arg3[%c0_1, %c0_2] : memref<32x128xf32, #tpu.memory_space<vmem>>, vector<32x128xf32>
    %c0_3 = arith.constant 0 : index
    %c0_4 = arith.constant 0 : index
    %2 = vector.load %arg4[%c0_3, %c0_4] : memref<32x128xf32, #tpu.memory_space<vmem>>, vector<32x128xf32>
    %c0_5 = arith.constant 0 : index
    %c0_6 = arith.constant 0 : index
    %3 = vector.load %arg5[%c0_5, %c0_6] : memref<32x128xf32, #tpu.memory_space<vmem>>, vector<32x128xf32>
    %c0_7 = arith.constant 0 : index
    %c0_8 = arith.constant 0 : index
    %4 = vector.load %arg2[%c0_7, %c0_8] : memref<1x128xf32, #tpu.memory_space<vmem>>, vector<1x128xf32>
    %5 = vector.shape_cast %4 : vector<1x128xf32> to vector<1x128xf32>
    %6 = vector.broadcast %5 : vector<1x128xf32> to vector<8x128xf32>
    %c0_9 = arith.constant 0 : index
    %c0_10 = arith.constant 0 : index
    %7 = vector.load %arg6[%c0_9, %c0_10] : memref<1x128xf32, #tpu.memory_space<vmem>>, vector<1x128xf32>
    %8 = vector.shape_cast %7 : vector<1x128xf32> to vector<1x128xf32>
    %9 = vector.broadcast %8 : vector<1x128xf32> to vector<8x128xf32>
    %c0_11 = arith.constant 0 : index
    %c0_12 = arith.constant 0 : index
    %c0_13 = arith.constant 0 : index
    %10 = vector.load %arg0[%c0_11, %c0_12, %c0_13] : memref<8x8x4xf32, #tpu.memory_space<vmem>>, vector<1x8x4xf32>
    %11 = vector.shape_cast %10 : vector<1x8x4xf32> to vector<8x4xf32>
    %cst = arith.constant dense<0.000000e+00> : vector<8x128xf32>
    %12 = tpu.matmul %11, %0, %cst {dimension_numbers = #tpu.dot_dimension_numbers<[1], [0], [0], [1], [0, 0, 1, 1], [], []>, precision = #tpu.contract_precision<fp32>} : vector<8x4xf32>, vector<4x128xf32>, vector<8x128xf32> -> vector<8x128xf32>
    %13 = arith.addf %12, %6 : vector<8x128xf32>
    %14 = arith.negf %13 : vector<8x128xf32>
    %15 = math.exp %14 : vector<8x128xf32>
    %cst_14 = arith.constant 1.000000e+00 : f32
    %16 = vector.broadcast %cst_14 : f32 to vector<8x128xf32>
    %17 = arith.addf %16, %15 : vector<8x128xf32>
    %18 = arith.divf %16, %17 : vector<8x128xf32>
    %19 = math.tanh %13 : vector<8x128xf32>
    %20 = vector.extract_strided_slice %18 {offsets = [0, 0], sizes = [8, 32], strides = [1, 1]} : vector<8x128xf32> to vector<8x32xf32>
    %21 = vector.extract_strided_slice %19 {offsets = [0, 64], sizes = [8, 32], strides = [1, 1]} : vector<8x128xf32> to vector<8x32xf32>
    %22 = vector.extract_strided_slice %18 {offsets = [0, 96], sizes = [8, 32], strides = [1, 1]} : vector<8x128xf32> to vector<8x32xf32>
    %23 = arith.mulf %20, %21 : vector<8x32xf32>
    %24 = math.tanh %23 : vector<8x32xf32>
    %25 = arith.mulf %22, %24 : vector<8x32xf32>
    %cst_15 = arith.constant dense<0.000000e+00> : vector<8x128xf32>
    %26 = tpu.matmul %25, %2, %cst_15 {dimension_numbers = #tpu.dot_dimension_numbers<[1], [0], [0], [1], [0, 0, 1, 1], [], []>, precision = #tpu.contract_precision<fp32>} : vector<8x32xf32>, vector<32x128xf32>, vector<8x128xf32> -> vector<8x128xf32>
    %27 = arith.addf %26, %9 : vector<8x128xf32>
    %28 = arith.negf %27 : vector<8x128xf32>
    %29 = math.exp %28 : vector<8x128xf32>
    %cst_16 = arith.constant 1.000000e+00 : f32
    %30 = vector.broadcast %cst_16 : f32 to vector<8x128xf32>
    %31 = arith.addf %30, %29 : vector<8x128xf32>
    %32 = arith.divf %30, %31 : vector<8x128xf32>
    %33 = math.tanh %27 : vector<8x128xf32>
    %34 = vector.extract_strided_slice %32 {offsets = [0, 0], sizes = [8, 32], strides = [1, 1]} : vector<8x128xf32> to vector<8x32xf32>
    %35 = vector.extract_strided_slice %33 {offsets = [0, 64], sizes = [8, 32], strides = [1, 1]} : vector<8x128xf32> to vector<8x32xf32>
    %36 = vector.extract_strided_slice %32 {offsets = [0, 96], sizes = [8, 32], strides = [1, 1]} : vector<8x128xf32> to vector<8x32xf32>
    %37 = arith.mulf %34, %35 : vector<8x32xf32>
    %38 = math.tanh %37 : vector<8x32xf32>
    %39 = arith.mulf %36, %38 : vector<8x32xf32>
    %c1 = arith.constant 1 : index
    %c0_17 = arith.constant 0 : index
    %c0_18 = arith.constant 0 : index
    %40 = vector.load %arg0[%c1, %c0_17, %c0_18] : memref<8x8x4xf32, #tpu.memory_space<vmem>>, vector<1x8x4xf32>
    %41 = vector.shape_cast %40 : vector<1x8x4xf32> to vector<8x4xf32>
    %cst_19 = arith.constant dense<0.000000e+00> : vector<8x128xf32>
    %42 = tpu.matmul %41, %0, %cst_19 {dimension_numbers = #tpu.dot_dimension_numbers<[1], [0], [0], [1], [0, 0, 1, 1], [], []>, precision = #tpu.contract_precision<fp32>} : vector<8x4xf32>, vector<4x128xf32>, vector<8x128xf32> -> vector<8x128xf32>
    %43 = arith.addf %42, %6 : vector<8x128xf32>
    %cst_20 = arith.constant dense<0.000000e+00> : vector<8x128xf32>
    %44 = tpu.matmul %25, %1, %cst_20 {dimension_numbers = #tpu.dot_dimension_numbers<[1], [0], [0], [1], [0, 0, 1, 1], [], []>, precision = #tpu.contract_precision<fp32>} : vector<8x32xf32>, vector<32x128xf32>, vector<8x128xf32> -> vector<8x128xf32>
    %45 = arith.addf %43, %44 : vector<8x128xf32>
    %46 = arith.negf %45 : vector<8x128xf32>
    %47 = math.exp %46 : vector<8x128xf32>
    %cst_21 = arith.constant 1.000000e+00 : f32
    %48 = vector.broadcast %cst_21 : f32 to vector<8x128xf32>
    %49 = arith.addf %48, %47 : vector<8x128xf32>
    %50 = arith.divf %48, %49 : vector<8x128xf32>
    %51 = math.tanh %45 : vector<8x128xf32>
    %52 = vector.extract_strided_slice %50 {offsets = [0, 0], sizes = [8, 32], strides = [1, 1]} : vector<8x128xf32> to vector<8x32xf32>
    %53 = vector.extract_strided_slice %50 {offsets = [0, 32], sizes = [8, 32], strides = [1, 1]} : vector<8x128xf32> to vector<8x32xf32>
    %54 = vector.extract_strided_slice %51 {offsets = [0, 64], sizes = [8, 32], strides = [1, 1]} : vector<8x128xf32> to vector<8x32xf32>
    %55 = vector.extract_strided_slice %50 {offsets = [0, 96], sizes = [8, 32], strides = [1, 1]} : vector<8x128xf32> to vector<8x32xf32>
    %56 = arith.mulf %53, %23 : vector<8x32xf32>
    %57 = arith.mulf %52, %54 : vector<8x32xf32>
    %58 = arith.addf %56, %57 : vector<8x32xf32>
    %59 = math.tanh %58 : vector<8x32xf32>
    %60 = arith.mulf %55, %59 : vector<8x32xf32>
    %cst_22 = arith.constant dense<0.000000e+00> : vector<8x128xf32>
    %61 = tpu.matmul %60, %2, %cst_22 {dimension_numbers = #tpu.dot_dimension_numbers<[1], [0], [0], [1], [0, 0, 1, 1], [], []>, precision = #tpu.contract_precision<fp32>} : vector<8x32xf32>, vector<32x128xf32>, vector<8x128xf32> -> vector<8x128xf32>
    %62 = arith.addf %61, %9 : vector<8x128xf32>
    %cst_23 = arith.constant dense<0.000000e+00> : vector<8x128xf32>
    %63 = tpu.matmul %39, %3, %cst_23 {dimension_numbers = #tpu.dot_dimension_numbers<[1], [0], [0], [1], [0, 0, 1, 1], [], []>, precision = #tpu.contract_precision<fp32>} : vector<8x32xf32>, vector<32x128xf32>, vector<8x128xf32> -> vector<8x128xf32>
    %64 = arith.addf %62, %63 : vector<8x128xf32>
    %65 = arith.negf %64 : vector<8x128xf32>
    %66 = math.exp %65 : vector<8x128xf32>
    %cst_24 = arith.constant 1.000000e+00 : f32
    %67 = vector.broadcast %cst_24 : f32 to vector<8x128xf32>
    %68 = arith.addf %67, %66 : vector<8x128xf32>
    %69 = arith.divf %67, %68 : vector<8x128xf32>
    %70 = math.tanh %64 : vector<8x128xf32>
    %71 = vector.extract_strided_slice %69 {offsets = [0, 0], sizes = [8, 32], strides = [1, 1]} : vector<8x128xf32> to vector<8x32xf32>
    %72 = vector.extract_strided_slice %69 {offsets = [0, 32], sizes = [8, 32], strides = [1, 1]} : vector<8x128xf32> to vector<8x32xf32>
    %73 = vector.extract_strided_slice %70 {offsets = [0, 64], sizes = [8, 32], strides = [1, 1]} : vector<8x128xf32> to vector<8x32xf32>
    %74 = vector.extract_strided_slice %69 {offsets = [0, 96], sizes = [8, 32], strides = [1, 1]} : vector<8x128xf32> to vector<8x32xf32>
    %75 = arith.mulf %72, %37 : vector<8x32xf32>
    %76 = arith.mulf %71, %73 : vector<8x32xf32>
    %77 = arith.addf %75, %76 : vector<8x32xf32>
    %78 = math.tanh %77 : vector<8x32xf32>
    %79 = arith.mulf %74, %78 : vector<8x32xf32>
    %c2 = arith.constant 2 : index
    %c0_25 = arith.constant 0 : index
    %c0_26 = arith.constant 0 : index
    %80 = vector.load %arg0[%c2, %c0_25, %c0_26] : memref<8x8x4xf32, #tpu.memory_space<vmem>>, vector<1x8x4xf32>
    %81 = vector.shape_cast %80 : vector<1x8x4xf32> to vector<8x4xf32>
    %cst_27 = arith.constant dense<0.000000e+00> : vector<8x128xf32>
    %82 = tpu.matmul %81, %0, %cst_27 {dimension_numbers = #tpu.dot_dimension_numbers<[1], [0], [0], [1], [0, 0, 1, 1], [], []>, precision = #tpu.contract_precision<fp32>} : vector<8x4xf32>, vector<4x128xf32>, vector<8x128xf32> -> vector<8x128xf32>
    %83 = arith.addf %82, %6 : vector<8x128xf32>
    %cst_28 = arith.constant dense<0.000000e+00> : vector<8x128xf32>
    %84 = tpu.matmul %60, %1, %cst_28 {dimension_numbers = #tpu.dot_dimension_numbers<[1], [0], [0], [1], [0, 0, 1, 1], [], []>, precision = #tpu.contract_precision<fp32>} : vector<8x32xf32>, vector<32x128xf32>, vector<8x128xf32> -> vector<8x128xf32>
    %85 = arith.addf %83, %84 : vector<8x128xf32>
    %86 = arith.negf %85 : vector<8x128xf32>
    %87 = math.exp %86 : vector<8x128xf32>
    %cst_29 = arith.constant 1.000000e+00 : f32
    %88 = vector.broadcast %cst_29 : f32 to vector<8x128xf32>
    %89 = arith.addf %88, %87 : vector<8x128xf32>
    %90 = arith.divf %88, %89 : vector<8x128xf32>
    %91 = math.tanh %85 : vector<8x128xf32>
    %92 = vector.extract_strided_slice %90 {offsets = [0, 0], sizes = [8, 32], strides = [1, 1]} : vector<8x128xf32> to vector<8x32xf32>
    %93 = vector.extract_strided_slice %90 {offsets = [0, 32], sizes = [8, 32], strides = [1, 1]} : vector<8x128xf32> to vector<8x32xf32>
    %94 = vector.extract_strided_slice %91 {offsets = [0, 64], sizes = [8, 32], strides = [1, 1]} : vector<8x128xf32> to vector<8x32xf32>
    %95 = vector.extract_strided_slice %90 {offsets = [0, 96], sizes = [8, 32], strides = [1, 1]} : vector<8x128xf32> to vector<8x32xf32>
    %96 = arith.mulf %93, %58 : vector<8x32xf32>
    %97 = arith.mulf %92, %94 : vector<8x32xf32>
    %98 = arith.addf %96, %97 : vector<8x32xf32>
    %99 = math.tanh %98 : vector<8x32xf32>
    %100 = arith.mulf %95, %99 : vector<8x32xf32>
    %cst_30 = arith.constant dense<0.000000e+00> : vector<8x128xf32>
    %101 = tpu.matmul %100, %2, %cst_30 {dimension_numbers = #tpu.dot_dimension_numbers<[1], [0], [0], [1], [0, 0, 1, 1], [], []>, precision = #tpu.contract_precision<fp32>} : vector<8x32xf32>, vector<32x128xf32>, vector<8x128xf32> -> vector<8x128xf32>
    %102 = arith.addf %101, %9 : vector<8x128xf32>
    %cst_31 = arith.constant dense<0.000000e+00> : vector<8x128xf32>
    %103 = tpu.matmul %79, %3, %cst_31 {dimension_numbers = #tpu.dot_dimension_numbers<[1], [0], [0], [1], [0, 0, 1, 1], [], []>, precision = #tpu.contract_precision<fp32>} : vector<8x32xf32>, vector<32x128xf32>, vector<8x128xf32> -> vector<8x128xf32>
    %104 = arith.addf %102, %103 : vector<8x128xf32>
    %105 = arith.negf %104 : vector<8x128xf32>
    %106 = math.exp %105 : vector<8x128xf32>
    %cst_32 = arith.constant 1.000000e+00 : f32
    %107 = vector.broadcast %cst_32 : f32 to vector<8x128xf32>
    %108 = arith.addf %107, %106 : vector<8x128xf32>
    %109 = arith.divf %107, %108 : vector<8x128xf32>
    %110 = math.tanh %104 : vector<8x128xf32>
    %111 = vector.extract_strided_slice %109 {offsets = [0, 0], sizes = [8, 32], strides = [1, 1]} : vector<8x128xf32> to vector<8x32xf32>
    %112 = vector.extract_strided_slice %109 {offsets = [0, 32], sizes = [8, 32], strides = [1, 1]} : vector<8x128xf32> to vector<8x32xf32>
    %113 = vector.extract_strided_slice %110 {offsets = [0, 64], sizes = [8, 32], strides = [1, 1]} : vector<8x128xf32> to vector<8x32xf32>
    %114 = vector.extract_strided_slice %109 {offsets = [0, 96], sizes = [8, 32], strides = [1, 1]} : vector<8x128xf32> to vector<8x32xf32>
    %115 = arith.mulf %112, %77 : vector<8x32xf32>
    %116 = arith.mulf %111, %113 : vector<8x32xf32>
    %117 = arith.addf %115, %116 : vector<8x32xf32>
    %118 = math.tanh %117 : vector<8x32xf32>
    %119 = arith.mulf %114, %118 : vector<8x32xf32>
    %c3 = arith.constant 3 : index
    %c0_33 = arith.constant 0 : index
    %c0_34 = arith.constant 0 : index
    %120 = vector.load %arg0[%c3, %c0_33, %c0_34] : memref<8x8x4xf32, #tpu.memory_space<vmem>>, vector<1x8x4xf32>
    %121 = vector.shape_cast %120 : vector<1x8x4xf32> to vector<8x4xf32>
    %cst_35 = arith.constant dense<0.000000e+00> : vector<8x128xf32>
    %122 = tpu.matmul %121, %0, %cst_35 {dimension_numbers = #tpu.dot_dimension_numbers<[1], [0], [0], [1], [0, 0, 1, 1], [], []>, precision = #tpu.contract_precision<fp32>} : vector<8x4xf32>, vector<4x128xf32>, vector<8x128xf32> -> vector<8x128xf32>
    %123 = arith.addf %122, %6 : vector<8x128xf32>
    %cst_36 = arith.constant dense<0.000000e+00> : vector<8x128xf32>
    %124 = tpu.matmul %100, %1, %cst_36 {dimension_numbers = #tpu.dot_dimension_numbers<[1], [0], [0], [1], [0, 0, 1, 1], [], []>, precision = #tpu.contract_precision<fp32>} : vector<8x32xf32>, vector<32x128xf32>, vector<8x128xf32> -> vector<8x128xf32>
    %125 = arith.addf %123, %124 : vector<8x128xf32>
    %126 = arith.negf %125 : vector<8x128xf32>
    %127 = math.exp %126 : vector<8x128xf32>
    %cst_37 = arith.constant 1.000000e+00 : f32
    %128 = vector.broadcast %cst_37 : f32 to vector<8x128xf32>
    %129 = arith.addf %128, %127 : vector<8x128xf32>
    %130 = arith.divf %128, %129 : vector<8x128xf32>
    %131 = math.tanh %125 : vector<8x128xf32>
    %132 = vector.extract_strided_slice %130 {offsets = [0, 0], sizes = [8, 32], strides = [1, 1]} : vector<8x128xf32> to vector<8x32xf32>
    %133 = vector.extract_strided_slice %130 {offsets = [0, 32], sizes = [8, 32], strides = [1, 1]} : vector<8x128xf32> to vector<8x32xf32>
    %134 = vector.extract_strided_slice %131 {offsets = [0, 64], sizes = [8, 32], strides = [1, 1]} : vector<8x128xf32> to vector<8x32xf32>
    %135 = vector.extract_strided_slice %130 {offsets = [0, 96], sizes = [8, 32], strides = [1, 1]} : vector<8x128xf32> to vector<8x32xf32>
    %136 = arith.mulf %133, %98 : vector<8x32xf32>
    %137 = arith.mulf %132, %134 : vector<8x32xf32>
    %138 = arith.addf %136, %137 : vector<8x32xf32>
    %139 = math.tanh %138 : vector<8x32xf32>
    %140 = arith.mulf %135, %139 : vector<8x32xf32>
    %cst_38 = arith.constant dense<0.000000e+00> : vector<8x128xf32>
    %141 = tpu.matmul %140, %2, %cst_38 {dimension_numbers = #tpu.dot_dimension_numbers<[1], [0], [0], [1], [0, 0, 1, 1], [], []>, precision = #tpu.contract_precision<fp32>} : vector<8x32xf32>, vector<32x128xf32>, vector<8x128xf32> -> vector<8x128xf32>
    %142 = arith.addf %141, %9 : vector<8x128xf32>
    %cst_39 = arith.constant dense<0.000000e+00> : vector<8x128xf32>
    %143 = tpu.matmul %119, %3, %cst_39 {dimension_numbers = #tpu.dot_dimension_numbers<[1], [0], [0], [1], [0, 0, 1, 1], [], []>, precision = #tpu.contract_precision<fp32>} : vector<8x32xf32>, vector<32x128xf32>, vector<8x128xf32> -> vector<8x128xf32>
    %144 = arith.addf %142, %143 : vector<8x128xf32>
    %145 = arith.negf %144 : vector<8x128xf32>
    %146 = math.exp %145 : vector<8x128xf32>
    %cst_40 = arith.constant 1.000000e+00 : f32
    %147 = vector.broadcast %cst_40 : f32 to vector<8x128xf32>
    %148 = arith.addf %147, %146 : vector<8x128xf32>
    %149 = arith.divf %147, %148 : vector<8x128xf32>
    %150 = math.tanh %144 : vector<8x128xf32>
    %151 = vector.extract_strided_slice %149 {offsets = [0, 0], sizes = [8, 32], strides = [1, 1]} : vector<8x128xf32> to vector<8x32xf32>
    %152 = vector.extract_strided_slice %149 {offsets = [0, 32], sizes = [8, 32], strides = [1, 1]} : vector<8x128xf32> to vector<8x32xf32>
    %153 = vector.extract_strided_slice %150 {offsets = [0, 64], sizes = [8, 32], strides = [1, 1]} : vector<8x128xf32> to vector<8x32xf32>
    %154 = vector.extract_strided_slice %149 {offsets = [0, 96], sizes = [8, 32], strides = [1, 1]} : vector<8x128xf32> to vector<8x32xf32>
    %155 = arith.mulf %152, %117 : vector<8x32xf32>
    %156 = arith.mulf %151, %153 : vector<8x32xf32>
    %157 = arith.addf %155, %156 : vector<8x32xf32>
    %158 = math.tanh %157 : vector<8x32xf32>
    %159 = arith.mulf %154, %158 : vector<8x32xf32>
    %c4 = arith.constant 4 : index
    %c0_41 = arith.constant 0 : index
    %c0_42 = arith.constant 0 : index
    %160 = vector.load %arg0[%c4, %c0_41, %c0_42] : memref<8x8x4xf32, #tpu.memory_space<vmem>>, vector<1x8x4xf32>
    %161 = vector.shape_cast %160 : vector<1x8x4xf32> to vector<8x4xf32>
    %cst_43 = arith.constant dense<0.000000e+00> : vector<8x128xf32>
    %162 = tpu.matmul %161, %0, %cst_43 {dimension_numbers = #tpu.dot_dimension_numbers<[1], [0], [0], [1], [0, 0, 1, 1], [], []>, precision = #tpu.contract_precision<fp32>} : vector<8x4xf32>, vector<4x128xf32>, vector<8x128xf32> -> vector<8x128xf32>
    %163 = arith.addf %162, %6 : vector<8x128xf32>
    %cst_44 = arith.constant dense<0.000000e+00> : vector<8x128xf32>
    %164 = tpu.matmul %140, %1, %cst_44 {dimension_numbers = #tpu.dot_dimension_numbers<[1], [0], [0], [1], [0, 0, 1, 1], [], []>, precision = #tpu.contract_precision<fp32>} : vector<8x32xf32>, vector<32x128xf32>, vector<8x128xf32> -> vector<8x128xf32>
    %165 = arith.addf %163, %164 : vector<8x128xf32>
    %166 = arith.negf %165 : vector<8x128xf32>
    %167 = math.exp %166 : vector<8x128xf32>
    %cst_45 = arith.constant 1.000000e+00 : f32
    %168 = vector.broadcast %cst_45 : f32 to vector<8x128xf32>
    %169 = arith.addf %168, %167 : vector<8x128xf32>
    %170 = arith.divf %168, %169 : vector<8x128xf32>
    %171 = math.tanh %165 : vector<8x128xf32>
    %172 = vector.extract_strided_slice %170 {offsets = [0, 0], sizes = [8, 32], strides = [1, 1]} : vector<8x128xf32> to vector<8x32xf32>
    %173 = vector.extract_strided_slice %170 {offsets = [0, 32], sizes = [8, 32], strides = [1, 1]} : vector<8x128xf32> to vector<8x32xf32>
    %174 = vector.extract_strided_slice %171 {offsets = [0, 64], sizes = [8, 32], strides = [1, 1]} : vector<8x128xf32> to vector<8x32xf32>
    %175 = vector.extract_strided_slice %170 {offsets = [0, 96], sizes = [8, 32], strides = [1, 1]} : vector<8x128xf32> to vector<8x32xf32>
    %176 = arith.mulf %173, %138 : vector<8x32xf32>
    %177 = arith.mulf %172, %174 : vector<8x32xf32>
    %178 = arith.addf %176, %177 : vector<8x32xf32>
    %179 = math.tanh %178 : vector<8x32xf32>
    %180 = arith.mulf %175, %179 : vector<8x32xf32>
    %cst_46 = arith.constant dense<0.000000e+00> : vector<8x128xf32>
    %181 = tpu.matmul %180, %2, %cst_46 {dimension_numbers = #tpu.dot_dimension_numbers<[1], [0], [0], [1], [0, 0, 1, 1], [], []>, precision = #tpu.contract_precision<fp32>} : vector<8x32xf32>, vector<32x128xf32>, vector<8x128xf32> -> vector<8x128xf32>
    %182 = arith.addf %181, %9 : vector<8x128xf32>
    %cst_47 = arith.constant dense<0.000000e+00> : vector<8x128xf32>
    %183 = tpu.matmul %159, %3, %cst_47 {dimension_numbers = #tpu.dot_dimension_numbers<[1], [0], [0], [1], [0, 0, 1, 1], [], []>, precision = #tpu.contract_precision<fp32>} : vector<8x32xf32>, vector<32x128xf32>, vector<8x128xf32> -> vector<8x128xf32>
    %184 = arith.addf %182, %183 : vector<8x128xf32>
    %185 = arith.negf %184 : vector<8x128xf32>
    %186 = math.exp %185 : vector<8x128xf32>
    %cst_48 = arith.constant 1.000000e+00 : f32
    %187 = vector.broadcast %cst_48 : f32 to vector<8x128xf32>
    %188 = arith.addf %187, %186 : vector<8x128xf32>
    %189 = arith.divf %187, %188 : vector<8x128xf32>
    %190 = math.tanh %184 : vector<8x128xf32>
    %191 = vector.extract_strided_slice %189 {offsets = [0, 0], sizes = [8, 32], strides = [1, 1]} : vector<8x128xf32> to vector<8x32xf32>
    %192 = vector.extract_strided_slice %189 {offsets = [0, 32], sizes = [8, 32], strides = [1, 1]} : vector<8x128xf32> to vector<8x32xf32>
    %193 = vector.extract_strided_slice %190 {offsets = [0, 64], sizes = [8, 32], strides = [1, 1]} : vector<8x128xf32> to vector<8x32xf32>
    %194 = vector.extract_strided_slice %189 {offsets = [0, 96], sizes = [8, 32], strides = [1, 1]} : vector<8x128xf32> to vector<8x32xf32>
    %195 = arith.mulf %192, %157 : vector<8x32xf32>
    %196 = arith.mulf %191, %193 : vector<8x32xf32>
    %197 = arith.addf %195, %196 : vector<8x32xf32>
    %198 = math.tanh %197 : vector<8x32xf32>
    %199 = arith.mulf %194, %198 : vector<8x32xf32>
    %c5 = arith.constant 5 : index
    %c0_49 = arith.constant 0 : index
    %c0_50 = arith.constant 0 : index
    %200 = vector.load %arg0[%c5, %c0_49, %c0_50] : memref<8x8x4xf32, #tpu.memory_space<vmem>>, vector<1x8x4xf32>
    %201 = vector.shape_cast %200 : vector<1x8x4xf32> to vector<8x4xf32>
    %cst_51 = arith.constant dense<0.000000e+00> : vector<8x128xf32>
    %202 = tpu.matmul %201, %0, %cst_51 {dimension_numbers = #tpu.dot_dimension_numbers<[1], [0], [0], [1], [0, 0, 1, 1], [], []>, precision = #tpu.contract_precision<fp32>} : vector<8x4xf32>, vector<4x128xf32>, vector<8x128xf32> -> vector<8x128xf32>
    %203 = arith.addf %202, %6 : vector<8x128xf32>
    %cst_52 = arith.constant dense<0.000000e+00> : vector<8x128xf32>
    %204 = tpu.matmul %180, %1, %cst_52 {dimension_numbers = #tpu.dot_dimension_numbers<[1], [0], [0], [1], [0, 0, 1, 1], [], []>, precision = #tpu.contract_precision<fp32>} : vector<8x32xf32>, vector<32x128xf32>, vector<8x128xf32> -> vector<8x128xf32>
    %205 = arith.addf %203, %204 : vector<8x128xf32>
    %206 = arith.negf %205 : vector<8x128xf32>
    %207 = math.exp %206 : vector<8x128xf32>
    %cst_53 = arith.constant 1.000000e+00 : f32
    %208 = vector.broadcast %cst_53 : f32 to vector<8x128xf32>
    %209 = arith.addf %208, %207 : vector<8x128xf32>
    %210 = arith.divf %208, %209 : vector<8x128xf32>
    %211 = math.tanh %205 : vector<8x128xf32>
    %212 = vector.extract_strided_slice %210 {offsets = [0, 0], sizes = [8, 32], strides = [1, 1]} : vector<8x128xf32> to vector<8x32xf32>
    %213 = vector.extract_strided_slice %210 {offsets = [0, 32], sizes = [8, 32], strides = [1, 1]} : vector<8x128xf32> to vector<8x32xf32>
    %214 = vector.extract_strided_slice %211 {offsets = [0, 64], sizes = [8, 32], strides = [1, 1]} : vector<8x128xf32> to vector<8x32xf32>
    %215 = vector.extract_strided_slice %210 {offsets = [0, 96], sizes = [8, 32], strides = [1, 1]} : vector<8x128xf32> to vector<8x32xf32>
    %216 = arith.mulf %213, %178 : vector<8x32xf32>
    %217 = arith.mulf %212, %214 : vector<8x32xf32>
    %218 = arith.addf %216, %217 : vector<8x32xf32>
    %219 = math.tanh %218 : vector<8x32xf32>
    %220 = arith.mulf %215, %219 : vector<8x32xf32>
    %cst_54 = arith.constant dense<0.000000e+00> : vector<8x128xf32>
    %221 = tpu.matmul %220, %2, %cst_54 {dimension_numbers = #tpu.dot_dimension_numbers<[1], [0], [0], [1], [0, 0, 1, 1], [], []>, precision = #tpu.contract_precision<fp32>} : vector<8x32xf32>, vector<32x128xf32>, vector<8x128xf32> -> vector<8x128xf32>
    %222 = arith.addf %221, %9 : vector<8x128xf32>
    %cst_55 = arith.constant dense<0.000000e+00> : vector<8x128xf32>
    %223 = tpu.matmul %199, %3, %cst_55 {dimension_numbers = #tpu.dot_dimension_numbers<[1], [0], [0], [1], [0, 0, 1, 1], [], []>, precision = #tpu.contract_precision<fp32>} : vector<8x32xf32>, vector<32x128xf32>, vector<8x128xf32> -> vector<8x128xf32>
    %224 = arith.addf %222, %223 : vector<8x128xf32>
    %225 = arith.negf %224 : vector<8x128xf32>
    %226 = math.exp %225 : vector<8x128xf32>
    %cst_56 = arith.constant 1.000000e+00 : f32
    %227 = vector.broadcast %cst_56 : f32 to vector<8x128xf32>
    %228 = arith.addf %227, %226 : vector<8x128xf32>
    %229 = arith.divf %227, %228 : vector<8x128xf32>
    %230 = math.tanh %224 : vector<8x128xf32>
    %231 = vector.extract_strided_slice %229 {offsets = [0, 0], sizes = [8, 32], strides = [1, 1]} : vector<8x128xf32> to vector<8x32xf32>
    %232 = vector.extract_strided_slice %229 {offsets = [0, 32], sizes = [8, 32], strides = [1, 1]} : vector<8x128xf32> to vector<8x32xf32>
    %233 = vector.extract_strided_slice %230 {offsets = [0, 64], sizes = [8, 32], strides = [1, 1]} : vector<8x128xf32> to vector<8x32xf32>
    %234 = vector.extract_strided_slice %229 {offsets = [0, 96], sizes = [8, 32], strides = [1, 1]} : vector<8x128xf32> to vector<8x32xf32>
    %235 = arith.mulf %232, %197 : vector<8x32xf32>
    %236 = arith.mulf %231, %233 : vector<8x32xf32>
    %237 = arith.addf %235, %236 : vector<8x32xf32>
    %238 = math.tanh %237 : vector<8x32xf32>
    %239 = arith.mulf %234, %238 : vector<8x32xf32>
    %c6 = arith.constant 6 : index
    %c0_57 = arith.constant 0 : index
    %c0_58 = arith.constant 0 : index
    %240 = vector.load %arg0[%c6, %c0_57, %c0_58] : memref<8x8x4xf32, #tpu.memory_space<vmem>>, vector<1x8x4xf32>
    %241 = vector.shape_cast %240 : vector<1x8x4xf32> to vector<8x4xf32>
    %cst_59 = arith.constant dense<0.000000e+00> : vector<8x128xf32>
    %242 = tpu.matmul %241, %0, %cst_59 {dimension_numbers = #tpu.dot_dimension_numbers<[1], [0], [0], [1], [0, 0, 1, 1], [], []>, precision = #tpu.contract_precision<fp32>} : vector<8x4xf32>, vector<4x128xf32>, vector<8x128xf32> -> vector<8x128xf32>
    %243 = arith.addf %242, %6 : vector<8x128xf32>
    %cst_60 = arith.constant dense<0.000000e+00> : vector<8x128xf32>
    %244 = tpu.matmul %220, %1, %cst_60 {dimension_numbers = #tpu.dot_dimension_numbers<[1], [0], [0], [1], [0, 0, 1, 1], [], []>, precision = #tpu.contract_precision<fp32>} : vector<8x32xf32>, vector<32x128xf32>, vector<8x128xf32> -> vector<8x128xf32>
    %245 = arith.addf %243, %244 : vector<8x128xf32>
    %246 = arith.negf %245 : vector<8x128xf32>
    %247 = math.exp %246 : vector<8x128xf32>
    %cst_61 = arith.constant 1.000000e+00 : f32
    %248 = vector.broadcast %cst_61 : f32 to vector<8x128xf32>
    %249 = arith.addf %248, %247 : vector<8x128xf32>
    %250 = arith.divf %248, %249 : vector<8x128xf32>
    %251 = math.tanh %245 : vector<8x128xf32>
    %252 = vector.extract_strided_slice %250 {offsets = [0, 0], sizes = [8, 32], strides = [1, 1]} : vector<8x128xf32> to vector<8x32xf32>
    %253 = vector.extract_strided_slice %250 {offsets = [0, 32], sizes = [8, 32], strides = [1, 1]} : vector<8x128xf32> to vector<8x32xf32>
    %254 = vector.extract_strided_slice %251 {offsets = [0, 64], sizes = [8, 32], strides = [1, 1]} : vector<8x128xf32> to vector<8x32xf32>
    %255 = vector.extract_strided_slice %250 {offsets = [0, 96], sizes = [8, 32], strides = [1, 1]} : vector<8x128xf32> to vector<8x32xf32>
    %256 = arith.mulf %253, %218 : vector<8x32xf32>
    %257 = arith.mulf %252, %254 : vector<8x32xf32>
    %258 = arith.addf %256, %257 : vector<8x32xf32>
    %259 = math.tanh %258 : vector<8x32xf32>
    %260 = arith.mulf %255, %259 : vector<8x32xf32>
    %cst_62 = arith.constant dense<0.000000e+00> : vector<8x128xf32>
    %261 = tpu.matmul %260, %2, %cst_62 {dimension_numbers = #tpu.dot_dimension_numbers<[1], [0], [0], [1], [0, 0, 1, 1], [], []>, precision = #tpu.contract_precision<fp32>} : vector<8x32xf32>, vector<32x128xf32>, vector<8x128xf32> -> vector<8x128xf32>
    %262 = arith.addf %261, %9 : vector<8x128xf32>
    %cst_63 = arith.constant dense<0.000000e+00> : vector<8x128xf32>
    %263 = tpu.matmul %239, %3, %cst_63 {dimension_numbers = #tpu.dot_dimension_numbers<[1], [0], [0], [1], [0, 0, 1, 1], [], []>, precision = #tpu.contract_precision<fp32>} : vector<8x32xf32>, vector<32x128xf32>, vector<8x128xf32> -> vector<8x128xf32>
    %264 = arith.addf %262, %263 : vector<8x128xf32>
    %265 = arith.negf %264 : vector<8x128xf32>
    %266 = math.exp %265 : vector<8x128xf32>
    %cst_64 = arith.constant 1.000000e+00 : f32
    %267 = vector.broadcast %cst_64 : f32 to vector<8x128xf32>
    %268 = arith.addf %267, %266 : vector<8x128xf32>
    %269 = arith.divf %267, %268 : vector<8x128xf32>
    %270 = math.tanh %264 : vector<8x128xf32>
    %271 = vector.extract_strided_slice %269 {offsets = [0, 0], sizes = [8, 32], strides = [1, 1]} : vector<8x128xf32> to vector<8x32xf32>
    %272 = vector.extract_strided_slice %269 {offsets = [0, 32], sizes = [8, 32], strides = [1, 1]} : vector<8x128xf32> to vector<8x32xf32>
    %273 = vector.extract_strided_slice %270 {offsets = [0, 64], sizes = [8, 32], strides = [1, 1]} : vector<8x128xf32> to vector<8x32xf32>
    %274 = vector.extract_strided_slice %269 {offsets = [0, 96], sizes = [8, 32], strides = [1, 1]} : vector<8x128xf32> to vector<8x32xf32>
    %275 = arith.mulf %272, %237 : vector<8x32xf32>
    %276 = arith.mulf %271, %273 : vector<8x32xf32>
    %277 = arith.addf %275, %276 : vector<8x32xf32>
    %278 = math.tanh %277 : vector<8x32xf32>
    %279 = arith.mulf %274, %278 : vector<8x32xf32>
    %c7 = arith.constant 7 : index
    %c0_65 = arith.constant 0 : index
    %c0_66 = arith.constant 0 : index
    %280 = vector.load %arg0[%c7, %c0_65, %c0_66] : memref<8x8x4xf32, #tpu.memory_space<vmem>>, vector<1x8x4xf32>
    %281 = vector.shape_cast %280 : vector<1x8x4xf32> to vector<8x4xf32>
    %cst_67 = arith.constant dense<0.000000e+00> : vector<8x128xf32>
    %282 = tpu.matmul %281, %0, %cst_67 {dimension_numbers = #tpu.dot_dimension_numbers<[1], [0], [0], [1], [0, 0, 1, 1], [], []>, precision = #tpu.contract_precision<fp32>} : vector<8x4xf32>, vector<4x128xf32>, vector<8x128xf32> -> vector<8x128xf32>
    %283 = arith.addf %282, %6 : vector<8x128xf32>
    %cst_68 = arith.constant dense<0.000000e+00> : vector<8x128xf32>
    %284 = tpu.matmul %260, %1, %cst_68 {dimension_numbers = #tpu.dot_dimension_numbers<[1], [0], [0], [1], [0, 0, 1, 1], [], []>, precision = #tpu.contract_precision<fp32>} : vector<8x32xf32>, vector<32x128xf32>, vector<8x128xf32> -> vector<8x128xf32>
    %285 = arith.addf %283, %284 : vector<8x128xf32>
    %286 = arith.negf %285 : vector<8x128xf32>
    %287 = math.exp %286 : vector<8x128xf32>
    %cst_69 = arith.constant 1.000000e+00 : f32
    %288 = vector.broadcast %cst_69 : f32 to vector<8x128xf32>
    %289 = arith.addf %288, %287 : vector<8x128xf32>
    %290 = arith.divf %288, %289 : vector<8x128xf32>
    %291 = math.tanh %285 : vector<8x128xf32>
    %292 = vector.extract_strided_slice %290 {offsets = [0, 0], sizes = [8, 32], strides = [1, 1]} : vector<8x128xf32> to vector<8x32xf32>
    %293 = vector.extract_strided_slice %290 {offsets = [0, 32], sizes = [8, 32], strides = [1, 1]} : vector<8x128xf32> to vector<8x32xf32>
    %294 = vector.extract_strided_slice %291 {offsets = [0, 64], sizes = [8, 32], strides = [1, 1]} : vector<8x128xf32> to vector<8x32xf32>
    %295 = vector.extract_strided_slice %290 {offsets = [0, 96], sizes = [8, 32], strides = [1, 1]} : vector<8x128xf32> to vector<8x32xf32>
    %296 = arith.mulf %293, %258 : vector<8x32xf32>
    %297 = arith.mulf %292, %294 : vector<8x32xf32>
    %298 = arith.addf %296, %297 : vector<8x32xf32>
    %299 = math.tanh %298 : vector<8x32xf32>
    %300 = arith.mulf %295, %299 : vector<8x32xf32>
    %cst_70 = arith.constant dense<0.000000e+00> : vector<8x128xf32>
    %301 = tpu.matmul %300, %2, %cst_70 {dimension_numbers = #tpu.dot_dimension_numbers<[1], [0], [0], [1], [0, 0, 1, 1], [], []>, precision = #tpu.contract_precision<fp32>} : vector<8x32xf32>, vector<32x128xf32>, vector<8x128xf32> -> vector<8x128xf32>
    %302 = arith.addf %301, %9 : vector<8x128xf32>
    %cst_71 = arith.constant dense<0.000000e+00> : vector<8x128xf32>
    %303 = tpu.matmul %279, %3, %cst_71 {dimension_numbers = #tpu.dot_dimension_numbers<[1], [0], [0], [1], [0, 0, 1, 1], [], []>, precision = #tpu.contract_precision<fp32>} : vector<8x32xf32>, vector<32x128xf32>, vector<8x128xf32> -> vector<8x128xf32>
    %304 = arith.addf %302, %303 : vector<8x128xf32>
    %305 = arith.negf %304 : vector<8x128xf32>
    %306 = math.exp %305 : vector<8x128xf32>
    %cst_72 = arith.constant 1.000000e+00 : f32
    %307 = vector.broadcast %cst_72 : f32 to vector<8x128xf32>
    %308 = arith.addf %307, %306 : vector<8x128xf32>
    %309 = arith.divf %307, %308 : vector<8x128xf32>
    %310 = math.tanh %304 : vector<8x128xf32>
    %311 = vector.extract_strided_slice %309 {offsets = [0, 0], sizes = [8, 32], strides = [1, 1]} : vector<8x128xf32> to vector<8x32xf32>
    %312 = vector.extract_strided_slice %309 {offsets = [0, 32], sizes = [8, 32], strides = [1, 1]} : vector<8x128xf32> to vector<8x32xf32>
    %313 = vector.extract_strided_slice %310 {offsets = [0, 64], sizes = [8, 32], strides = [1, 1]} : vector<8x128xf32> to vector<8x32xf32>
    %314 = vector.extract_strided_slice %309 {offsets = [0, 96], sizes = [8, 32], strides = [1, 1]} : vector<8x128xf32> to vector<8x32xf32>
    %315 = arith.mulf %312, %277 : vector<8x32xf32>
    %316 = arith.mulf %311, %313 : vector<8x32xf32>
    %317 = arith.addf %315, %316 : vector<8x32xf32>
    %318 = math.tanh %317 : vector<8x32xf32>
    %319 = arith.mulf %314, %318 : vector<8x32xf32>
    %c0_73 = arith.constant 0 : index
    %c0_74 = arith.constant 0 : index
    %320 = vector.load %arg7[%c0_73, %c0_74] : memref<32x128xf32, #tpu.memory_space<vmem>>, vector<32x128xf32>
    %cst_75 = arith.constant dense<0.000000e+00> : vector<8x128xf32>
    %321 = tpu.matmul %319, %320, %cst_75 {dimension_numbers = #tpu.dot_dimension_numbers<[1], [0], [0], [1], [0, 0, 1, 1], [], []>, precision = #tpu.contract_precision<fp32>} : vector<8x32xf32>, vector<32x128xf32>, vector<8x128xf32> -> vector<8x128xf32>
    %c0_76 = arith.constant 0 : index
    %c0_77 = arith.constant 0 : index
    %322 = vector.load %arg8[%c0_76, %c0_77] : memref<1x128xf32, #tpu.memory_space<vmem>>, vector<1x128xf32>
    %323 = vector.shape_cast %322 : vector<1x128xf32> to vector<1x128xf32>
    %324 = vector.broadcast %323 : vector<1x128xf32> to vector<8x128xf32>
    %325 = arith.addf %321, %324 : vector<8x128xf32>
    %c0_78 = arith.constant 0 : index
    %c0_79 = arith.constant 0 : index
    %326 = vector.load %arg9[%c0_78, %c0_79] : memref<8x128xf32, #tpu.memory_space<vmem>>, vector<8x128xf32>
    tpu.vector_store %arg9[%c0_78, %c0_79], %325 {strides = array<i32>} : memref<8x128xf32, #tpu.memory_space<vmem>>, vector<8x128xf32>,
    return
  }
}

</mosaic_0001>

<bundles_post_ra>
// kernel: maglev_rnn_forward.1
= control target key start
LH: loop header
LB: loop body
LE: loop exit
PB: predicated region body
PF: predicated region fallthrough
CT: control target
= control target key end

     0   :  { %vm58_vm0 = vcmask 1043456   ;;  %vm54_vm1 = vcmask 31744   ;;  %s6377_s14 = smov 64   ;;  %s6378_s15 = smov 32   ;;  %vm242_vm6 = vcmask 261120   ;;  %s7558_s1 = inlined_call_operand.vmem [shape: f32[4,128], index: 1, kind: input, shape index: {}]   ;;  %s7559_s0 = inlined_call_operand.vmem [shape: f32[8,8,4], index: 0, kind: input, shape index: {}]   ;;  %s7560_s2 = inlined_call_operand.vmem [shape: f32[1,128], index: 2, kind: input, shape index: {}]   ;;  %s7561_s4 = inlined_call_operand.vmem [shape: f32[32,128], index: 4, kind: input, shape index: {}]   ;;  %s7562_s3 = inlined_call_operand.vmem [shape: f32[32,128], index: 3, kind: input, shape index: {}]   ;;  %s7563_s6 = inlined_call_operand.vmem [shape: f32[1,128], index: 6, kind: input, shape index: {}]   ;;  %s7564_s5 = inlined_call_operand.vmem [shape: f32[32,128], index: 5, kind: input, shape index: {}]   ;;  %s7565_s7 = inlined_call_operand.vmem [shape: f32[32,128], index: 7, kind: input, shape index: {}]   ;;  %s7566_s8 = inlined_call_operand.vmem [shape: f32[1,128], index: 8, kind: input, shape index: {}]   ;;  %s7567_s9 = inlined_call_operand.vmem [shape: f32[8,128], index: 9, kind: output, shape index: {}]  }
   0x1   :  { %v32_v0 = vld [vmem:[%s7558_s1] sm:$0xf]  ;;  %s6379_s16 = smov 96   ;;  %v40_v44 = vld [vmem:[%s7561_s4 + $0x18] sm:$0xff]  ;;  %v39_v45 = vld [vmem:[%s7561_s4 + $0x10] sm:$0xff] }
   0x2   :  { %v53_v1 = vld [vmem:[%s7559_s0] sm:$0xff]  ;;  %v60_v2 = vsel %vm58_vm0, %v32_v0, 0  ;;  %v6470_v46 = vand.u32 4294901760, %v40_v44  ;;  %v6472_v47 = vand.u32 4294901760, %v39_v45  ;;  %v38_v58 = vld [vmem:[%s7561_s4 + $0x8] sm:$0xff] }
   0x3   :  { %v56_v3 = vsel %vm54_vm1, %v53_v1, 0  ;;  %v6437_v4 = vand.u32 4294901760, %v60_v2  ;;  %v6458_v14 = vld [vmem:[%s7560_s2] ss:$0 sm:$0xff]  ;;  %v6506_v59 = vand.u32 4294901760, %v38_v58 }
   0x4   :  { %v79_v5 = vand.u32 4294901760, %v56_v3  ;;  %7621 = vst [vmem:[#allocation2_spill] sm:$0xff] %v6470_v46  ;;  %v6475_v48 = vsub.f32 %v40_v44, %v6470_v46  ;;  %v6478_v49 = vsub.f32 %v39_v45, %v6472_v47  ;;  %v37_v60 = vld [vmem:[%s7561_s4] sm:$0xff] }
   0x5   :  { %v6440_v6 = vsub.f32 %v60_v2, %v6437_v4  ;;  %78 = vmatpush.msra.mxu0 %v6437_v4  ;;  %154 = vmatpush.msra.mxu3 %v6437_v4  ;;  %7622 = vst [vmem:[#allocation3_spill] sm:$0xff] %v6472_v47  ;;  %v6512_v61 = vsub.f32 %v38_v58, %v6506_v59  ;;  %v6514_v62 = vand.u32 4294901760, %v37_v60 }
   0x6   :  { %v80_v7 = vsub.f32 %v56_v3, %v79_v5  ;;  %7623 = vst [vmem:[#allocation4_spill] sm:$0xff] %v6478_v49  ;;  %v6483_v50 = vand.u32 4294901760, %v6475_v48  ;;  %v6486_v51 = vand.u32 4294901760, %v6478_v49 }
   0x7   :  { %131 = vmatpush.msra.mxu2 %v6440_v6  ;;  %v6446_v9 = vand.u32 4294901760, %v6440_v6  ;;  %7626 = vst [vmem:[#allocation7_spill] sm:$0xff] %v6506_v59  ;;  %v6519_v63 = vand.u32 4294901760, %v6512_v61  ;;  %v6522_v0 = vsub.f32 %v37_v60, %v6514_v62  ;;  %v6680_v60 = vld [vmem:[%s7563_s6] ss:$0 sm:$0xff] }
   0x8   :  { %v81_v8 = vand.u32 4294901760, %v80_v7  ;;  %134 = vmatmul.f32.vlgmr.msra.gmra.mxu2 %v80_v7  ;;  %7624 = vst [vmem:[#allocation5_spill] sm:$0xff] %v6483_v50  ;;  %v289_v52 = vsub.f32 %v6475_v48, %v6483_v50  ;;  %v295_v53 = vsub.f32 %v6478_v49, %v6486_v51 }
   0x9   :  { %180 = vmatpush.msrb.mxu0 %v6446_v9  ;;  %v106_v11 = vsub.f32 %v6440_v6, %v6446_v9  ;;  %258 = vmatpush.msrb.mxu2 %v6470_v46  ;;  %7625 = vst [vmem:[#allocation6_spill] sm:$0xff] %v6486_v51  ;;  %v301_v1 = vsub.f32 %v6512_v61, %v6519_v63  ;;  %v6531_v2 = vand.u32 4294901760, %v6522_v0 }
   0xa   :  { %v82_v10 = vsub.f32 %v80_v7, %v81_v8  ;;  %158 = vmatmul.f32.vlgmr.msra.gmra.mxu3 %v81_v8  ;;  %v6496_v54 = vand.u32 4294901760, %v289_v52  ;;  %v6498_v55 = vand.u32 4294901760, %v295_v53  ;;  %7627 = vst [vmem:[#allocation8_spill] sm:$0xff] %v6512_v61  ;;  %v6218_v8 = vld [vmem:[%s7559_s0 + $0x8] sm:$0xff] }
   0xb   :  { %v6451_v13 = vand.u32 4294901760, %v106_v11  ;;  %260 = vmatpush.msrb.mxu2 %v6472_v47  ;;  %7628 = vst [vmem:[#allocation9_spill] sm:$0xff] %v6514_v62  ;;  %v6536_v3 = vand.u32 4294901760, %v301_v1  ;;  %v464_v11 = vsel %vm54_vm1, %v6218_v8, 0 }
   0xc   :  { %v83_v12 = vand.u32 4294901760, %v82_v10  ;;  %291 = vmatpush.msrb.mxu3 %v6496_v54  ;;  %7629 = vst [vmem:[#allocation10_spill] sm:$0xff] %v6519_v63  ;;  %v36_v10 = vld [vmem:[%s7562_s3 + $0x18] sm:$0xff] }
   0xd   :  { %108 = vmatpush.msra.mxu1 %v6451_v13  ;;  %262 = vmatpush.msrb.mxu2 %v6506_v59  ;;  %7630 = vst [vmem:[#allocation11_spill] sm:$0xff] %v6522_v0 }
   0xe   :  { %84 = vmatmul.f32.vlgmr.msra.gmra.mxu0 %v83_v12  ;;  %110 = vmatmul.f32.vlgmr.msra.gmra.mxu1 %v79_v5  ;;  %7631 = vst [vmem:[#allocation12_spill] sm:$0xff] %v6531_v2  ;;  %v35_v12 = vld [vmem:[%s7562_s3 + $0x10] sm:$0xff] }
   0xf   :  { %202 = vmatpush.msrb.mxu1 %v6437_v4  ;;  %329 = vmatpush.msra.mxu0 %v6475_v48  ;;  %7632 = vst [vmem:[#allocation13_spill] sm:$0xff] %v6536_v3 }
  0x10   :  { %297 = vmatpush.msrb.mxu3 %v6498_v55  ;;  %264 = vmatpush.msrb.mxu2 %v6514_v62 }
  0x11   :  { %358 = vmatpush.msra.mxu1 %v6470_v46  ;;  %332 = vmatpush.msra.mxu0 %v6478_v49 }
  0x12   :  { %387 = vmatpush.msra.mxu2 %v6483_v50  ;;  %303 = vmatpush.msrb.mxu3 %v6536_v3 }
  0x13   :  { %360 = vmatpush.msra.mxu1 %v6472_v47  ;;  %335 = vmatpush.msra.mxu0 %v6512_v61 }
  0x14   :  { %391 = vmatpush.msra.mxu2 %v6486_v51 }
  0x15   :  { %362 = vmatpush.msra.mxu1 %v6506_v59  ;;  %338 = vmatpush.msra.mxu0 %v6522_v0 }
  0x16   :  { %182 = vmatmul.f32.vlgmr.msrb.gmra.mxu0 %v79_v5  ;;  %204 = vmatmul.f32.vlgmr.msrb.gmra.mxu1 %v79_v5  ;;  %v307_v5 = vsub.f32 %v6522_v0, %v6531_v2 }
  0x17   :  { %364 = vmatpush.msra.mxu1 %v6514_v62  ;;  %482 = vmatpush.msrb.mxu0 %v6437_v4 }
  0x18   :  { %v6542_v7 = vand.u32 4294901760, %v307_v5  ;;  %395 = vmatpush.msra.mxu2 %v6519_v63 }
  0x19   :  { %512 = vmatpush.msrb.mxu1 %v6451_v13 }
  0x1a   :  { %7633 = vst [vmem:[#allocation14_spill] sm:$0xff] %v6542_v7  ;;  %309 = vmatpush.msrb.mxu3 %v6542_v7  ;;  %399 = vmatpush.msra.mxu2 %v6531_v2 }
  0x1c   :  { %418 = vmatpush.msra.mxu3 %v6470_v46 }
  0x1e   :  { %420 = vmatpush.msra.mxu3 %v6472_v47 }
  0x20   :  { %422 = vmatpush.msra.mxu3 %v6506_v59 }
  0x22   :  { %424 = vmatpush.msra.mxu3 %v6514_v62 }
  0x8b   :  { %v85_v15 = vpop.f32.mrf.mxu0  ;;  %v111_v17 = vpop.f32.mrf.mxu1 }
  0x8c   :  { %v86_v16 = vadd.f32 %v6458_v14, %v85_v15  ;;  %v135_v18 = vpop.f32.mrf.mxu2  ;;  %v6561_v15 = vand.u32 4294901760, %v36_v10 }
  0x8d   :  { %v159_v20 = vpop.f32.mrf.mxu3 }
  0x8e   :  { %v112_v19 = vadd.f32 %v111_v17, %v86_v16  ;;  %v483_v16 = vand.u32 4294901760, %v464_v11  ;;  %v34_v17 = vld [vmem:[%s7562_s3 + $0x8] sm:$0xff] }
  0x90   :  { %v136_v21 = vadd.f32 %v135_v18, %v112_v19  ;;  %v6566_v18 = vand.u32 4294901760, %v35_v12  ;;  %v33_v19 = vld [vmem:[%s7562_s3] sm:$0xff] }
  0x92   :  { %v160_v22 = vadd.f32 %v159_v20, %v136_v21  ;;  %v6572_v20 = vsub.f32 %v36_v10, %v6561_v15  ;;  %v6574_v21 = vand.u32 4294901760, %v34_v17 }
  0x93   :  { %v183_v23 = vpop.f32.mrf.mxu0  ;;  %v205_v25 = vpop.f32.mrf.mxu1 }
  0x94   :  { %v184_v24 = vadd.f32 %v183_v23, %v160_v22  ;;  %v484_v22 = vsub.f32 %v464_v11, %v483_v16  ;;  %v6577_v23 = vsub.f32 %v35_v12, %v6566_v18 }
  0x96   :  { %v206_v26 = vadd.f32 %v205_v25, %v184_v24  ;;  %v6579_v24 = vand.u32 4294901760, %v33_v19 }
  0x98   :  { %6245 = vtanh.f32 %v206_v26  ;;  %v6216_v28 = vmul.f32 -1.442695, %v206_v26 }
  0x9a   :  { %6247 = vpow2.f32 %v6216_v28  ;;  %v6586_v28 = vsub.f32 %v34_v17, %v6574_v21 }
  0x9e   :  { %v6246_v27 = vpop.eup %6245 }
  0x9f   :  { %229 = vrot.lane.b32.xlu0 %v6246_v27, %s6377_s14  ;;  %v6583_v27 = vand.u32 4294901760, %v6572_v20 }
  0xa0   :  { %v6248_v29 = vpop.eup %6247 }
  0xa1   :  { %v211_v30 = vadd.f32 1.0, %v6248_v29 }
  0xa3   :  { %6249 = vrcp.f32 %v211_v30  ;;  %v223_v36 = vand.u32 2147483648, %v211_v30  ;;  %vm217_vm3 = vweird.f32 %v211_v30  ;;  %v221_v37 = vand.u32 2147483647, %v211_v30 }
  0xa5   :  { %v224_v39 = vor.u32 1.1754944e-38, %v223_v36  ;;  %vm222_vm5 = vcmp.eq.f32.partialorder %v221_v37, 8.507059e+37 }
  0xa9   :  { %v6250_v31 = vpop.eup %6249 }
  0xaa   :  { %v213_v32 = vmul.f32 %v6250_v31, %v211_v30  ;;  %vm218_vm2 = vweird.f32 %v6250_v31  ;;  %v485_v30 = vand.u32 4294901760, %v484_v22 }
  0xab   :  { %vm219_vm4 = vmor %vm217_vm3, %vm218_vm2 }
  0xac   :  { %v214_v33 = vsub.f32 1.0, %v213_v32  ;;  %v6594_v32 = vsub.f32 %v33_v19, %v6579_v24  ;;  %v486_v37 = vsub.f32 %v484_v22, %v485_v30 }
  0xae   :  { %v215_v34 = vmul.f32 %v6250_v31, %v214_v33  ;;  %v487_v44 = vand.u32 4294901760, %v486_v37 }
  0xb0   :  { %v216_v35 = vadd.f32 %v6250_v31, %v215_v34  ;;  %v656_v34 = vsub.f32 %v6572_v20, %v6583_v27 }
  0xb2   :  { %v220_v38 = vsel %vm219_vm4, %v6250_v31, %v216_v35  ;;  %v6591_v31 = vand.u32 4294901760, %v6577_v23  ;;  %v6602_v35 = vand.u32 4294901760, %v6586_v28 }
  0xb3   :  { %v225_v41 = vsel %vm222_vm5, %v224_v39, %v220_v38  ;;  %v6608_v39 = vand.u32 4294901760, %v6594_v32 }
  0xb4   :  { %v662_v38 = vsub.f32 %v6577_v23, %v6591_v31 }
  0xb5   :  { %v674_v52 = vsub.f32 %v6594_v32, %v6608_v39 }
  0xb6   :  { %v6615_v45 = vand.u32 4294901760, %v662_v38 }
 0x111   :  { %v230_v40 = vpop.permute.xlu0 %229 }
 0x112   :  { %v232_v42 = vmul.f32 %v230_v40, %v225_v41 }
 0x114   :  { %6251 = vtanh.f32 %v232_v42  ;;  %819 = vrot.lane.b32.xlu2 %v232_v42, %s6378_s15  ;;  %v668_v42 = vsub.f32 %v6586_v28, %v6602_v35 }
 0x116   :  { %v6622_v53 = vand.u32 4294901760, %v668_v42 }
 0x11a   :  { %v6252_v43 = vpop.eup %6251 }
 0x11b   :  { %235 = vrot.lane.b32.xlu0 %v6252_v43, %s6379_s16 }
 0x18d   :  { %v236_v56 = vpop.permute.xlu0 %235 }
 0x18e   :  { %v238_v57 = vmul.f32 %v236_v56, %v225_v41  ;;  %v6610_v41 = vand.u32 4294901760, %v656_v34  ;;  %v6626_v56 = vand.u32 4294901760, %v674_v52 }
 0x190   :  { %240 = vrot.lane.b32.xlu1 %v238_v57, %s6378_s15 }
 0x202   :  { %v241_v25 = vpop.permute.xlu1 %240 }
 0x203   :  { %v243_v26 = vsel %vm242_vm6, %v241_v25, 0 }
 0x204   :  { %v6588_v29 = vand.u32 4294901760, %v243_v26 }
 0x206   :  { %v266_v33 = vsub.f32 %v243_v26, %v6588_v29  ;;  %311 = vmatmul.f32.vlgmr.msrb.gmra.mxu3 %v6588_v29 }
 0x207   :  { %558 = vmatpush.msrb.mxu3 %v6437_v4 }
 0x208   :  { %341 = vmatmul.f32.vlgmr.msra.gmra.mxu0 %v266_v33  ;;  %v267_v36 = vand.u32 4294901760, %v266_v33 }
 0x209   :  { %584 = vmatpush.msra.mxu0 %v6446_v9 }
 0x20a   :  { %368 = vmatmul.f32.vlgmr.msra.gmra.mxu1 %v267_v36  ;;  %v268_v40 = vsub.f32 %v266_v33, %v267_v36 }
 0x20b   :  { %606 = vmatpush.msra.mxu1 %v6437_v4 }
 0x20c   :  { %v269_v43 = vand.u32 4294901760, %v268_v40 }
 0x20e   :  { %270 = vmatmul.f32.vlgmr.msrb.gmra.mxu2 %v269_v43  ;;  %426 = vmatmul.f32.vlgmr.msra.gmra.mxu3 %v6588_v29 }
 0x20f   :  { %535 = vmatpush.msrb.mxu2 %v6440_v6  ;;  %658 = vmatpush.msra.mxu3 %v6610_v41 }
 0x210   :  { %488 = vmatmul.f32.vlgmr.msrb.gmra.mxu0 %v487_v44 }
 0x211   :  { %664 = vmatpush.msra.mxu3 %v6615_v45  ;;  %696 = vmatpush.msrb.mxu0 %v6572_v20 }
 0x212   :  { %514 = vmatmul.f32.vlgmr.msrb.gmra.mxu1 %v483_v16 }
 0x213   :  { %670 = vmatpush.msra.mxu3 %v6622_v53  ;;  %699 = vmatpush.msrb.mxu0 %v6577_v23 }
 0x214   :  { %725 = vmatpush.msrb.mxu1 %v6561_v15 }
 0x215   :  { %676 = vmatpush.msra.mxu3 %v6626_v56  ;;  %702 = vmatpush.msrb.mxu0 %v6586_v28 }
 0x216   :  { %401 = vmatmul.f32.vlgmr.msra.gmra.mxu2 %v6588_v29  ;;  %562 = vmatmul.f32.vlgmr.msrb.gmra.mxu3 %v485_v30 }
 0x217   :  { %727 = vmatpush.msrb.mxu1 %v6566_v18  ;;  %625 = vmatpush.msra.mxu2 %v6561_v15 }
 0x218   :  { %586 = vmatmul.f32.vlgmr.msra.gmra.mxu0 %v483_v16  ;;  %785 = vmatpush.msrb.mxu3 %v6561_v15 }
 0x219   :  { %705 = vmatpush.msrb.mxu0 %v6594_v32  ;;  %729 = vmatpush.msrb.mxu1 %v6574_v21 }
 0x21a   :  { %608 = vmatmul.f32.vlgmr.msra.gmra.mxu1 %v483_v16  ;;  %627 = vmatpush.msra.mxu2 %v6566_v18 }
 0x21b   :  { %731 = vmatpush.msrb.mxu1 %v6579_v24  ;;  %787 = vmatpush.msrb.mxu3 %v6566_v18 }
 0x21c   :  { %629 = vmatpush.msra.mxu2 %v6574_v21  ;;  %857 = vmatpush.msra.mxu0 %v6470_v46 }
 0x21d   :  { %890 = vmatpush.msra.mxu1 %v6496_v54  ;;  %789 = vmatpush.msrb.mxu3 %v6574_v21 }
 0x21e   :  { %538 = vmatmul.f32.vlgmr.msrb.gmra.mxu2 %v484_v22  ;;  %678 = vmatmul.f32.vlgmr.msra.gmra.mxu3 %v6588_v29 }
 0x21f   :  { %631 = vmatpush.msra.mxu2 %v6579_v24  ;;  %791 = vmatpush.msrb.mxu3 %v6579_v24 }
 0x220   :  { %708 = vmatmul.f32.vlgmr.msrb.gmra.mxu0 %v266_v33  ;;  %896 = vmatpush.msra.mxu1 %v6498_v55 }
 0x221   :  { %754 = vmatpush.msrb.mxu2 %v6583_v27  ;;  %957 = vmatpush.msra.mxu3 %v6470_v46 }
 0x222   :  { %735 = vmatmul.f32.vlgmr.msrb.gmra.mxu1 %v267_v36  ;;  %859 = vmatpush.msra.mxu0 %v6472_v47 }
 0x223   :  { %758 = vmatpush.msrb.mxu2 %v6591_v31  ;;  %902 = vmatpush.msra.mxu1 %v6536_v3 }
 0x224   :  { %959 = vmatpush.msra.mxu3 %v6472_v47  ;;  %861 = vmatpush.msra.mxu0 %v6506_v59 }
 0x225   :  { %762 = vmatpush.msrb.mxu2 %v6602_v35  ;;  %908 = vmatpush.msra.mxu1 %v6542_v7 }
 0x226   :  { %961 = vmatpush.msra.mxu3 %v6506_v59  ;;  %637 = vmatmul.f32.vlgmr.msra.gmra.mxu2 %v269_v43 }
 0x227   :  { %793 = vmatmul.f32.vlgmr.msrb.gmra.mxu3 %v6588_v29  ;;  %766 = vmatpush.msrb.mxu2 %v6608_v39 }
 0x228   :  { %1017 = vmatpush.msrb.mxu1 %v6470_v46  ;;  %963 = vmatpush.msra.mxu3 %v6514_v62 }
 0x229   :  { %928 = vmatpush.msra.mxu2 %v6475_v48  ;;  %863 = vmatpush.msra.mxu0 %v6514_v62 }
 0x22a   :  { %1019 = vmatpush.msrb.mxu1 %v6472_v47 }
 0x22b   :  { %931 = vmatpush.msra.mxu2 %v6478_v49  ;;  %986 = vmatpush.msrb.mxu0 %v6483_v50 }
 0x22c   :  { %1021 = vmatpush.msrb.mxu1 %v6506_v59 }
 0x22d   :  { %934 = vmatpush.msra.mxu2 %v6512_v61  ;;  %990 = vmatpush.msrb.mxu0 %v6486_v51 }
 0x22e   :  { %1023 = vmatpush.msrb.mxu1 %v6514_v62  ;;  %768 = vmatmul.f32.vlgmr.msrb.gmra.mxu2 %v6588_v29 }
 0x22f   :  { %937 = vmatpush.msra.mxu2 %v6522_v0  ;;  %994 = vmatpush.msrb.mxu0 %v6519_v63 }
 0x231   :  { %998 = vmatpush.msrb.mxu0 %v6531_v2 }
 0x285   :  { %v342_v58 = vpop.f32.mrf.mxu0 }
 0x287   :  { %v369_v1 = vpop.f32.mrf.mxu1 }
 0x289   :  { %v312_v57 = vpop.f32.mrf.mxu3 }
 0x28d   :  { %v489_v16 = vpop.f32.mrf.mxu0 }
 0x28e   :  { %v490_v30 = vadd.f32 %v6458_v14, %v489_v16 }
 0x28f   :  { %v515_v25 = vpop.f32.mrf.mxu1 }
 0x290   :  { %v516_v37 = vadd.f32 %v515_v25, %v490_v30 }
 0x291   :  { %v271_v5 = vpop.f32.mrf.mxu2  ;;  %v427_v11 = vpop.f32.mrf.mxu3 }
 0x292   :  { %v272_v8 = vadd.f32 %v6680_v60, %v271_v5 }
 0x294   :  { %v313_v10 = vadd.f32 %v312_v57, %v272_v8 }
 0x295   :  { %v587_v33 = vpop.f32.mrf.mxu0 }
 0x296   :  { %v343_v12 = vadd.f32 %v342_v58, %v313_v10 }
 0x297   :  { %v609_v38 = vpop.f32.mrf.mxu1 }
 0x298   :  { %v370_v17 = vadd.f32 %v369_v1, %v343_v12 }
 0x299   :  { %v402_v19 = vpop.f32.mrf.mxu2  ;;  %v563_v29 = vpop.f32.mrf.mxu3 }
 0x29a   :  { %v403_v22 = vadd.f32 %v402_v19, %v370_v17 }
 0x29c   :  { %v428_v26 = vadd.f32 %v427_v11, %v403_v22 }
 0x29d   :  { %v709_v52 = vpop.f32.mrf.mxu0 }
 0x29e   :  { %6253 = vtanh.f32 %v428_v26  ;;  %v6217_v25 = vmul.f32 -1.442695, %v428_v26 }
 0x29f   :  { %v736_v1 = vpop.f32.mrf.mxu1 }
 0x2a1   :  { %v539_v34 = vpop.f32.mrf.mxu2  ;;  %v679_v42 = vpop.f32.mrf.mxu3 }
 0x2a2   :  { %v540_v40 = vadd.f32 %v539_v34, %v516_v37 }
 0x2a4   :  { %v6254_v36 = vpop.eup %6253  ;;  %v564_v57 = vadd.f32 %v563_v29, %v540_v40 }
 0x2a5   :  { %451 = vrot.lane.b32.xlu0 %v6254_v36, %s6377_s14 }
 0x2a6   :  { %v588_v5 = vadd.f32 %v587_v33, %v564_v57 }
 0x2a8   :  { %v610_v16 = vadd.f32 %v609_v38, %v588_v5 }
 0x2a9   :  { %v638_v43 = vpop.f32.mrf.mxu2 }
 0x2aa   :  { %v680_v44 = vadd.f32 %v679_v42, %v638_v43  ;;  %v794_v12 = vpop.f32.mrf.mxu3 }
 0x2ac   :  { %v710_v58 = vadd.f32 %v709_v52, %v680_v44 }
 0x2ae   :  { %v737_v8 = vadd.f32 %v736_v1, %v710_v58 }
 0x2b1   :  { %v769_v10 = vpop.f32.mrf.mxu2 }
 0x2b2   :  { %v770_v11 = vadd.f32 %v769_v10, %v737_v8 }
 0x2b4   :  { %v795_v17 = vadd.f32 %v794_v12, %v770_v11 }
 0x2b6   :  { %v797_v19 = vadd.f32 %v795_v17, %v610_v16 }
 0x2b8   :  { %6255 = vtanh.f32 %v797_v19  ;;  %v6219_v30 = vmul.f32 -1.442695, %v797_v19 }
 0x2b9   :  { %6257 = vpow2.f32 %v6217_v25 }
 0x2ba   :  { %6259 = vpow2.f32 %v6219_v30 }
 0x2be   :  { %v6256_v22 = vpop.eup %6255 }
 0x2bf   :  { %824 = vrot.lane.b32.xlu1 %v6256_v22, %s6377_s14  ;;  %v6258_v34 = vpop.eup %6257 }
 0x2c0   :  { %v6260_v29 = vpop.eup %6259  ;;  %v433_v36 = vadd.f32 1.0, %v6258_v34 }
 0x2c1   :  { %v801_v37 = vadd.f32 1.0, %v6260_v29 }
 0x2c2   :  { %6261 = vrcp.f32 %v433_v36  ;;  %v445_v26 = vand.u32 2147483648, %v433_v36  ;;  %vm439_vm9 = vweird.f32 %v433_v36  ;;  %v443_v5 = vand.u32 2147483647, %v433_v36 }
 0x2c3   :  { %6263 = vrcp.f32 %v801_v37  ;;  %v813_v8 = vand.u32 2147483648, %v801_v37  ;;  %vm807_vm11 = vweird.f32 %v801_v37  ;;  %v811_v10 = vand.u32 2147483647, %v801_v37 }
 0x2c4   :  { %v446_v16 = vor.u32 1.1754944e-38, %v445_v26  ;;  %vm444_vm13 = vcmp.eq.f32.partialorder %v443_v5, 8.507059e+37 }
 0x2c5   :  { %v814_v19 = vor.u32 1.1754944e-38, %v813_v8  ;;  %vm812_vm14 = vcmp.eq.f32.partialorder %v811_v10, 8.507059e+37  ;;  %v42_v10 = vld [vmem:[%s7564_s5 + $0x8] sm:$0xff] }
 0x2c8   :  { %v6262_v33 = vpop.eup %6261 }
 0x2c9   :  { %v6264_v40 = vpop.eup %6263  ;;  %v435_v42 = vmul.f32 %v6262_v33, %v433_v36  ;;  %vm440_vm7 = vweird.f32 %v6262_v33 }
 0x2ca   :  { %v803_v38 = vmul.f32 %v6264_v40, %v801_v37  ;;  %vm808_vm8 = vweird.f32 %v6264_v40  ;;  %vm441_vm10 = vmor %vm439_vm9, %vm440_vm7  ;;  %v820_v37 = vpop.permute.xlu2 %819 }
 0x2cb   :  { %v436_v43 = vsub.f32 1.0, %v435_v42  ;;  %vm809_vm12 = vmor %vm807_vm11, %vm808_vm8 }
 0x2cc   :  { %v804_v44 = vsub.f32 1.0, %v803_v38 }
 0x2cd   :  { %v437_v52 = vmul.f32 %v6262_v33, %v436_v43 }
 0x2ce   :  { %v805_v57 = vmul.f32 %v6264_v40, %v804_v44 }
 0x2cf   :  { %v438_v58 = vadd.f32 %v6262_v33, %v437_v52 }
 0x2d0   :  { %v806_v1 = vadd.f32 %v6264_v40, %v805_v57 }
 0x2d1   :  { %v442_v11 = vsel %vm441_vm10, %v6262_v33, %v438_v58  ;;  %v44_v58 = vld [vmem:[%s7564_s5 + $0x18] sm:$0xff] }
 0x2d2   :  { %v810_v17 = vsel %vm809_vm12, %v6264_v40, %v806_v1  ;;  %v447_v22 = vsel %vm444_vm13, %v446_v16, %v442_v11  ;;  %v6700_v26 = vand.u32 4294901760, %v44_v58  ;;  %v43_v1 = vld [vmem:[%s7564_s5 + $0x10] sm:$0xff] }
 0x2d3   :  { %v815_v34 = vsel %vm812_vm14, %v814_v19, %v810_v17  ;;  %v6706_v5 = vand.u32 4294901760, %v43_v1  ;;  %v41_v17 = vld [vmem:[%s7564_s5] sm:$0xff] }
 0x2d4   :  { %v822_v33 = vmul.f32 %v820_v37, %v815_v34  ;;  %1047 = vmatpush.msrb.mxu2 %v6700_v26  ;;  %v6709_v8 = vsub.f32 %v44_v58, %v6700_v26 }
 0x2d5   :  { %v6721_v16 = vsub.f32 %v43_v1, %v6706_v5 }
 0x2d6   :  { %1049 = vmatpush.msrb.mxu2 %v6706_v5  ;;  %v6716_v11 = vand.u32 4294901760, %v6709_v8 }
 0x2d8   :  { %7636 = vst [vmem:[#allocation17_spill] sm:$0xff] %v6716_v11  ;;  %v1078_v19 = vsub.f32 %v6709_v8, %v6716_v11 }
 0x317   :  { %v452_v12 = vpop.permute.xlu0 %451 }
 0x318   :  { %v6686_v25 = vmul.f32 %v452_v12, %v447_v22  ;;  %v6718_v12 = vand.u32 4294901760, %v42_v10 }
 0x31a   :  { %7634 = vst [vmem:[#allocation15_spill] sm:$0xff] %v6686_v25  ;;  %6265 = vtanh.f32 %v6686_v25  ;;  %1051 = vmatpush.msrb.mxu2 %v6718_v12 }
 0x320   :  { %v6266_v36 = vpop.eup %6265 }
 0x331   :  { %v825_v30 = vpop.permute.xlu1 %824 }
 0x332   :  { %v827_v29 = vmul.f32 %v825_v30, %v815_v34  ;;  %v6732_v30 = vand.u32 4294901760, %v41_v17 }
 0x334   :  { %829 = vrot.lane.b32.xlu2 %v827_v29, %s6378_s15  ;;  %v6737_v29 = vand.u32 4294901760, %v1078_v19  ;;  %1053 = vmatpush.msrb.mxu2 %v6732_v30 }
 0x336   :  { %7637 = vst [vmem:[#allocation18_spill] sm:$0xff] %v6737_v29  ;;  %1080 = vmatpush.msrb.mxu3 %v6737_v29 }
 0x33c   :  { %457 = vrot.lane.b32.xlu2 %v6266_v36, %s6379_s16 }
 0x38e   :  { %v830_v42 = vpop.permute.xlu2 %829 }
 0x38f   :  { %v6691_v40 = vadd.f32 %v830_v42, %v822_v33  ;;  %v6746_v33 = vsub.f32 %v41_v17, %v6732_v30 }
 0x391   :  { %7635 = vst [vmem:[#allocation16_spill] sm:$0xff] %v6691_v40  ;;  %6267 = vtanh.f32 %v6691_v40 }
 0x396   :  { %v458_v43 = vpop.permute.xlu2 %457 }
 0x397   :  { %v6268_v38 = vpop.eup %6267  ;;  %v460_v44 = vmul.f32 %v458_v43, %v447_v22  ;;  %v6730_v22 = vand.u32 4294901760, %v6721_v16  ;;  %v6754_v43 = vand.u32 4294901760, %v6746_v33 }
 0x398   :  { %835 = vrot.lane.b32.xlu1 %v6268_v38, %s6377_s14 }
 0x399   :  { %v1084_v36 = vsub.f32 %v6721_v16, %v6730_v22 }
 0x39b   :  { %v6749_v42 = vand.u32 4294901760, %v1084_v36 }
 0x39d   :  { %7638 = vst [vmem:[#allocation19_spill] sm:$0xff] %v6749_v42  ;;  %1086 = vmatpush.msrb.mxu3 %v6749_v42 }
 0x3a0   :  { %1030 = vrot.lane.b32.xlu1 %v460_v44, %s6378_s15 }
 0x40a   :  { %v836_v52 = vpop.permute.xlu1 %835 }
 0x40b   :  { %v838_v57 = vmul.f32 %v836_v52, %v815_v34  ;;  %v6735_v34 = vsub.f32 %v42_v10, %v6718_v12  ;;  %v1096_v52 = vsub.f32 %v6746_v33, %v6754_v43 }
 0x40d   :  { %840 = vrot.lane.b32.xlu0 %v838_v57, %s6378_s15  ;;  %v6743_v37 = vand.u32 4294901760, %v6735_v34  ;;  %v6762_v57 = vand.u32 4294901760, %v1096_v52 }
 0x40f   :  { %v1090_v38 = vsub.f32 %v6735_v34, %v6743_v37  ;;  %7640 = vst [vmem:[#allocation21_spill] sm:$0xff] %v6762_v57 }
 0x411   :  { %v6757_v44 = vand.u32 4294901760, %v1090_v38 }
 0x412   :  { %v1031_v58 = vpop.permute.xlu1 %1030 }
 0x413   :  { %7639 = vst [vmem:[#allocation20_spill] sm:$0xff] %v6757_v44  ;;  %1092 = vmatpush.msrb.mxu3 %v6757_v44  ;;  %v1032_v1 = vsel %vm242_vm6, %v1031_v58, 0 }
 0x414   :  { %v1054_v10 = vand.u32 4294901760, %v1032_v1 }
 0x415   :  { %1098 = vmatpush.msrb.mxu3 %v6762_v57 }
 0x416   :  { %v1055_v17 = vsub.f32 %v1032_v1, %v1054_v10 }
 0x418   :  { %v1056_v38 = vand.u32 4294901760, %v1055_v17 }
 0x41a   :  { %v1057_v58 = vsub.f32 %v1055_v17, %v1056_v38 }
 0x47f   :  { %v841_v19 = vpop.permute.xlu0 %840 }
 0x480   :  { %v842_v36 = vsel %vm242_vm6, %v841_v19, 0 }
 0x481   :  { %v6767_v40 = vand.u32 4294901760, %v842_v36 }
 0x483   :  { %v6770_v25 = vsub.f32 %v842_v36, %v6767_v40  ;;  %910 = vmatmul.f32.vlgmr.msra.gmra.mxu1 %v6767_v40  ;;  %v6221_v36 = vld [vmem:[%s7559_s0 + $0x10] sm:$0xff] }
 0x484   :  { %1147 = vmatpush.msra.mxu1 %v6700_v26 }
 0x485   :  { %940 = vmatmul.f32.vlgmr.msra.gmra.mxu2 %v6770_v25  ;;  %v6776_v52 = vand.u32 4294901760, %v6770_v25 }
 0x486   :  { %1149 = vmatpush.msra.mxu1 %v6706_v5  ;;  %1176 = vmatpush.msra.mxu2 %v6716_v11  ;;  %v1058_v11 = vand.u32 4294901760, %v1057_v58 }
 0x487   :  { %967 = vmatmul.f32.vlgmr.msra.gmra.mxu3 %v6776_v52  ;;  %v867_v1 = vsub.f32 %v6770_v25, %v6776_v52 }
 0x488   :  { %1151 = vmatpush.msra.mxu1 %v6718_v12  ;;  %1180 = vmatpush.msra.mxu2 %v6730_v22 }
 0x489   :  { %v868_v19 = vand.u32 4294901760, %v867_v1  ;;  %1207 = vmatpush.msra.mxu3 %v6700_v26  ;;  %v1264_v1 = vsel %vm54_vm1, %v6221_v36, 0 }
 0x48a   :  { %1153 = vmatpush.msra.mxu1 %v6732_v30  ;;  %1184 = vmatpush.msra.mxu2 %v6743_v37  ;;  %v1283_v58 = vand.u32 4294901760, %v1264_v1 }
 0x48b   :  { %869 = vmatmul.f32.vlgmr.msra.gmra.mxu0 %v868_v19  ;;  %1025 = vmatmul.f32.vlgmr.msrb.gmra.mxu1 %v6767_v40 }
 0x48c   :  { %1209 = vmatpush.msra.mxu3 %v6706_v5  ;;  %1118 = vmatpush.msra.mxu0 %v6709_v8 }
 0x48d   :  { %1059 = vmatmul.f32.vlgmr.msrb.gmra.mxu2 %v1058_v11  ;;  %1312 = vmatpush.msrb.mxu1 %v6451_v13  ;;  %v1284_v11 = vsub.f32 %v1264_v1, %v1283_v58 }
 0x48e   :  { %1188 = vmatpush.msra.mxu2 %v6754_v43  ;;  %1211 = vmatpush.msra.mxu3 %v6718_v12 }
 0x48f   :  { %1100 = vmatmul.f32.vlgmr.msrb.gmra.mxu3 %v1054_v10  ;;  %1121 = vmatpush.msra.mxu0 %v6721_v16  ;;  %v1285_v36 = vand.u32 4294901760, %v1284_v11 }
 0x490   :  { %1213 = vmatpush.msra.mxu3 %v6732_v30  ;;  %1335 = vmatpush.msrb.mxu2 %v6440_v6 }
 0x491   :  { %1124 = vmatpush.msra.mxu0 %v6735_v34 }
 0x492   :  { %1358 = vmatpush.msrb.mxu3 %v6437_v4 }
 0x493   :  { %1000 = vmatmul.f32.vlgmr.msrb.gmra.mxu0 %v6767_v40  ;;  %1157 = vmatmul.f32.vlgmr.msra.gmra.mxu1 %v1056_v38  ;;  %v1286_v38 = vsub.f32 %v1284_v11, %v1285_v36 }
 0x494   :  { %1127 = vmatpush.msra.mxu0 %v6746_v33  ;;  %1406 = vmatpush.msra.mxu1 %v6437_v4 }
 0x495   :  { %1190 = vmatmul.f32.vlgmr.msra.gmra.mxu2 %v1054_v10 }
 0x496   :  { %1282 = vmatpush.msrb.mxu0 %v6437_v4  ;;  %1425 = vmatpush.msra.mxu2 %v6561_v15 }
 0x497   :  { %1215 = vmatmul.f32.vlgmr.msra.gmra.mxu3 %v1054_v10  ;;  %v1287_v10 = vand.u32 4294901760, %v1286_v38 }
 0x498   :  { %1427 = vmatpush.msra.mxu2 %v6566_v18  ;;  %1458 = vmatpush.msra.mxu3 %v6610_v41 }
 0x49a   :  { %1429 = vmatpush.msra.mxu2 %v6574_v21  ;;  %1464 = vmatpush.msra.mxu3 %v6615_v45 }
 0x49b   :  { %1130 = vmatmul.f32.vlgmr.msra.gmra.mxu0 %v1055_v17  ;;  %1314 = vmatmul.f32.vlgmr.msrb.gmra.mxu1 %v1283_v58 }
 0x49c   :  { %1384 = vmatpush.msra.mxu0 %v6446_v9  ;;  %1431 = vmatpush.msra.mxu2 %v6579_v24 }
 0x49d   :  { %1338 = vmatmul.f32.vlgmr.msrb.gmra.mxu2 %v1284_v11  ;;  %1470 = vmatpush.msra.mxu3 %v6622_v53 }
 0x49e   :  { %1525 = vmatpush.msrb.mxu1 %v6561_v15  ;;  %1554 = vmatpush.msrb.mxu2 %v6583_v27 }
 0x49f   :  { %1362 = vmatmul.f32.vlgmr.msrb.gmra.mxu3 %v1285_v36 }
 0x4a0   :  { %1476 = vmatpush.msra.mxu3 %v6626_v56  ;;  %1527 = vmatpush.msrb.mxu1 %v6566_v18 }
 0x4a1   :  { %1558 = vmatpush.msrb.mxu2 %v6591_v31 }
 0x4a2   :  { %1585 = vmatpush.msrb.mxu3 %v6561_v15  ;;  %1529 = vmatpush.msrb.mxu1 %v6574_v21 }
 0x4a3   :  { %1288 = vmatmul.f32.vlgmr.msrb.gmra.mxu0 %v1287_v10  ;;  %1408 = vmatmul.f32.vlgmr.msra.gmra.mxu1 %v1283_v58 }
 0x4a4   :  { %1531 = vmatpush.msrb.mxu1 %v6579_v24  ;;  %1562 = vmatpush.msrb.mxu2 %v6602_v35 }
 0x4a5   :  { %1437 = vmatmul.f32.vlgmr.msra.gmra.mxu2 %v868_v19  ;;  %1587 = vmatpush.msrb.mxu3 %v6566_v18 }
 0x4a6   :  { %1496 = vmatpush.msrb.mxu0 %v6572_v20  ;;  %1566 = vmatpush.msrb.mxu2 %v6608_v39 }
 0x4a7   :  { %1478 = vmatmul.f32.vlgmr.msra.gmra.mxu3 %v6767_v40  ;;  %1686 = vmatpush.msra.mxu1 %v6496_v54 }
 0x4a8   :  { %1589 = vmatpush.msrb.mxu3 %v6574_v21  ;;  %1499 = vmatpush.msrb.mxu0 %v6577_v23 }
 0x4a9   :  { %1692 = vmatpush.msra.mxu1 %v6498_v55  ;;  %1724 = vmatpush.msra.mxu2 %v6475_v48 }
 0x4aa   :  { %1591 = vmatpush.msrb.mxu3 %v6579_v24  ;;  %1502 = vmatpush.msrb.mxu0 %v6586_v28 }
 0x4ab   :  { %1386 = vmatmul.f32.vlgmr.msra.gmra.mxu0 %v1283_v58  ;;  %1535 = vmatmul.f32.vlgmr.msrb.gmra.mxu1 %v6776_v52 }
 0x4ac   :  { %1505 = vmatpush.msrb.mxu0 %v6594_v32  ;;  %1698 = vmatpush.msra.mxu1 %v6536_v3 }
 0x4ad   :  { %1568 = vmatmul.f32.vlgmr.msrb.gmra.mxu2 %v6767_v40  ;;  %1753 = vmatpush.msra.mxu3 %v6470_v46 }
 0x4ae   :  { %1727 = vmatpush.msra.mxu2 %v6478_v49  ;;  %1704 = vmatpush.msra.mxu1 %v6542_v7 }
 0x4af   :  { %1593 = vmatmul.f32.vlgmr.msrb.gmra.mxu3 %v6767_v40  ;;  %1653 = vmatpush.msra.mxu0 %v6470_v46 }
 0x4b0   :  { %1730 = vmatpush.msra.mxu2 %v6512_v61  ;;  %1755 = vmatpush.msra.mxu3 %v6472_v47 }
 0x4b1   :  { %1813 = vmatpush.msrb.mxu1 %v6470_v46  ;;  %1655 = vmatpush.msra.mxu0 %v6472_v47 }
 0x4b2   :  { %1733 = vmatpush.msra.mxu2 %v6522_v0  ;;  %1757 = vmatpush.msra.mxu3 %v6506_v59 }
 0x4b3   :  { %1508 = vmatmul.f32.vlgmr.msrb.gmra.mxu0 %v6770_v25  ;;  %1815 = vmatpush.msrb.mxu1 %v6472_v47 }
 0x4b4   :  { %1759 = vmatpush.msra.mxu3 %v6514_v62  ;;  %1843 = vmatpush.msrb.mxu2 %v6700_v26 }
 0x4b5   :  { %1657 = vmatpush.msra.mxu0 %v6506_v59  ;;  %1817 = vmatpush.msrb.mxu1 %v6506_v59 }
 0x4b6   :  { %1845 = vmatpush.msrb.mxu2 %v6706_v5  ;;  %1876 = vmatpush.msrb.mxu3 %v6737_v29 }
 0x4b7   :  { %1659 = vmatpush.msra.mxu0 %v6514_v62  ;;  %1819 = vmatpush.msrb.mxu1 %v6514_v62 }
 0x4b8   :  { %1847 = vmatpush.msrb.mxu2 %v6718_v12  ;;  %1882 = vmatpush.msrb.mxu3 %v6749_v42 }
 0x4b9   :  { %1782 = vmatpush.msrb.mxu0 %v6483_v50 }
 0x4ba   :  { %1849 = vmatpush.msrb.mxu2 %v6732_v30  ;;  %1888 = vmatpush.msrb.mxu3 %v6757_v44 }
 0x4bb   :  { %1786 = vmatpush.msrb.mxu0 %v6486_v51 }
 0x4bc   :  { %1894 = vmatpush.msrb.mxu3 %v6762_v57 }
 0x4bd   :  { %1790 = vmatpush.msrb.mxu0 %v6519_v63 }
 0x4bf   :  { %1794 = vmatpush.msrb.mxu0 %v6531_v2 }
 0x500   :  { %v911_v25 = vpop.f32.mrf.mxu1 }
 0x508   :  { %v870_v40 = vpop.f32.mrf.mxu0  ;;  %v941_v17 = vpop.f32.mrf.mxu2 }
 0x509   :  { %v1026_v52 = vpop.f32.mrf.mxu1  ;;  %v871_v1 = vadd.f32 %v6680_v60, %v870_v40 }
 0x50a   :  { %v968_v19 = vpop.f32.mrf.mxu3 }
 0x50b   :  { %v912_v58 = vadd.f32 %v911_v25, %v871_v1 }
 0x50d   :  { %v942_v10 = vadd.f32 %v941_v17, %v912_v58 }
 0x50f   :  { %v969_v51 = vadd.f32 %v968_v19, %v942_v10 }
 0x510   :  { %v1001_v11 = vpop.f32.mrf.mxu0  ;;  %v1060_v36 = vpop.f32.mrf.mxu2 }
 0x511   :  { %v1158_v44 = vpop.f32.mrf.mxu1  ;;  %v1002_v2 = vadd.f32 %v1001_v11, %v969_v51  ;;  %v7641_v11 = vld [vmem:[#allocation15_spill] sm:$0xff] }
 0x512   :  { %v1101_v38 = vpop.f32.mrf.mxu3 }
 0x513   :  { %v1102_v50 = vadd.f32 %v1101_v38, %v1060_v36  ;;  %v1027_v47 = vadd.f32 %v1026_v52, %v1002_v2 }
 0x518   :  { %v1131_v57 = vpop.f32.mrf.mxu0  ;;  %v1191_v42 = vpop.f32.mrf.mxu2 }
 0x519   :  { %v1132_v63 = vadd.f32 %v1131_v57, %v1102_v50  ;;  %v1315_v0 = vpop.f32.mrf.mxu1 }
 0x51a   :  { %v1216_v29 = vpop.f32.mrf.mxu3 }
 0x51b   :  { %v1159_v62 = vadd.f32 %v1158_v44, %v1132_v63 }
 0x51d   :  { %v1192_v59 = vadd.f32 %v1191_v42, %v1159_v62 }
 0x51f   :  { %v1217_v61 = vadd.f32 %v1216_v29, %v1192_v59 }
 0x520   :  { %v1289_v7 = vpop.f32.mrf.mxu0  ;;  %v1339_v40 = vpop.f32.mrf.mxu2 }
 0x521   :  { %v1219_v25 = vadd.f32 %v1217_v61, %v1027_v47  ;;  %v1290_v17 = vadd.f32 %v6458_v14, %v1289_v7  ;;  %v1409_v19 = vpop.f32.mrf.mxu1 }
 0x522   :  { %v1363_v1 = vpop.f32.mrf.mxu3 }
 0x523   :  { %6269 = vtanh.f32 %v1219_v25  ;;  %v1316_v58 = vadd.f32 %v1315_v0, %v1290_v17 }
 0x525   :  { %v1340_v50 = vadd.f32 %v1339_v40, %v1316_v58  ;;  %v6220_v40 = vmul.f32 -1.442695, %v1219_v25 }
 0x527   :  { %v1364_v62 = vadd.f32 %v1363_v1, %v1340_v50 }
 0x528   :  { %v1387_v36 = vpop.f32.mrf.mxu0  ;;  %v1438_v10 = vpop.f32.mrf.mxu2 }
 0x529   :  { %v6270_v38 = vpop.eup %6269  ;;  %v1536_v29 = vpop.f32.mrf.mxu1  ;;  %v1388_v42 = vadd.f32 %v1387_v36, %v1364_v62 }
 0x52a   :  { %1246 = vrot.lane.b32.xlu0 %v6270_v38, %s6377_s14  ;;  %v1479_v51 = vpop.f32.mrf.mxu3 }
 0x52b   :  { %v1480_v63 = vadd.f32 %v1479_v51, %v1438_v10  ;;  %v1410_v14 = vadd.f32 %v1409_v19, %v1388_v42 }
 0x530   :  { %v1509_v2 = vpop.f32.mrf.mxu0  ;;  %v1569_v61 = vpop.f32.mrf.mxu2 }
 0x531   :  { %v1510_v59 = vadd.f32 %v1509_v2, %v1480_v63 }
 0x532   :  { %v1594_v57 = vpop.f32.mrf.mxu3 }
 0x533   :  { %v1537_v47 = vadd.f32 %v1536_v29, %v1510_v59 }
 0x535   :  { %v1570_v44 = vadd.f32 %v1569_v61, %v1537_v47 }
 0x537   :  { %v1595_v0 = vadd.f32 %v1594_v57, %v1570_v44 }
 0x539   :  { %v1597_v7 = vadd.f32 %v1595_v0, %v1410_v14 }
 0x53b   :  { %6271 = vtanh.f32 %v1597_v7  ;;  %v6222_v1 = vmul.f32 -1.442695, %v1597_v7 }
 0x53c   :  { %6273 = vpow2.f32 %v6220_v40 }
 0x53d   :  { %6275 = vpow2.f32 %v6222_v1 }
 0x541   :  { %v6272_v52 = vpop.eup %6271 }
 0x542   :  { %1620 = vrot.lane.b32.xlu2 %v6272_v52, %s6377_s14  ;;  %v6274_v17 = vpop.eup %6273 }
 0x543   :  { %v6276_v58 = vpop.eup %6275  ;;  %v1223_v36 = vadd.f32 1.0, %v6274_v17 }
 0x544   :  { %v1601_v38 = vadd.f32 1.0, %v6276_v58 }
 0x545   :  { %6277 = vrcp.f32 %v1223_v36  ;;  %vm1229_vm2 = vweird.f32 %v1223_v36  ;;  %v1235_v47 = vand.u32 2147483648, %v1223_v36  ;;  %v1233_v44 = vand.u32 2147483647, %v1223_v36 }
 0x546   :  { %6279 = vrcp.f32 %v1601_v38  ;;  %v1613_v42 = vand.u32 2147483648, %v1601_v38  ;;  %vm1607_vm3 = vweird.f32 %v1601_v38  ;;  %v1611_v61 = vand.u32 2147483647, %v1601_v38 }
 0x547   :  { %v1236_v7 = vor.u32 1.1754944e-38, %v1235_v47  ;;  %vm1234_vm8 = vcmp.eq.f32.partialorder %v1233_v44, 8.507059e+37 }
 0x548   :  { %v1614_v0 = vor.u32 1.1754944e-38, %v1613_v42  ;;  %vm1612_vm7 = vcmp.eq.f32.partialorder %v1611_v61, 8.507059e+37 }
 0x54a   :  { %1241 = vrot.lane.b32.xlu2 %v7641_v11, %s6378_s15 }
 0x54b   :  { %v6278_v19 = vpop.eup %6277 }
 0x54c   :  { %v6280_v10 = vpop.eup %6279  ;;  %v1225_v51 = vmul.f32 %v6278_v19, %v1223_v36  ;;  %vm1230_vm15 = vweird.f32 %v6278_v19  ;;  %v7642_v36 = vld [vmem:[#allocation16_spill] sm:$0xff] }
 0x54d   :  { %v1603_v50 = vmul.f32 %v6280_v10, %v1601_v38  ;;  %vm1608_vm0 = vweird.f32 %v6280_v10  ;;  %vm1231_vm4 = vmor %vm1229_vm2, %vm1230_vm15 }
 0x54e   :  { %v1226_v63 = vsub.f32 1.0, %v1225_v51  ;;  %vm1609_vm5 = vmor %vm1607_vm3, %vm1608_vm0 }
 0x54f   :  { %v1604_v62 = vsub.f32 1.0, %v1603_v50 }
 0x550   :  { %v1227_v59 = vmul.f32 %v6278_v19, %v1226_v63 }
 0x551   :  { %v1605_v2 = vmul.f32 %v6280_v10, %v1604_v62 }
 0x552   :  { %v1228_v25 = vadd.f32 %v6278_v19, %v1227_v59 }
 0x553   :  { %v1606_v29 = vadd.f32 %v6280_v10, %v1605_v2 }
 0x554   :  { %v1232_v14 = vsel %vm1231_vm4, %v6278_v19, %v1228_v25 }
 0x555   :  { %v1610_v57 = vsel %vm1609_vm5, %v6280_v10, %v1606_v29  ;;  %v1237_v1 = vsel %vm1234_vm8, %v1236_v7, %v1232_v14 }
 0x556   :  { %v1615_v11 = vsel %vm1612_vm7, %v1614_v0, %v1610_v57 }
 0x557   :  { %v1618_v51 = vmul.f32 %v1615_v11, %v7642_v36  ;;  %v6224_v36 = vld [vmem:[%s7559_s0 + $0x18] sm:$0xff] }
 0x59c   :  { %v1621_v52 = vpop.permute.xlu2 %1620  ;;  %v1247_v40 = vpop.permute.xlu0 %1246 }
 0x59d   :  { %v1623_v17 = vmul.f32 %v1621_v52, %v1615_v11  ;;  %v1249_v58 = vmul.f32 %v1247_v40, %v1237_v1 }
 0x59f   :  { %1625 = vrot.lane.b32.xlu1 %v1623_v17, %s6378_s15  ;;  %1251 = vrot.lane.b32.xlu0 %v1249_v58, %s6378_s15 }
 0x5a4   :  { %v1242_v38 = vpop.permute.xlu2 %1241 }
 0x5a5   :  { %v1244_v50 = vmul.f32 %v1242_v38, %v1237_v1 }
 0x611   :  { %v1626_v10 = vpop.permute.xlu1 %1625  ;;  %v1252_v19 = vpop.permute.xlu0 %1251 }
 0x612   :  { %v6878_v62 = vadd.f32 %v1626_v10, %v1618_v51  ;;  %v6880_v63 = vadd.f32 %v1252_v19, %v1244_v50  ;;  %v2056_v10 = vsel %vm54_vm1, %v6224_v36, 0 }
 0x613   :  { %v2075_v19 = vand.u32 4294901760, %v2056_v10 }
 0x614   :  { %6281 = vtanh.f32 %v6878_v62 }
 0x615   :  { %6283 = vtanh.f32 %v6880_v63 }
 0x61a   :  { %v6282_v2 = vpop.eup %6281 }
 0x61b   :  { %v6284_v59 = vpop.eup %6283  ;;  %1631 = vrot.lane.b32.xlu1 %v6282_v2, %s6377_s14  ;;  %v2076_v2 = vsub.f32 %v2056_v10, %v2075_v19 }
 0x61c   :  { %1257 = vrot.lane.b32.xlu2 %v6284_v59, %s6377_s14 }
 0x61d   :  { %v2077_v59 = vand.u32 4294901760, %v2076_v2 }
 0x676   :  { %v1258_v29 = vpop.permute.xlu2 %1257 }
 0x677   :  { %v1260_v25 = vmul.f32 %v1258_v29, %v1237_v1  ;;  %v7643_v1 = vld [vmem:[#allocation17_spill] sm:$0xff]  ;;  %v2078_v29 = vsub.f32 %v2076_v2, %v2077_v59 }
 0x679   :  { %1826 = vrot.lane.b32.xlu1 %v1260_v25, %s6378_s15  ;;  %v2079_v25 = vand.u32 4294901760, %v2078_v29 }
 0x68d   :  { %v1632_v42 = vpop.permute.xlu1 %1631 }
 0x68e   :  { %v1634_v47 = vmul.f32 %v1632_v42, %v1615_v11  ;;  %v7644_v42 = vld [vmem:[#allocation14_spill] sm:$0xff] }
 0x690   :  { %1636 = vrot.lane.b32.xlu0 %v1634_v47, %s6378_s15  ;;  %v7645_v47 = vld [vmem:[#allocation8_spill] sm:$0xff] }
 0x6eb   :  { %v1827_v61 = vpop.permute.xlu1 %1826 }
 0x6ec   :  { %v1828_v44 = vsel %vm242_vm6, %v1827_v61, 0  ;;  %v7646_v61 = vld [vmem:[#allocation3_spill] sm:$0xff] }
 0x6ed   :  { %v1850_v57 = vand.u32 4294901760, %v1828_v44 }
 0x6ef   :  { %v1851_v14 = vsub.f32 %v1828_v44, %v1850_v57  ;;  %v7647_v44 = vld [vmem:[#allocation11_spill] sm:$0xff] }
 0x6f1   :  { %v1852_v40 = vand.u32 4294901760, %v1851_v14 }
 0x6f3   :  { %v1853_v58 = vsub.f32 %v1851_v14, %v1852_v40 }
 0x6f5   :  { %v1854_v51 = vand.u32 4294901760, %v1853_v58  ;;  %v7656_v58 = vld [vmem:[#allocation10_spill] sm:$0xff] }
 0x702   :  { %v1637_v0 = vpop.permute.xlu0 %1636 }
 0x703   :  { %v1638_v7 = vsel %vm242_vm6, %v1637_v0, 0  ;;  %v7650_v0 = vld [vmem:[#allocation18_spill] sm:$0xff] }
 0x704   :  { %v6890_v52 = vand.u32 4294901760, %v1638_v7 }
 0x706   :  { %v6893_v17 = vsub.f32 %v1638_v7, %v6890_v52  ;;  %1706 = vmatmul.f32.vlgmr.msra.gmra.mxu1 %v6890_v52  ;;  %v7651_v7 = vld [vmem:[#allocation19_spill] sm:$0xff] }
 0x707   :  { %1943 = vmatpush.msra.mxu1 %v6700_v26 }
 0x708   :  { %1736 = vmatmul.f32.vlgmr.msra.gmra.mxu2 %v6893_v17  ;;  %v6899_v11 = vand.u32 4294901760, %v6893_v17 }
 0x709   :  { %1945 = vmatpush.msra.mxu1 %v6706_v5  ;;  %1972 = vmatpush.msra.mxu2 %v7643_v1 }
 0x70a   :  { %1763 = vmatmul.f32.vlgmr.msra.gmra.mxu3 %v6899_v11  ;;  %v1663_v38 = vsub.f32 %v6893_v17, %v6899_v11 }
 0x70b   :  { %1947 = vmatpush.msra.mxu1 %v6718_v12  ;;  %1976 = vmatpush.msra.mxu2 %v6730_v22 }
 0x70c   :  { %v1664_v50 = vand.u32 4294901760, %v1663_v38  ;;  %2003 = vmatpush.msra.mxu3 %v6700_v26  ;;  %v7657_v38 = vld [vmem:[#allocation12_spill] sm:$0xff] }
 0x70d   :  { %1949 = vmatpush.msra.mxu1 %v6732_v30  ;;  %1980 = vmatpush.msra.mxu2 %v6743_v37 }
 0x70e   :  { %1665 = vmatmul.f32.vlgmr.msra.gmra.mxu0 %v1664_v50  ;;  %1821 = vmatmul.f32.vlgmr.msrb.gmra.mxu1 %v6890_v52 }
 0x70f   :  { %2005 = vmatpush.msra.mxu3 %v6706_v5  ;;  %1914 = vmatpush.msra.mxu0 %v6709_v8 }
 0x710   :  { %1855 = vmatmul.f32.vlgmr.msrb.gmra.mxu2 %v1854_v51  ;;  %2104 = vmatpush.msrb.mxu1 %v6451_v13 }
 0x711   :  { %1984 = vmatpush.msra.mxu2 %v6754_v43  ;;  %2007 = vmatpush.msra.mxu3 %v6718_v12 }
 0x712   :  { %1896 = vmatmul.f32.vlgmr.msrb.gmra.mxu3 %v1850_v57  ;;  %1917 = vmatpush.msra.mxu0 %v6721_v16 }
 0x713   :  { %2009 = vmatpush.msra.mxu3 %v6732_v30  ;;  %2127 = vmatpush.msrb.mxu2 %v6440_v6 }
 0x714   :  { %1920 = vmatpush.msra.mxu0 %v6735_v34 }
 0x715   :  { %2150 = vmatpush.msrb.mxu3 %v6437_v4 }
 0x716   :  { %1796 = vmatmul.f32.vlgmr.msrb.gmra.mxu0 %v6890_v52  ;;  %1953 = vmatmul.f32.vlgmr.msra.gmra.mxu1 %v1852_v40  ;;  %v7653_v40 = vld [vmem:[#allocation20_spill] sm:$0xff] }
 0x717   :  { %1923 = vmatpush.msra.mxu0 %v6746_v33  ;;  %2198 = vmatpush.msra.mxu1 %v6437_v4 }
 0x718   :  { %1986 = vmatmul.f32.vlgmr.msra.gmra.mxu2 %v1850_v57 }
 0x719   :  { %2074 = vmatpush.msrb.mxu0 %v6437_v4  ;;  %2217 = vmatpush.msra.mxu2 %v6561_v15 }
 0x71a   :  { %2011 = vmatmul.f32.vlgmr.msra.gmra.mxu3 %v1850_v57  ;;  %v7648_v57 = vld [vmem:[#allocation7_spill] sm:$0xff] }
 0x71b   :  { %2219 = vmatpush.msra.mxu2 %v6566_v18  ;;  %2250 = vmatpush.msra.mxu3 %v6610_v41 }
 0x71d   :  { %2221 = vmatpush.msra.mxu2 %v6574_v21  ;;  %2256 = vmatpush.msra.mxu3 %v6615_v45 }
 0x71e   :  { %1926 = vmatmul.f32.vlgmr.msra.gmra.mxu0 %v1851_v14  ;;  %2106 = vmatmul.f32.vlgmr.msrb.gmra.mxu1 %v2075_v19  ;;  %v7649_v14 = vld [vmem:[#allocation9_spill] sm:$0xff] }
 0x71f   :  { %2176 = vmatpush.msra.mxu0 %v6446_v9  ;;  %2223 = vmatpush.msra.mxu2 %v6579_v24 }
 0x720   :  { %2130 = vmatmul.f32.vlgmr.msrb.gmra.mxu2 %v2076_v2  ;;  %2262 = vmatpush.msra.mxu3 %v6622_v53 }
 0x721   :  { %2317 = vmatpush.msrb.mxu1 %v6561_v15  ;;  %2346 = vmatpush.msrb.mxu2 %v6583_v27 }
 0x722   :  { %2154 = vmatmul.f32.vlgmr.msrb.gmra.mxu3 %v2077_v59 }
 0x723   :  { %2268 = vmatpush.msra.mxu3 %v6626_v56  ;;  %2319 = vmatpush.msrb.mxu1 %v6566_v18 }
 0x724   :  { %2350 = vmatpush.msrb.mxu2 %v6591_v31 }
 0x725   :  { %2377 = vmatpush.msrb.mxu3 %v6561_v15  ;;  %2321 = vmatpush.msrb.mxu1 %v6574_v21 }
 0x726   :  { %2080 = vmatmul.f32.vlgmr.msrb.gmra.mxu0 %v2079_v25  ;;  %2200 = vmatmul.f32.vlgmr.msra.gmra.mxu1 %v2075_v19 }
 0x727   :  { %2323 = vmatpush.msrb.mxu1 %v6579_v24  ;;  %2354 = vmatpush.msrb.mxu2 %v6602_v35 }
 0x728   :  { %2229 = vmatmul.f32.vlgmr.msra.gmra.mxu2 %v1664_v50  ;;  %2379 = vmatpush.msrb.mxu3 %v6566_v18 }
 0x729   :  { %2288 = vmatpush.msrb.mxu0 %v6572_v20  ;;  %2358 = vmatpush.msrb.mxu2 %v6608_v39 }
 0x72a   :  { %2270 = vmatmul.f32.vlgmr.msra.gmra.mxu3 %v6890_v52  ;;  %2478 = vmatpush.msra.mxu1 %v6496_v54 }
 0x72b   :  { %2381 = vmatpush.msrb.mxu3 %v6574_v21  ;;  %2291 = vmatpush.msrb.mxu0 %v6577_v23 }
 0x72c   :  { %2484 = vmatpush.msra.mxu1 %v6498_v55  ;;  %2516 = vmatpush.msra.mxu2 %v6475_v48 }
 0x72d   :  { %2383 = vmatpush.msrb.mxu3 %v6579_v24  ;;  %2294 = vmatpush.msrb.mxu0 %v6586_v28 }
 0x72e   :  { %2178 = vmatmul.f32.vlgmr.msra.gmra.mxu0 %v2075_v19  ;;  %2327 = vmatmul.f32.vlgmr.msrb.gmra.mxu1 %v6899_v11  ;;  %v7655_v11 = vld [vmem:[#allocation21_spill] sm:$0xff] }
 0x72f   :  { %2297 = vmatpush.msrb.mxu0 %v6594_v32  ;;  %2490 = vmatpush.msra.mxu1 %v6536_v3 }
 0x730   :  { %2360 = vmatmul.f32.vlgmr.msrb.gmra.mxu2 %v6890_v52  ;;  %2545 = vmatpush.msra.mxu3 %v6470_v46 }
 0x731   :  { %2519 = vmatpush.msra.mxu2 %v6478_v49  ;;  %2496 = vmatpush.msra.mxu1 %v7644_v42 }
 0x732   :  { %2385 = vmatmul.f32.vlgmr.msrb.gmra.mxu3 %v6890_v52  ;;  %2445 = vmatpush.msra.mxu0 %v6470_v46  ;;  %v7652_v52 = vld [vmem:[#allocation5_spill] sm:$0xff] }
 0x733   :  { %2522 = vmatpush.msra.mxu2 %v7645_v47  ;;  %2547 = vmatpush.msra.mxu3 %v7646_v61 }
 0x734   :  { %2605 = vmatpush.msrb.mxu1 %v6470_v46  ;;  %2447 = vmatpush.msra.mxu0 %v7646_v61 }
 0x735   :  { %2525 = vmatpush.msra.mxu2 %v7647_v44  ;;  %2549 = vmatpush.msra.mxu3 %v7648_v57 }
 0x736   :  { %2300 = vmatmul.f32.vlgmr.msrb.gmra.mxu0 %v6893_v17  ;;  %2607 = vmatpush.msrb.mxu1 %v7646_v61  ;;  %v7654_v17 = vld [vmem:[#allocation6_spill] sm:$0xff] }
 0x737   :  { %2551 = vmatpush.msra.mxu3 %v7649_v14  ;;  %2635 = vmatpush.msrb.mxu2 %v6700_v26 }
 0x738   :  { %2449 = vmatpush.msra.mxu0 %v7648_v57  ;;  %2609 = vmatpush.msrb.mxu1 %v7648_v57 }
 0x739   :  { %2637 = vmatpush.msrb.mxu2 %v6706_v5  ;;  %2668 = vmatpush.msrb.mxu3 %v7650_v0 }
 0x73a   :  { %2451 = vmatpush.msra.mxu0 %v7649_v14  ;;  %2611 = vmatpush.msrb.mxu1 %v7649_v14 }
 0x73b   :  { %2639 = vmatpush.msrb.mxu2 %v6718_v12  ;;  %2674 = vmatpush.msrb.mxu3 %v7651_v7 }
 0x73c   :  { %2574 = vmatpush.msrb.mxu0 %v7652_v52 }
 0x73d   :  { %2641 = vmatpush.msrb.mxu2 %v6732_v30  ;;  %2680 = vmatpush.msrb.mxu3 %v7653_v40 }
 0x73e   :  { %2578 = vmatpush.msrb.mxu0 %v7654_v17 }
 0x73f   :  { %2686 = vmatpush.msrb.mxu3 %v7655_v11 }
 0x740   :  { %2582 = vmatpush.msrb.mxu0 %v7656_v58 }
 0x742   :  { %2586 = vmatpush.msrb.mxu0 %v7657_v38 }
 0x783   :  { %v1707_v50 = vpop.f32.mrf.mxu1 }
 0x78b   :  { %v1666_v36 = vpop.f32.mrf.mxu0  ;;  %v1737_v51 = vpop.f32.mrf.mxu2 }
 0x78c   :  { %v1822_v10 = vpop.f32.mrf.mxu1  ;;  %v1667_v2 = vadd.f32 %v6680_v60, %v1666_v36 }
 0x78d   :  { %v1764_v19 = vpop.f32.mrf.mxu3 }
 0x78e   :  { %v1708_v59 = vadd.f32 %v1707_v50, %v1667_v2 }
 0x790   :  { %v1738_v40 = vadd.f32 %v1737_v51, %v1708_v59 }
 0x792   :  { %v1765_v17 = vadd.f32 %v1764_v19, %v1738_v40  ;;  %v6996_v40 = vld [vmem:[%s7560_s2] ss:$0 sm:$0xff] }
 0x793   :  { %v1797_v29 = vpop.f32.mrf.mxu0  ;;  %v1856_v25 = vpop.f32.mrf.mxu2 }
 0x794   :  { %v1954_v7 = vpop.f32.mrf.mxu1  ;;  %v1798_v38 = vadd.f32 %v1797_v29, %v1765_v17 }
 0x795   :  { %v1897_v52 = vpop.f32.mrf.mxu3 }
 0x796   :  { %v1898_v0 = vadd.f32 %v1897_v52, %v1856_v25  ;;  %v1823_v42 = vadd.f32 %v1822_v10, %v1798_v38 }
 0x79b   :  { %v1927_v11 = vpop.f32.mrf.mxu0  ;;  %v1987_v14 = vpop.f32.mrf.mxu2 }
 0x79c   :  { %v1928_v58 = vadd.f32 %v1927_v11, %v1898_v0  ;;  %v2107_v47 = vpop.f32.mrf.mxu1 }
 0x79d   :  { %v2012_v57 = vpop.f32.mrf.mxu3 }
 0x79e   :  { %v1955_v44 = vadd.f32 %v1954_v7, %v1928_v58 }
 0x7a0   :  { %v1988_v61 = vadd.f32 %v1987_v14, %v1955_v44 }
 0x7a2   :  { %v2013_v49 = vadd.f32 %v2012_v57, %v1988_v61 }
 0x7a3   :  { %v2081_v46 = vpop.f32.mrf.mxu0  ;;  %v2131_v60 = vpop.f32.mrf.mxu2 }
 0x7a4   :  { %v2015_v50 = vadd.f32 %v2013_v49, %v1823_v42  ;;  %v2082_v52 = vadd.f32 %v6996_v40, %v2081_v46  ;;  %v2201_v11 = vpop.f32.mrf.mxu1 }
 0x7a5   :  { %v2155_v36 = vpop.f32.mrf.mxu3 }
 0x7a6   :  { %6285 = vtanh.f32 %v2015_v50  ;;  %v2108_v0 = vadd.f32 %v2107_v47, %v2082_v52  ;;  %v6223_v52 = vmul.f32 -1.442695, %v2015_v50 }
 0x7a8   :  { %v2132_v61 = vadd.f32 %v2131_v60, %v2108_v0 }
 0x7aa   :  { %v2156_v14 = vadd.f32 %v2155_v36, %v2132_v61 }
 0x7ab   :  { %v2179_v17 = vpop.f32.mrf.mxu0  ;;  %v2230_v44 = vpop.f32.mrf.mxu2 }
 0x7ac   :  { %v6286_v7 = vpop.eup %6285  ;;  %v2328_v38 = vpop.f32.mrf.mxu1  ;;  %v2180_v51 = vadd.f32 %v2179_v17, %v2156_v14 }
 0x7ad   :  { %2038 = vrot.lane.b32.xlu0 %v6286_v7, %s6377_s14  ;;  %v2271_v57 = vpop.f32.mrf.mxu3 }
 0x7ae   :  { %v2272_v49 = vadd.f32 %v2271_v57, %v2230_v44  ;;  %v2202_v46 = vadd.f32 %v2201_v11, %v2180_v51 }
 0x7b3   :  { %v2301_v42 = vpop.f32.mrf.mxu0  ;;  %v2361_v19 = vpop.f32.mrf.mxu2 }
 0x7b4   :  { %v2302_v58 = vadd.f32 %v2301_v42, %v2272_v49 }
 0x7b5   :  { %v2386_v59 = vpop.f32.mrf.mxu3 }
 0x7b6   :  { %v2329_v10 = vadd.f32 %v2328_v38, %v2302_v58 }
 0x7b8   :  { %v2362_v2 = vadd.f32 %v2361_v19, %v2329_v10 }
 0x7ba   :  { %v2387_v47 = vadd.f32 %v2386_v59, %v2362_v2 }
 0x7bc   :  { %v2389_v29 = vadd.f32 %v2387_v47, %v2202_v46 }
 0x7be   :  { %6287 = vtanh.f32 %v2389_v29  ;;  %v6225_v60 = vmul.f32 -1.442695, %v2389_v29 }
 0x7bf   :  { %6289 = vpow2.f32 %v6223_v52 }
 0x7c0   :  { %6291 = vpow2.f32 %v6225_v60 }
 0x7c4   :  { %v6288_v25 = vpop.eup %6287 }
 0x7c5   :  { %2412 = vrot.lane.b32.xlu2 %v6288_v25, %s6377_s14  ;;  %v6290_v36 = vpop.eup %6289 }
 0x7c6   :  { %v6292_v0 = vpop.eup %6291  ;;  %v2019_v7 = vadd.f32 1.0, %v6290_v36 }
 0x7c7   :  { %v2393_v44 = vadd.f32 1.0, %v6292_v0 }
 0x7c8   :  { %6293 = vrcp.f32 %v2019_v7  ;;  %vm2025_vm11 = vweird.f32 %v2019_v7  ;;  %v2031_v10 = vand.u32 2147483648, %v2019_v7  ;;  %v2029_v2 = vand.u32 2147483647, %v2019_v7 }
 0x7c9   :  { %6295 = vrcp.f32 %v2393_v44  ;;  %v2405_v51 = vand.u32 2147483648, %v2393_v44  ;;  %vm2399_vm12 = vweird.f32 %v2393_v44  ;;  %v2403_v19 = vand.u32 2147483647, %v2393_v44 }
 0x7ca   :  { %v2032_v29 = vor.u32 1.1754944e-38, %v2031_v10  ;;  %vm2030_vm0 = vcmp.eq.f32.partialorder %v2029_v2, 8.507059e+37 }
 0x7cb   :  { %v2406_v47 = vor.u32 1.1754944e-38, %v2405_v51  ;;  %vm2404_vm15 = vcmp.eq.f32.partialorder %v2403_v19, 8.507059e+37 }
 0x7ce   :  { %v6294_v17 = vpop.eup %6293 }
 0x7cf   :  { %v6296_v61 = vpop.eup %6295  ;;  %v2021_v11 = vmul.f32 %v6294_v17, %v2019_v7  ;;  %vm2026_vm9 = vweird.f32 %v6294_v17 }
 0x7d0   :  { %v2395_v57 = vmul.f32 %v6296_v61, %v2393_v44  ;;  %vm2400_vm10 = vweird.f32 %v6296_v61  ;;  %vm2027_vm13 = vmor %vm2025_vm11, %vm2026_vm9 }
 0x7d1   :  { %v2022_v49 = vsub.f32 1.0, %v2021_v11  ;;  %vm2401_vm14 = vmor %vm2399_vm12, %vm2400_vm10 }
 0x7d2   :  { %v2396_v14 = vsub.f32 1.0, %v2395_v57 }
 0x7d3   :  { %v2023_v58 = vmul.f32 %v6294_v17, %v2022_v49 }
 0x7d4   :  { %v2397_v42 = vmul.f32 %v6296_v61, %v2396_v14 }
 0x7d5   :  { %v2024_v50 = vadd.f32 %v6294_v17, %v2023_v58 }
 0x7d6   :  { %v2398_v38 = vadd.f32 %v6296_v61, %v2397_v42 }
 0x7d7   :  { %v2028_v46 = vsel %vm2027_vm13, %v6294_v17, %v2024_v50 }
 0x7d8   :  { %v2402_v59 = vsel %vm2401_vm14, %v6296_v61, %v2398_v38  ;;  %v2033_v36 = vsel %vm2030_vm0, %v2032_v29, %v2028_v46 }
 0x7d9   :  { %v2407_v52 = vsel %vm2404_vm15, %v2406_v47, %v2402_v59  ;;  %v2036_v44 = vmul.f32 %v2033_v36, %v6880_v63 }
 0x7da   :  { %v2410_v61 = vmul.f32 %v2407_v52, %v6878_v62 }
 0x81f   :  { %v2413_v25 = vpop.permute.xlu2 %2412  ;;  %v2039_v60 = vpop.permute.xlu0 %2038 }
 0x820   :  { %v2415_v0 = vmul.f32 %v2413_v25, %v2407_v52  ;;  %v2041_v57 = vmul.f32 %v2039_v60, %v2033_v36 }
 0x822   :  { %2417 = vrot.lane.b32.xlu1 %v2415_v0, %s6378_s15  ;;  %2043 = vrot.lane.b32.xlu2 %v2041_v57, %s6378_s15  ;;  %v6227_v0 = vld [vmem:[%s7559_s0 + $0x20] sm:$0xff] }
 0x87c   :  { %v2044_v7 = vpop.permute.xlu2 %2043 }
 0x87d   :  { %v7004_v11 = vadd.f32 %v2044_v7, %v2036_v44  ;;  %v2848_v44 = vsel %vm54_vm1, %v6227_v0, 0 }
 0x87e   :  { %v2867_v7 = vand.u32 4294901760, %v2848_v44 }
 0x87f   :  { %6297 = vtanh.f32 %v7004_v11 }
 0x885   :  { %v6298_v17 = vpop.eup %6297 }
 0x886   :  { %2049 = vrot.lane.b32.xlu1 %v6298_v17, %s6377_s14  ;;  %v2868_v17 = vsub.f32 %v2848_v44, %v2867_v7 }
 0x894   :  { %v2418_v14 = vpop.permute.xlu1 %2417 }
 0x895   :  { %v7009_v49 = vadd.f32 %v2418_v14, %v2410_v61  ;;  %v2869_v61 = vand.u32 4294901760, %v2868_v17 }
 0x897   :  { %6299 = vtanh.f32 %v7009_v49  ;;  %v2870_v14 = vsub.f32 %v2868_v17, %v2869_v61 }
 0x89d   :  { %v6300_v42 = vpop.eup %6299 }
 0x89e   :  { %2423 = vrot.lane.b32.xlu0 %v6300_v42, %s6377_s14  ;;  %v2871_v42 = vand.u32 4294901760, %v2870_v14 }
 0x8f8   :  { %v2050_v58 = vpop.permute.xlu1 %2049 }
 0x8f9   :  { %v2052_v63 = vmul.f32 %v2050_v58, %v2033_v36  ;;  %v7658_v58 = vld [vmem:[#allocation2_spill] sm:$0xff] }
 0x8fb   :  { %2618 = vrot.lane.b32.xlu0 %v2052_v63, %s6378_s15  ;;  %v7659_v63 = vld [vmem:[#allocation4_spill] sm:$0xff] }
 0x910   :  { %v2424_v38 = vpop.permute.xlu0 %2423 }
 0x911   :  { %v2426_v50 = vmul.f32 %v2424_v38, %v2407_v52  ;;  %v7660_v38 = vld [vmem:[#allocation14_spill] sm:$0xff] }
 0x913   :  { %2428 = vrot.lane.b32.xlu2 %v2426_v50, %s6378_s15  ;;  %v7661_v50 = vld [vmem:[#allocation8_spill] sm:$0xff] }
 0x96d   :  { %v2429_v51 = vpop.permute.xlu2 %2428  ;;  %v2619_v10 = vpop.permute.xlu0 %2618 }
 0x96e   :  { %v2430_v62 = vsel %vm242_vm6, %v2429_v51, 0  ;;  %v2620_v19 = vsel %vm242_vm6, %v2619_v10, 0  ;;  %v7662_v51 = vld [vmem:[#allocation3_spill] sm:$0xff] }
 0x96f   :  { %v7017_v2 = vand.u32 4294901760, %v2430_v62  ;;  %v2642_v59 = vand.u32 4294901760, %v2620_v19  ;;  %v7663_v10 = vld [vmem:[#allocation11_spill] sm:$0xff] }
 0x971   :  { %v7020_v46 = vsub.f32 %v2430_v62, %v7017_v2  ;;  %v2643_v47 = vsub.f32 %v2620_v19, %v2642_v59  ;;  %2498 = vmatmul.f32.vlgmr.msra.gmra.mxu1 %v7017_v2  ;;  %v7664_v62 = vld [vmem:[#allocation7_spill] sm:$0xff]  ;;  %v7665_v19 = vld [vmem:[#allocation9_spill] sm:$0xff] }
 0x972   :  { %2735 = vmatpush.msra.mxu1 %v6700_v26 }
 0x973   :  { %v2644_v29 = vand.u32 4294901760, %v2643_v47  ;;  %2528 = vmatmul.f32.vlgmr.msra.gmra.mxu2 %v7020_v46  ;;  %v7026_v25 = vand.u32 4294901760, %v7020_v46 }
 0x974   :  { %2737 = vmatpush.msra.mxu1 %v6706_v5  ;;  %2764 = vmatpush.msra.mxu2 %v7643_v1 }
 0x975   :  { %v2645_v52 = vsub.f32 %v2643_v47, %v2644_v29  ;;  %2555 = vmatmul.f32.vlgmr.msra.gmra.mxu3 %v7026_v25  ;;  %v2455_v60 = vsub.f32 %v7020_v46, %v7026_v25 }
 0x976   :  { %2739 = vmatpush.msra.mxu1 %v6718_v12  ;;  %2768 = vmatpush.msra.mxu2 %v6730_v22 }
 0x977   :  { %v2456_v36 = vand.u32 4294901760, %v2455_v60  ;;  %2795 = vmatpush.msra.mxu3 %v6700_v26  ;;  %v2646_v57 = vand.u32 4294901760, %v2645_v52  ;;  %v7672_v52 = vld [vmem:[#allocation10_spill] sm:$0xff]  ;;  %v7673_v60 = vld [vmem:[#allocation12_spill] sm:$0xff] }
 0x978   :  { %2741 = vmatpush.msra.mxu1 %v6732_v30  ;;  %2772 = vmatpush.msra.mxu2 %v6743_v37 }
 0x979   :  { %2457 = vmatmul.f32.vlgmr.msra.gmra.mxu0 %v2456_v36  ;;  %2613 = vmatmul.f32.vlgmr.msrb.gmra.mxu1 %v7017_v2 }
 0x97a   :  { %2797 = vmatpush.msra.mxu3 %v6706_v5  ;;  %2706 = vmatpush.msra.mxu0 %v6709_v8 }
 0x97b   :  { %2647 = vmatmul.f32.vlgmr.msrb.gmra.mxu2 %v2646_v57  ;;  %2896 = vmatpush.msrb.mxu1 %v6451_v13 }
 0x97c   :  { %2776 = vmatpush.msra.mxu2 %v6754_v43  ;;  %2799 = vmatpush.msra.mxu3 %v6718_v12 }
 0x97d   :  { %2688 = vmatmul.f32.vlgmr.msrb.gmra.mxu3 %v2642_v59  ;;  %2709 = vmatpush.msra.mxu0 %v6721_v16 }
 0x97e   :  { %2801 = vmatpush.msra.mxu3 %v6732_v30  ;;  %2919 = vmatpush.msrb.mxu2 %v6440_v6 }
 0x97f   :  { %2712 = vmatpush.msra.mxu0 %v6735_v34 }
 0x980   :  { %2942 = vmatpush.msrb.mxu3 %v6437_v4 }
 0x981   :  { %2588 = vmatmul.f32.vlgmr.msrb.gmra.mxu0 %v7017_v2  ;;  %2745 = vmatmul.f32.vlgmr.msra.gmra.mxu1 %v2644_v29  ;;  %v7670_v29 = vld [vmem:[#allocation6_spill] sm:$0xff] }
 0x982   :  { %2715 = vmatpush.msra.mxu0 %v6746_v33  ;;  %2990 = vmatpush.msra.mxu1 %v6437_v4 }
 0x983   :  { %2778 = vmatmul.f32.vlgmr.msra.gmra.mxu2 %v2642_v59 }
 0x984   :  { %2866 = vmatpush.msrb.mxu0 %v6437_v4  ;;  %3009 = vmatpush.msra.mxu2 %v6561_v15 }
 0x985   :  { %2803 = vmatmul.f32.vlgmr.msra.gmra.mxu3 %v2642_v59  ;;  %v7667_v59 = vld [vmem:[#allocation19_spill] sm:$0xff] }
 0x986   :  { %3011 = vmatpush.msra.mxu2 %v6566_v18  ;;  %3042 = vmatpush.msra.mxu3 %v6610_v41 }
 0x988   :  { %3013 = vmatpush.msra.mxu2 %v6574_v21  ;;  %3048 = vmatpush.msra.mxu3 %v6615_v45 }
 0x989   :  { %2718 = vmatmul.f32.vlgmr.msra.gmra.mxu0 %v2643_v47  ;;  %2898 = vmatmul.f32.vlgmr.msrb.gmra.mxu1 %v2867_v7  ;;  %v7669_v47 = vld [vmem:[#allocation20_spill] sm:$0xff] }
 0x98a   :  { %2968 = vmatpush.msra.mxu0 %v6446_v9  ;;  %3015 = vmatpush.msra.mxu2 %v6579_v24 }
 0x98b   :  { %2922 = vmatmul.f32.vlgmr.msrb.gmra.mxu2 %v2868_v17  ;;  %3054 = vmatpush.msra.mxu3 %v6622_v53  ;;  %v7122_v17 = vld [vmem:[%s7563_s6] ss:$0 sm:$0xff] }
 0x98c   :  { %3109 = vmatpush.msrb.mxu1 %v6561_v15  ;;  %3138 = vmatpush.msrb.mxu2 %v6583_v27 }
 0x98d   :  { %2946 = vmatmul.f32.vlgmr.msrb.gmra.mxu3 %v2869_v61 }
 0x98e   :  { %3060 = vmatpush.msra.mxu3 %v6626_v56  ;;  %3111 = vmatpush.msrb.mxu1 %v6566_v18 }
 0x98f   :  { %3142 = vmatpush.msrb.mxu2 %v6591_v31 }
 0x990   :  { %3169 = vmatpush.msrb.mxu3 %v6561_v15  ;;  %3113 = vmatpush.msrb.mxu1 %v6574_v21 }
 0x991   :  { %2872 = vmatmul.f32.vlgmr.msrb.gmra.mxu0 %v2871_v42  ;;  %2992 = vmatmul.f32.vlgmr.msra.gmra.mxu1 %v2867_v7 }
 0x992   :  { %3115 = vmatpush.msrb.mxu1 %v6579_v24  ;;  %3146 = vmatpush.msrb.mxu2 %v6602_v35 }
 0x993   :  { %3021 = vmatmul.f32.vlgmr.msra.gmra.mxu2 %v2456_v36  ;;  %3171 = vmatpush.msrb.mxu3 %v6566_v18 }
 0x994   :  { %3080 = vmatpush.msrb.mxu0 %v6572_v20  ;;  %3150 = vmatpush.msrb.mxu2 %v6608_v39 }
 0x995   :  { %3062 = vmatmul.f32.vlgmr.msra.gmra.mxu3 %v7017_v2  ;;  %3270 = vmatpush.msra.mxu1 %v6496_v54 }
 0x996   :  { %3173 = vmatpush.msrb.mxu3 %v6574_v21  ;;  %3083 = vmatpush.msrb.mxu0 %v6577_v23 }
 0x997   :  { %3276 = vmatpush.msra.mxu1 %v6498_v55  ;;  %3308 = vmatpush.msra.mxu2 %v6475_v48 }
 0x998   :  { %3175 = vmatpush.msrb.mxu3 %v6579_v24  ;;  %3086 = vmatpush.msrb.mxu0 %v6586_v28 }
 0x999   :  { %2970 = vmatmul.f32.vlgmr.msra.gmra.mxu0 %v2867_v7  ;;  %3119 = vmatmul.f32.vlgmr.msrb.gmra.mxu1 %v7026_v25  ;;  %v7671_v25 = vld [vmem:[#allocation21_spill] sm:$0xff] }
 0x99a   :  { %3089 = vmatpush.msrb.mxu0 %v6594_v32  ;;  %3282 = vmatpush.msra.mxu1 %v6536_v3 }
 0x99b   :  { %3152 = vmatmul.f32.vlgmr.msrb.gmra.mxu2 %v7017_v2  ;;  %3337 = vmatpush.msra.mxu3 %v7658_v58 }
 0x99c   :  { %3311 = vmatpush.msra.mxu2 %v7659_v63  ;;  %3288 = vmatpush.msra.mxu1 %v7660_v38 }
 0x99d   :  { %3177 = vmatmul.f32.vlgmr.msrb.gmra.mxu3 %v7017_v2  ;;  %3237 = vmatpush.msra.mxu0 %v7658_v58  ;;  %v7666_v2 = vld [vmem:[#allocation18_spill] sm:$0xff] }
 0x99e   :  { %3314 = vmatpush.msra.mxu2 %v7661_v50  ;;  %3339 = vmatpush.msra.mxu3 %v7662_v51 }
 0x99f   :  { %3397 = vmatpush.msrb.mxu1 %v7658_v58  ;;  %3239 = vmatpush.msra.mxu0 %v7662_v51 }
 0x9a0   :  { %3317 = vmatpush.msra.mxu2 %v7663_v10  ;;  %3341 = vmatpush.msra.mxu3 %v7664_v62 }
 0x9a1   :  { %3092 = vmatmul.f32.vlgmr.msrb.gmra.mxu0 %v7020_v46  ;;  %3399 = vmatpush.msrb.mxu1 %v7662_v51  ;;  %v7668_v46 = vld [vmem:[#allocation5_spill] sm:$0xff] }
 0x9a2   :  { %3343 = vmatpush.msra.mxu3 %v7665_v19  ;;  %3427 = vmatpush.msrb.mxu2 %v6700_v26 }
 0x9a3   :  { %3241 = vmatpush.msra.mxu0 %v7664_v62  ;;  %3401 = vmatpush.msrb.mxu1 %v7664_v62 }
 0x9a4   :  { %3429 = vmatpush.msrb.mxu2 %v6706_v5  ;;  %3460 = vmatpush.msrb.mxu3 %v7666_v2 }
 0x9a5   :  { %3243 = vmatpush.msra.mxu0 %v7665_v19  ;;  %3403 = vmatpush.msrb.mxu1 %v7665_v19 }
 0x9a6   :  { %3431 = vmatpush.msrb.mxu2 %v6718_v12  ;;  %3466 = vmatpush.msrb.mxu3 %v7667_v59 }
 0x9a7   :  { %3366 = vmatpush.msrb.mxu0 %v7668_v46 }
 0x9a8   :  { %3433 = vmatpush.msrb.mxu2 %v6732_v30  ;;  %3472 = vmatpush.msrb.mxu3 %v7669_v47 }
 0x9a9   :  { %3370 = vmatpush.msrb.mxu0 %v7670_v29 }
 0x9aa   :  { %3478 = vmatpush.msrb.mxu3 %v7671_v25 }
 0x9ab   :  { %3374 = vmatpush.msrb.mxu0 %v7672_v52 }
 0x9ad   :  { %3378 = vmatpush.msrb.mxu0 %v7673_v60 }
 0x9ee   :  { %v2499_v36 = vpop.f32.mrf.mxu1 }
 0x9f6   :  { %v2458_v0 = vpop.f32.mrf.mxu0  ;;  %v2529_v57 = vpop.f32.mrf.mxu2 }
 0x9f7   :  { %v2614_v44 = vpop.f32.mrf.mxu1  ;;  %v2459_v61 = vadd.f32 %v7122_v17, %v2458_v0 }
 0x9f8   :  { %v2556_v7 = vpop.f32.mrf.mxu3 }
 0x9f9   :  { %v2500_v14 = vadd.f32 %v2499_v36, %v2459_v61 }
 0x9fb   :  { %v2530_v47 = vadd.f32 %v2529_v57, %v2500_v14 }
 0x9fd   :  { %v2557_v46 = vadd.f32 %v2556_v7, %v2530_v47 }
 0x9fe   :  { %v2589_v42 = vpop.f32.mrf.mxu0  ;;  %v2648_v29 = vpop.f32.mrf.mxu2 }
 0x9ff   :  { %v2746_v52 = vpop.f32.mrf.mxu1  ;;  %v2590_v10 = vadd.f32 %v2589_v42, %v2557_v46 }
 0xa00   :  { %v2689_v25 = vpop.f32.mrf.mxu3 }
 0xa01   :  { %v2690_v60 = vadd.f32 %v2689_v25, %v2648_v29  ;;  %v2615_v63 = vadd.f32 %v2614_v44, %v2590_v10 }
 0xa06   :  { %v2719_v59 = vpop.f32.mrf.mxu0  ;;  %v2779_v2 = vpop.f32.mrf.mxu2 }
 0xa07   :  { %v2720_v19 = vadd.f32 %v2719_v59, %v2690_v60  ;;  %v2899_v38 = vpop.f32.mrf.mxu1 }
 0xa08   :  { %v2804_v62 = vpop.f32.mrf.mxu3 }
 0xa09   :  { %v2747_v51 = vadd.f32 %v2746_v52, %v2720_v19 }
 0xa0b   :  { %v2780_v50 = vadd.f32 %v2779_v2, %v2747_v51 }
 0xa0d   :  { %v2805_v58 = vadd.f32 %v2804_v62, %v2780_v50 }
 0xa0e   :  { %v2873_v3 = vpop.f32.mrf.mxu0  ;;  %v2923_v0 = vpop.f32.mrf.mxu2 }
 0xa0f   :  { %v2807_v36 = vadd.f32 %v2805_v58, %v2615_v63  ;;  %v2874_v57 = vadd.f32 %v6996_v40, %v2873_v3  ;;  %v2993_v47 = vpop.f32.mrf.mxu1 }
 0xa10   :  { %v2947_v61 = vpop.f32.mrf.mxu3 }
 0xa11   :  { %6301 = vtanh.f32 %v2807_v36  ;;  %v2900_v14 = vadd.f32 %v2899_v38, %v2874_v57  ;;  %v6226_v57 = vmul.f32 -1.442695, %v2807_v36 }
 0xa13   :  { %v2924_v59 = vadd.f32 %v2923_v0, %v2900_v14 }
 0xa15   :  { %v2948_v51 = vadd.f32 %v2947_v61, %v2924_v59 }
 0xa16   :  { %v2971_v29 = vpop.f32.mrf.mxu0  ;;  %v3022_v7 = vpop.f32.mrf.mxu2 }
 0xa17   :  { %v6302_v25 = vpop.eup %6301  ;;  %v3120_v62 = vpop.f32.mrf.mxu1  ;;  %v2972_v46 = vadd.f32 %v2971_v29, %v2948_v51 }
 0xa18   :  { %2830 = vrot.lane.b32.xlu2 %v6302_v25, %s6377_s14  ;;  %v3063_v19 = vpop.f32.mrf.mxu3 }
 0xa19   :  { %v3064_v2 = vadd.f32 %v3063_v19, %v3022_v7  ;;  %v2994_v3 = vadd.f32 %v2993_v47, %v2972_v46 }
 0xa1e   :  { %v3093_v10 = vpop.f32.mrf.mxu0  ;;  %v3153_v63 = vpop.f32.mrf.mxu2 }
 0xa1f   :  { %v3094_v50 = vadd.f32 %v3093_v10, %v3064_v2 }
 0xa20   :  { %v3178_v60 = vpop.f32.mrf.mxu3 }
 0xa21   :  { %v3121_v58 = vadd.f32 %v3120_v62, %v3094_v50 }
 0xa23   :  { %v3154_v52 = vadd.f32 %v3153_v63, %v3121_v58 }
 0xa25   :  { %v3179_v38 = vadd.f32 %v3178_v60, %v3154_v52 }
 0xa27   :  { %v3181_v44 = vadd.f32 %v3179_v38, %v2994_v3 }
 0xa29   :  { %6303 = vtanh.f32 %v3181_v44  ;;  %v6228_v62 = vmul.f32 -1.442695, %v3181_v44 }
 0xa2a   :  { %6305 = vpow2.f32 %v6226_v57 }
 0xa2f   :  { %v6304_v42 = vpop.eup %6303 }
 0xa30   :  { %3204 = vrot.lane.b32.xlu1 %v6304_v42, %s6377_s14  ;;  %v6306_v0 = vpop.eup %6305 }
 0xa31   :  { %v2811_v61 = vadd.f32 1.0, %v6306_v0 }
 0xa33   :  { %6307 = vrcp.f32 %v2811_v61  ;;  %v2823_v19 = vand.u32 2147483648, %v2811_v61  ;;  %vm2817_vm3 = vweird.f32 %v2811_v61  ;;  %v2821_v47 = vand.u32 2147483647, %v2811_v61 }
 0xa34   :  { %6309 = vpow2.f32 %v6228_v62 }
 0xa35   :  { %v2824_v2 = vor.u32 1.1754944e-38, %v2823_v19  ;;  %vm2822_vm5 = vcmp.eq.f32.partialorder %v2821_v47, 8.507059e+37 }
 0xa39   :  { %v6308_v14 = vpop.eup %6307 }
 0xa3a   :  { %v2813_v25 = vmul.f32 %v6308_v14, %v2811_v61  ;;  %vm2818_vm2 = vweird.f32 %v6308_v14  ;;  %v6310_v46 = vpop.eup %6309 }
 0xa3b   :  { %vm2819_vm4 = vmor %vm2817_vm3, %vm2818_vm2  ;;  %v3185_v58 = vadd.f32 1.0, %v6310_v46 }
 0xa3c   :  { %v2814_v7 = vsub.f32 1.0, %v2813_v25 }
 0xa3d   :  { %6311 = vrcp.f32 %v3185_v58  ;;  %v3197_v42 = vand.u32 2147483648, %v3185_v58  ;;  %vm3191_vm8 = vweird.f32 %v3185_v58  ;;  %v3195_v57 = vand.u32 2147483647, %v3185_v58 }
 0xa3e   :  { %v2815_v29 = vmul.f32 %v6308_v14, %v2814_v7 }
 0xa3f   :  { %v3198_v61 = vor.u32 1.1754944e-38, %v3197_v42  ;;  %vm3196_vm10 = vcmp.eq.f32.partialorder %v3195_v57, 8.507059e+37 }
 0xa40   :  { %v2816_v59 = vadd.f32 %v6308_v14, %v2815_v29 }
 0xa42   :  { %v2820_v51 = vsel %vm2819_vm4, %v6308_v14, %v2816_v59 }
 0xa43   :  { %v2825_v50 = vsel %vm2822_vm5, %v2824_v2, %v2820_v51  ;;  %v6312_v63 = vpop.eup %6311 }
 0xa44   :  { %v3187_v52 = vmul.f32 %v6312_v63, %v3185_v58  ;;  %vm3192_vm7 = vweird.f32 %v6312_v63  ;;  %v2828_v7 = vmul.f32 %v2825_v50, %v7004_v11 }
 0xa45   :  { %vm3193_vm9 = vmor %vm3191_vm8, %vm3192_vm7 }
 0xa46   :  { %v3188_v60 = vsub.f32 1.0, %v3187_v52 }
 0xa48   :  { %v3189_v3 = vmul.f32 %v6312_v63, %v3188_v60 }
 0xa4a   :  { %v3190_v38 = vadd.f32 %v6312_v63, %v3189_v3 }
 0xa4c   :  { %v3194_v0 = vsel %vm3193_vm9, %v6312_v63, %v3190_v38 }
 0xa4d   :  { %v3199_v14 = vsel %vm3196_vm10, %v3198_v61, %v3194_v0 }
 0xa4e   :  { %v3202_v47 = vmul.f32 %v3199_v14, %v7009_v49 }
 0xa72   :  { %v2831_v10 = vpop.permute.xlu2 %2830 }
 0xa73   :  { %v2833_v36 = vmul.f32 %v2831_v10, %v2825_v50 }
 0xa75   :  { %2835 = vrot.lane.b32.xlu1 %v2833_v36, %s6378_s15 }
 0xaa2   :  { %v3205_v44 = vpop.permute.xlu1 %3204 }
 0xaa3   :  { %v3207_v25 = vmul.f32 %v3205_v44, %v3199_v14 }
 0xaa5   :  { %3209 = vrot.lane.b32.xlu0 %v3207_v25, %s6378_s15 }
 0xae7   :  { %v2836_v29 = vpop.permute.xlu1 %2835 }
 0xae8   :  { %v7131_v59 = vadd.f32 %v2836_v29, %v2828_v7 }
 0xaea   :  { %6313 = vtanh.f32 %v7131_v59 }
 0xaf0   :  { %v6314_v19 = vpop.eup %6313 }
 0xaf1   :  { %2841 = vrot.lane.b32.xlu0 %v6314_v19, %s6377_s14 }
 0xb17   :  { %v3210_v51 = vpop.permute.xlu0 %3209 }
 0xb18   :  { %v7136_v2 = vadd.f32 %v3210_v51, %v3202_v47 }
 0xb1a   :  { %6315 = vtanh.f32 %v7136_v2 }
 0xb20   :  { %v6316_v10 = vpop.eup %6315 }
 0xb21   :  { %3215 = vrot.lane.b32.xlu2 %v6316_v10, %s6377_s14 }
 0xb63   :  { %v2842_v36 = vpop.permute.xlu0 %2841 }
 0xb64   :  { %v2844_v11 = vmul.f32 %v2842_v36, %v2825_v50  ;;  %v7674_v36 = vld [vmem:[#allocation13_spill] sm:$0xff] }
 0xb66   :  { %3410 = vrot.lane.b32.xlu2 %v2844_v11, %s6378_s15  ;;  %v7675_v11 = vld [vmem:[#allocation2_spill] sm:$0xff] }
 0xb7b   :  { %v3216_v62 = vpop.permute.xlu2 %3215 }
 0xb7c   :  { %v3218_v46 = vmul.f32 %v3216_v62, %v3199_v14  ;;  %v6230_v14 = vld [vmem:[%s7559_s0 + $0x28] sm:$0xff]  ;;  %v7676_v62 = vld [vmem:[#allocation4_spill] sm:$0xff] }
 0xb7d   :  { %v3640_v7 = vsel %vm54_vm1, %v6230_v14, 0 }
 0xb7e   :  { %3220 = vrot.lane.b32.xlu1 %v3218_v46, %s6378_s15  ;;  %v3659_v29 = vand.u32 4294901760, %v3640_v7  ;;  %v7677_v46 = vld [vmem:[#allocation14_spill] sm:$0xff] }
 0xb80   :  { %v3660_v19 = vsub.f32 %v3640_v7, %v3659_v29 }
 0xb82   :  { %v3661_v47 = vand.u32 4294901760, %v3660_v19 }
 0xb84   :  { %v3662_v51 = vsub.f32 %v3660_v19, %v3661_v47 }
 0xb86   :  { %v3663_v10 = vand.u32 4294901760, %v3662_v51 }
 0xbc0   :  { %v3411_v58 = vpop.permute.xlu2 %3410 }
 0xbc1   :  { %v3412_v63 = vsel %vm242_vm6, %v3411_v58, 0  ;;  %v7678_v58 = vld [vmem:[#allocation8_spill] sm:$0xff] }
 0xbc2   :  { %v3434_v49 = vand.u32 4294901760, %v3412_v63 }
 0xbc4   :  { %v3435_v52 = vsub.f32 %v3412_v63, %v3434_v49  ;;  %v7679_v63 = vld [vmem:[#allocation3_spill] sm:$0xff] }
 0xbc6   :  { %v3436_v42 = vand.u32 4294901760, %v3435_v52 }
 0xbc8   :  { %v3437_v0 = vsub.f32 %v3435_v52, %v3436_v42 }
 0xbca   :  { %v3438_v25 = vand.u32 4294901760, %v3437_v0  ;;  %v7688_v0 = vld [vmem:[#allocation21_spill] sm:$0xff] }
 0xbf0   :  { %v3221_v60 = vpop.permute.xlu1 %3220 }
 0xbf1   :  { %v3222_v3 = vsel %vm242_vm6, %v3221_v60, 0  ;;  %v7682_v60 = vld [vmem:[#allocation9_spill] sm:$0xff] }
 0xbf2   :  { %v7144_v38 = vand.u32 4294901760, %v3222_v3 }
 0xbf4   :  { %v7147_v57 = vsub.f32 %v3222_v3, %v7144_v38  ;;  %3290 = vmatmul.f32.vlgmr.msra.gmra.mxu1 %v7144_v38  ;;  %v7683_v3 = vld [vmem:[#allocation18_spill] sm:$0xff] }
 0xbf5   :  { %3527 = vmatpush.msra.mxu1 %v6700_v26 }
 0xbf6   :  { %v7152_v50 = vand.u32 4294901760, %v7147_v57  ;;  %3320 = vmatmul.f32.vlgmr.msra.gmra.mxu2 %v7147_v57 }
 0xbf7   :  { %3529 = vmatpush.msra.mxu1 %v6706_v5  ;;  %3556 = vmatpush.msra.mxu2 %v7643_v1 }
 0xbf8   :  { %v3247_v61 = vsub.f32 %v7147_v57, %v7152_v50  ;;  %3347 = vmatmul.f32.vlgmr.msra.gmra.mxu3 %v7152_v50 }
 0xbf9   :  { %3531 = vmatpush.msra.mxu1 %v6718_v12  ;;  %3560 = vmatpush.msra.mxu2 %v6730_v22 }
 0xbfa   :  { %v3248_v44 = vand.u32 4294901760, %v3247_v61  ;;  %3587 = vmatpush.msra.mxu3 %v6700_v26  ;;  %v7689_v61 = vld [vmem:[#allocation10_spill] sm:$0xff] }
 0xbfb   :  { %3533 = vmatpush.msra.mxu1 %v6732_v30  ;;  %3564 = vmatpush.msra.mxu2 %v6743_v37 }
 0xbfc   :  { %3249 = vmatmul.f32.vlgmr.msra.gmra.mxu0 %v3248_v44  ;;  %3405 = vmatmul.f32.vlgmr.msrb.gmra.mxu1 %v7144_v38 }
 0xbfd   :  { %3589 = vmatpush.msra.mxu3 %v6706_v5  ;;  %3498 = vmatpush.msra.mxu0 %v6709_v8 }
 0xbfe   :  { %3439 = vmatmul.f32.vlgmr.msrb.gmra.mxu2 %v3438_v25  ;;  %3688 = vmatpush.msrb.mxu1 %v6451_v13 }
 0xbff   :  { %3568 = vmatpush.msra.mxu2 %v6754_v43  ;;  %3591 = vmatpush.msra.mxu3 %v6718_v12 }
 0xc00   :  { %3480 = vmatmul.f32.vlgmr.msrb.gmra.mxu3 %v3434_v49  ;;  %3501 = vmatpush.msra.mxu0 %v6721_v16 }
 0xc01   :  { %3593 = vmatpush.msra.mxu3 %v6732_v30  ;;  %3711 = vmatpush.msrb.mxu2 %v6440_v6 }
 0xc02   :  { %3504 = vmatpush.msra.mxu0 %v6735_v34 }
 0xc03   :  { %3734 = vmatpush.msrb.mxu3 %v6437_v4 }
 0xc04   :  { %3380 = vmatmul.f32.vlgmr.msrb.gmra.mxu0 %v7144_v38  ;;  %3537 = vmatmul.f32.vlgmr.msra.gmra.mxu1 %v3436_v42  ;;  %v7685_v42 = vld [vmem:[#allocation5_spill] sm:$0xff] }
 0xc05   :  { %3507 = vmatpush.msra.mxu0 %v6746_v33  ;;  %3782 = vmatpush.msra.mxu1 %v6437_v4 }
 0xc06   :  { %3570 = vmatmul.f32.vlgmr.msra.gmra.mxu2 %v3434_v49 }
 0xc07   :  { %3658 = vmatpush.msrb.mxu0 %v6437_v4  ;;  %3801 = vmatpush.msra.mxu2 %v6561_v15 }
 0xc08   :  { %3595 = vmatmul.f32.vlgmr.msra.gmra.mxu3 %v3434_v49  ;;  %v7680_v49 = vld [vmem:[#allocation11_spill] sm:$0xff] }
 0xc09   :  { %3803 = vmatpush.msra.mxu2 %v6566_v18  ;;  %3834 = vmatpush.msra.mxu3 %v6610_v41 }
 0xc0b   :  { %3805 = vmatpush.msra.mxu2 %v6574_v21  ;;  %3840 = vmatpush.msra.mxu3 %v6615_v45 }
 0xc0c   :  { %3510 = vmatmul.f32.vlgmr.msra.gmra.mxu0 %v3435_v52  ;;  %3690 = vmatmul.f32.vlgmr.msrb.gmra.mxu1 %v3659_v29  ;;  %v7681_v52 = vld [vmem:[#allocation7_spill] sm:$0xff] }
 0xc0d   :  { %3760 = vmatpush.msra.mxu0 %v6446_v9  ;;  %3807 = vmatpush.msra.mxu2 %v6579_v24 }
 0xc0e   :  { %3714 = vmatmul.f32.vlgmr.msrb.gmra.mxu2 %v3660_v19  ;;  %3846 = vmatpush.msra.mxu3 %v6622_v53 }
 0xc0f   :  { %3901 = vmatpush.msrb.mxu1 %v6561_v15  ;;  %3930 = vmatpush.msrb.mxu2 %v6583_v27 }
 0xc10   :  { %3738 = vmatmul.f32.vlgmr.msrb.gmra.mxu3 %v3661_v47 }
 0xc11   :  { %3852 = vmatpush.msra.mxu3 %v6626_v56  ;;  %3903 = vmatpush.msrb.mxu1 %v6566_v18 }
 0xc12   :  { %3934 = vmatpush.msrb.mxu2 %v6591_v31 }
 0xc13   :  { %3961 = vmatpush.msrb.mxu3 %v6561_v15  ;;  %3905 = vmatpush.msrb.mxu1 %v6574_v21 }
 0xc14   :  { %3664 = vmatmul.f32.vlgmr.msrb.gmra.mxu0 %v3663_v10  ;;  %3784 = vmatmul.f32.vlgmr.msra.gmra.mxu1 %v3659_v29 }
 0xc15   :  { %3907 = vmatpush.msrb.mxu1 %v6579_v24  ;;  %3938 = vmatpush.msrb.mxu2 %v6602_v35 }
 0xc16   :  { %3813 = vmatmul.f32.vlgmr.msra.gmra.mxu2 %v3248_v44  ;;  %3963 = vmatpush.msrb.mxu3 %v6566_v18  ;;  %v7690_v44 = vld [vmem:[#allocation12_spill] sm:$0xff] }
 0xc17   :  { %3872 = vmatpush.msrb.mxu0 %v6572_v20  ;;  %3942 = vmatpush.msrb.mxu2 %v6608_v39 }
 0xc18   :  { %3854 = vmatmul.f32.vlgmr.msra.gmra.mxu3 %v7144_v38  ;;  %4062 = vmatpush.msra.mxu1 %v6496_v54 }
 0xc19   :  { %3965 = vmatpush.msrb.mxu3 %v6574_v21  ;;  %3875 = vmatpush.msrb.mxu0 %v6577_v23 }
 0xc1a   :  { %4068 = vmatpush.msra.mxu1 %v6498_v55  ;;  %4100 = vmatpush.msra.mxu2 %v6475_v48 }
 0xc1b   :  { %3967 = vmatpush.msrb.mxu3 %v6579_v24  ;;  %3878 = vmatpush.msrb.mxu0 %v6586_v28 }
 0xc1c   :  { %3762 = vmatmul.f32.vlgmr.msra.gmra.mxu0 %v3659_v29  ;;  %3911 = vmatmul.f32.vlgmr.msrb.gmra.mxu1 %v7152_v50  ;;  %v7687_v50 = vld [vmem:[#allocation6_spill] sm:$0xff] }
 0xc1d   :  { %3881 = vmatpush.msrb.mxu0 %v6594_v32  ;;  %4074 = vmatpush.msra.mxu1 %v7674_v36 }
 0xc1e   :  { %3944 = vmatmul.f32.vlgmr.msrb.gmra.mxu2 %v7144_v38  ;;  %4129 = vmatpush.msra.mxu3 %v7675_v11 }
 0xc1f   :  { %4103 = vmatpush.msra.mxu2 %v7676_v62  ;;  %4080 = vmatpush.msra.mxu1 %v7677_v46 }
 0xc20   :  { %3969 = vmatmul.f32.vlgmr.msrb.gmra.mxu3 %v7144_v38  ;;  %4029 = vmatpush.msra.mxu0 %v7675_v11  ;;  %v7684_v38 = vld [vmem:[#allocation19_spill] sm:$0xff] }
 0xc21   :  { %4106 = vmatpush.msra.mxu2 %v7678_v58  ;;  %4131 = vmatpush.msra.mxu3 %v7679_v63 }
 0xc22   :  { %4189 = vmatpush.msrb.mxu1 %v7675_v11  ;;  %4031 = vmatpush.msra.mxu0 %v7679_v63 }
 0xc23   :  { %4109 = vmatpush.msra.mxu2 %v7680_v49  ;;  %4133 = vmatpush.msra.mxu3 %v7681_v52 }
 0xc24   :  { %3884 = vmatmul.f32.vlgmr.msrb.gmra.mxu0 %v7147_v57  ;;  %4191 = vmatpush.msrb.mxu1 %v7679_v63  ;;  %v7686_v57 = vld [vmem:[#allocation20_spill] sm:$0xff] }
 0xc25   :  { %4135 = vmatpush.msra.mxu3 %v7682_v60  ;;  %4219 = vmatpush.msrb.mxu2 %v6700_v26 }
 0xc26   :  { %4033 = vmatpush.msra.mxu0 %v7681_v52  ;;  %4193 = vmatpush.msrb.mxu1 %v7681_v52 }
 0xc27   :  { %4221 = vmatpush.msrb.mxu2 %v6706_v5  ;;  %4252 = vmatpush.msrb.mxu3 %v7683_v3 }
 0xc28   :  { %4035 = vmatpush.msra.mxu0 %v7682_v60  ;;  %4195 = vmatpush.msrb.mxu1 %v7682_v60 }
 0xc29   :  { %4223 = vmatpush.msrb.mxu2 %v6718_v12  ;;  %4258 = vmatpush.msrb.mxu3 %v7684_v38 }
 0xc2a   :  { %4158 = vmatpush.msrb.mxu0 %v7685_v42 }
 0xc2b   :  { %4225 = vmatpush.msrb.mxu2 %v6732_v30  ;;  %4264 = vmatpush.msrb.mxu3 %v7686_v57 }
 0xc2c   :  { %4162 = vmatpush.msrb.mxu0 %v7687_v50 }
 0xc2d   :  { %4270 = vmatpush.msrb.mxu3 %v7688_v0 }
 0xc2e   :  { %4166 = vmatpush.msrb.mxu0 %v7689_v61 }
 0xc30   :  { %4170 = vmatpush.msrb.mxu0 %v7690_v44 }
 0xc71   :  { %v3291_v14 = vpop.f32.mrf.mxu1 }
 0xc79   :  { %v3250_v25 = vpop.f32.mrf.mxu0  ;;  %v3321_v7 = vpop.f32.mrf.mxu2 }
 0xc7a   :  { %v3406_v29 = vpop.f32.mrf.mxu1  ;;  %v3251_v47 = vadd.f32 %v7122_v17, %v3250_v25 }
 0xc7b   :  { %v3348_v19 = vpop.f32.mrf.mxu3 }
 0xc7c   :  { %v3292_v51 = vadd.f32 %v3291_v14, %v3251_v47 }
 0xc7e   :  { %v3322_v57 = vadd.f32 %v3321_v7, %v3292_v51 }
 0xc80   :  { %v3349_v50 = vadd.f32 %v3348_v19, %v3322_v57 }
 0xc81   :  { %v3381_v10 = vpop.f32.mrf.mxu0  ;;  %v3440_v42 = vpop.f32.mrf.mxu2 }
 0xc82   :  { %v3538_v3 = vpop.f32.mrf.mxu1  ;;  %v3382_v44 = vadd.f32 %v3381_v10, %v3349_v50 }
 0xc83   :  { %v3481_v38 = vpop.f32.mrf.mxu3 }
 0xc84   :  { %v3482_v60 = vadd.f32 %v3481_v38, %v3440_v42  ;;  %v3407_v62 = vadd.f32 %v3406_v29, %v3382_v44 }
 0xc89   :  { %v3511_v0 = vpop.f32.mrf.mxu0  ;;  %v3571_v52 = vpop.f32.mrf.mxu2 }
 0xc8a   :  { %v3512_v61 = vadd.f32 %v3511_v0, %v3482_v60  ;;  %v3691_v46 = vpop.f32.mrf.mxu1 }
 0xc8b   :  { %v3596_v49 = vpop.f32.mrf.mxu3 }
 0xc8c   :  { %v3539_v63 = vadd.f32 %v3538_v3, %v3512_v61 }
 0xc8e   :  { %v3572_v58 = vadd.f32 %v3571_v52, %v3539_v63 }
 0xc90   :  { %v3597_v11 = vadd.f32 %v3596_v49, %v3572_v58 }
 0xc91   :  { %v3665_v36 = vpop.f32.mrf.mxu0  ;;  %v3715_v25 = vpop.f32.mrf.mxu2 }
 0xc92   :  { %v3599_v14 = vadd.f32 %v3597_v11, %v3407_v62  ;;  %v3666_v7 = vadd.f32 %v6996_v40, %v3665_v36  ;;  %v3785_v57 = vpop.f32.mrf.mxu1 }
 0xc93   :  { %v3739_v47 = vpop.f32.mrf.mxu3 }
 0xc94   :  { %6317 = vtanh.f32 %v3599_v14  ;;  %v3692_v51 = vadd.f32 %v3691_v46, %v3666_v7  ;;  %v6229_v10 = vmul.f32 -1.442695, %v3599_v14 }
 0xc96   :  { %v3716_v60 = vadd.f32 %v3715_v25, %v3692_v51 }
 0xc98   :  { %v3740_v63 = vadd.f32 %v3739_v47, %v3716_v60 }
 0xc99   :  { %v3763_v38 = vpop.f32.mrf.mxu0  ;;  %v3814_v19 = vpop.f32.mrf.mxu2 }
 0xc9a   :  { %v6318_v42 = vpop.eup %6317  ;;  %v3912_v49 = vpop.f32.mrf.mxu1  ;;  %v3764_v0 = vadd.f32 %v3763_v38, %v3740_v63 }
 0xc9b   :  { %3622 = vrot.lane.b32.xlu1 %v6318_v42, %s6377_s14  ;;  %v3855_v3 = vpop.f32.mrf.mxu3 }
 0xc9c   :  { %v3856_v52 = vadd.f32 %v3855_v3, %v3814_v19  ;;  %v3786_v40 = vadd.f32 %v3785_v57, %v3764_v0 }
 0xca1   :  { %v3885_v50 = vpop.f32.mrf.mxu0  ;;  %v3945_v62 = vpop.f32.mrf.mxu2 }
 0xca2   :  { %v3886_v58 = vadd.f32 %v3885_v50, %v3856_v52 }
 0xca3   :  { %v3970_v44 = vpop.f32.mrf.mxu3 }
 0xca4   :  { %v3913_v11 = vadd.f32 %v3912_v49, %v3886_v58 }
 0xca6   :  { %v3946_v61 = vadd.f32 %v3945_v62, %v3913_v11 }
 0xca8   :  { %v3971_v36 = vadd.f32 %v3970_v44, %v3946_v61 }
 0xcaa   :  { %v3973_v46 = vadd.f32 %v3971_v36, %v3786_v40 }
 0xcac   :  { %6319 = vtanh.f32 %v3973_v46  ;;  %v6231_v51 = vmul.f32 -1.442695, %v3973_v46 }
 0xcad   :  { %6321 = vpow2.f32 %v6229_v10 }
 0xcb2   :  { %v6320_v29 = vpop.eup %6319 }
 0xcb3   :  { %3996 = vrot.lane.b32.xlu0 %v6320_v29, %s6377_s14  ;;  %v6322_v25 = vpop.eup %6321 }
 0xcb4   :  { %v3603_v47 = vadd.f32 1.0, %v6322_v25 }
 0xcb6   :  { %6323 = vrcp.f32 %v3603_v47  ;;  %v3615_v63 = vand.u32 2147483648, %v3603_v47  ;;  %vm3609_vm12 = vweird.f32 %v3603_v47  ;;  %v3613_v52 = vand.u32 2147483647, %v3603_v47 }
 0xcb7   :  { %6325 = vpow2.f32 %v6231_v51 }
 0xcb8   :  { %v3616_v50 = vor.u32 1.1754944e-38, %v3615_v63  ;;  %vm3614_vm14 = vcmp.eq.f32.partialorder %v3613_v52, 8.507059e+37 }
 0xcbc   :  { %v6324_v7 = vpop.eup %6323 }
 0xcbd   :  { %v3605_v42 = vmul.f32 %v6324_v7, %v3603_v47  ;;  %v6326_v19 = vpop.eup %6325  ;;  %vm3610_vm11 = vweird.f32 %v6324_v7 }
 0xcbe   :  { %v3977_v3 = vadd.f32 1.0, %v6326_v19  ;;  %vm3611_vm13 = vmor %vm3609_vm12, %vm3610_vm11 }
 0xcbf   :  { %v3606_v38 = vsub.f32 1.0, %v3605_v42 }
 0xcc0   :  { %6327 = vrcp.f32 %v3977_v3  ;;  %v3989_v36 = vand.u32 2147483648, %v3977_v3  ;;  %vm3983_vm0 = vweird.f32 %v3977_v3  ;;  %v3987_v46 = vand.u32 2147483647, %v3977_v3 }
 0xcc1   :  { %v3607_v60 = vmul.f32 %v6324_v7, %v3606_v38 }
 0xcc2   :  { %v3990_v10 = vor.u32 1.1754944e-38, %v3989_v36  ;;  %vm3988_vm3 = vcmp.eq.f32.partialorder %v3987_v46, 8.507059e+37 }
 0xcc3   :  { %v3608_v57 = vadd.f32 %v6324_v7, %v3607_v60 }
 0xcc5   :  { %v3612_v14 = vsel %vm3611_vm13, %v6324_v7, %v3608_v57 }
 0xcc6   :  { %v3617_v49 = vsel %vm3614_vm14, %v3616_v50, %v3612_v14  ;;  %v6328_v11 = vpop.eup %6327 }
 0xcc7   :  { %v3979_v62 = vmul.f32 %v6328_v11, %v3977_v3  ;;  %vm3984_vm15 = vweird.f32 %v6328_v11  ;;  %v3620_v42 = vmul.f32 %v3617_v49, %v7131_v59 }
 0xcc8   :  { %vm3985_vm2 = vmor %vm3983_vm0, %vm3984_vm15 }
 0xcc9   :  { %v3980_v61 = vsub.f32 1.0, %v3979_v62 }
 0xccb   :  { %v3981_v44 = vmul.f32 %v6328_v11, %v3980_v61 }
 0xccd   :  { %v3982_v40 = vadd.f32 %v6328_v11, %v3981_v44 }
 0xccf   :  { %v3986_v29 = vsel %vm3985_vm2, %v6328_v11, %v3982_v40 }
 0xcd0   :  { %v3991_v47 = vsel %vm3988_vm3, %v3990_v10, %v3986_v29 }
 0xcd1   :  { %v3994_v51 = vmul.f32 %v3991_v47, %v7136_v2 }
 0xd0d   :  { %v3623_v58 = vpop.permute.xlu1 %3622 }
 0xd0e   :  { %v3625_v0 = vmul.f32 %v3623_v58, %v3617_v49 }
 0xd10   :  { %3627 = vrot.lane.b32.xlu0 %v3625_v0, %s6378_s15 }
 0xd25   :  { %v3997_v25 = vpop.permute.xlu0 %3996 }
 0xd26   :  { %v3999_v7 = vmul.f32 %v3997_v25, %v3991_v47  ;;  %v6233_v25 = vld [vmem:[%s7559_s0 + $0x30] sm:$0xff] }
 0xd28   :  { %4001 = vrot.lane.b32.xlu2 %v3999_v7, %s6378_s15  ;;  %v4432_v7 = vsel %vm54_vm1, %v6233_v25, 0 }
 0xd82   :  { %v4002_v38 = vpop.permute.xlu2 %4001  ;;  %v3628_v19 = vpop.permute.xlu0 %3627 }
 0xd83   :  { %v7254_v60 = vadd.f32 %v4002_v38, %v3994_v51  ;;  %v7256_v57 = vadd.f32 %v3628_v19, %v3620_v42  ;;  %v4451_v51 = vand.u32 4294901760, %v4432_v7 }
 0xd85   :  { %6329 = vtanh.f32 %v7254_v60  ;;  %v4452_v42 = vsub.f32 %v4432_v7, %v4451_v51 }
 0xd86   :  { %6331 = vtanh.f32 %v7256_v57 }
 0xd87   :  { %v4453_v38 = vand.u32 4294901760, %v4452_v42 }
 0xd89   :  { %v4454_v19 = vsub.f32 %v4452_v42, %v4453_v38 }
 0xd8b   :  { %v6330_v3 = vpop.eup %6329 }
 0xd8c   :  { %v6332_v63 = vpop.eup %6331  ;;  %4007 = vrot.lane.b32.xlu1 %v6330_v3, %s6377_s14  ;;  %v4455_v3 = vand.u32 4294901760, %v4454_v19 }
 0xd8d   :  { %3633 = vrot.lane.b32.xlu2 %v6332_v63, %s6377_s14  ;;  %v7691_v63 = vld [vmem:[#allocation13_spill] sm:$0xff] }
 0xde7   :  { %v3634_v52 = vpop.permute.xlu2 %3633 }
 0xde8   :  { %v3636_v2 = vmul.f32 %v3634_v52, %v3617_v49  ;;  %v7692_v52 = vld [vmem:[#allocation2_spill] sm:$0xff] }
 0xdea   :  { %4202 = vrot.lane.b32.xlu1 %v3636_v2, %s6378_s15  ;;  %v7693_v2 = vld [vmem:[#allocation4_spill] sm:$0xff] }
 0xdfe   :  { %v4008_v59 = vpop.permute.xlu1 %4007 }
 0xdff   :  { %v4010_v14 = vmul.f32 %v4008_v59, %v3991_v47  ;;  %v7694_v59 = vld [vmem:[#allocation14_spill] sm:$0xff] }
 0xe01   :  { %4012 = vrot.lane.b32.xlu0 %v4010_v14, %s6378_s15  ;;  %v7695_v14 = vld [vmem:[#allocation8_spill] sm:$0xff] }
 0xe5c   :  { %v4203_v50 = vpop.permute.xlu1 %4202 }
 0xe5d   :  { %v4204_v58 = vsel %vm242_vm6, %v4203_v50, 0  ;;  %v7696_v50 = vld [vmem:[#allocation3_spill] sm:$0xff] }
 0xe5e   :  { %v4226_v0 = vand.u32 4294901760, %v4204_v58 }
 0xe60   :  { %v4227_v11 = vsub.f32 %v4204_v58, %v4226_v0  ;;  %v7697_v58 = vld [vmem:[#allocation11_spill] sm:$0xff] }
 0xe62   :  { %v4228_v40 = vand.u32 4294901760, %v4227_v11 }
 0xe64   :  { %v4229_v46 = vsub.f32 %v4227_v11, %v4228_v40 }
 0xe66   :  { %v4230_v47 = vand.u32 4294901760, %v4229_v46  ;;  %v7706_v46 = vld [vmem:[#allocation10_spill] sm:$0xff] }
 0xe73   :  { %v4013_v62 = vpop.permute.xlu0 %4012 }
 0xe74   :  { %v4014_v61 = vsel %vm242_vm6, %v4013_v62, 0  ;;  %v7700_v62 = vld [vmem:[#allocation18_spill] sm:$0xff] }
 0xe75   :  { %v7266_v44 = vand.u32 4294901760, %v4014_v61 }
 0xe77   :  { %v7269_v36 = vsub.f32 %v4014_v61, %v7266_v44  ;;  %4082 = vmatmul.f32.vlgmr.msra.gmra.mxu1 %v7266_v44  ;;  %v7701_v61 = vld [vmem:[#allocation19_spill] sm:$0xff] }
 0xe78   :  { %4319 = vmatpush.msra.mxu1 %v6700_v26 }
 0xe79   :  { %v7274_v49 = vand.u32 4294901760, %v7269_v36  ;;  %4112 = vmatmul.f32.vlgmr.msra.gmra.mxu2 %v7269_v36 }
 0xe7a   :  { %4321 = vmatpush.msra.mxu1 %v6706_v5  ;;  %4348 = vmatpush.msra.mxu2 %v7643_v1 }
 0xe7b   :  { %v4039_v29 = vsub.f32 %v7269_v36, %v7274_v49  ;;  %4139 = vmatmul.f32.vlgmr.msra.gmra.mxu3 %v7274_v49 }
 0xe7c   :  { %4323 = vmatpush.msra.mxu1 %v6718_v12  ;;  %4352 = vmatpush.msra.mxu2 %v6730_v22 }
 0xe7d   :  { %v4040_v10 = vand.u32 4294901760, %v4039_v29  ;;  %4379 = vmatpush.msra.mxu3 %v6700_v26  ;;  %v7707_v29 = vld [vmem:[#allocation12_spill] sm:$0xff] }
 0xe7e   :  { %4325 = vmatpush.msra.mxu1 %v6732_v30  ;;  %4356 = vmatpush.msra.mxu2 %v6743_v37 }
 0xe7f   :  { %4041 = vmatmul.f32.vlgmr.msra.gmra.mxu0 %v4040_v10  ;;  %4197 = vmatmul.f32.vlgmr.msrb.gmra.mxu1 %v7266_v44 }
 0xe80   :  { %4381 = vmatpush.msra.mxu3 %v6706_v5  ;;  %4290 = vmatpush.msra.mxu0 %v6709_v8 }
 0xe81   :  { %4231 = vmatmul.f32.vlgmr.msrb.gmra.mxu2 %v4230_v47  ;;  %4480 = vmatpush.msrb.mxu1 %v6451_v13 }
 0xe82   :  { %4360 = vmatpush.msra.mxu2 %v6754_v43  ;;  %4383 = vmatpush.msra.mxu3 %v6718_v12 }
 0xe83   :  { %4272 = vmatmul.f32.vlgmr.msrb.gmra.mxu3 %v4226_v0  ;;  %4293 = vmatpush.msra.mxu0 %v6721_v16 }
 0xe84   :  { %4385 = vmatpush.msra.mxu3 %v6732_v30  ;;  %4503 = vmatpush.msrb.mxu2 %v6440_v6 }
 0xe85   :  { %4296 = vmatpush.msra.mxu0 %v6735_v34 }
 0xe86   :  { %4526 = vmatpush.msrb.mxu3 %v6437_v4 }
 0xe87   :  { %4172 = vmatmul.f32.vlgmr.msrb.gmra.mxu0 %v7266_v44  ;;  %4329 = vmatmul.f32.vlgmr.msra.gmra.mxu1 %v4228_v40  ;;  %v7703_v40 = vld [vmem:[#allocation20_spill] sm:$0xff] }
 0xe88   :  { %4299 = vmatpush.msra.mxu0 %v6746_v33  ;;  %4574 = vmatpush.msra.mxu1 %v6437_v4 }
 0xe89   :  { %4362 = vmatmul.f32.vlgmr.msra.gmra.mxu2 %v4226_v0 }
 0xe8a   :  { %4450 = vmatpush.msrb.mxu0 %v6437_v4  ;;  %4593 = vmatpush.msra.mxu2 %v6561_v15 }
 0xe8b   :  { %4387 = vmatmul.f32.vlgmr.msra.gmra.mxu3 %v4226_v0  ;;  %v7698_v0 = vld [vmem:[#allocation7_spill] sm:$0xff] }
 0xe8c   :  { %4595 = vmatpush.msra.mxu2 %v6566_v18  ;;  %4626 = vmatpush.msra.mxu3 %v6610_v41 }
 0xe8e   :  { %4597 = vmatpush.msra.mxu2 %v6574_v21  ;;  %4632 = vmatpush.msra.mxu3 %v6615_v45 }
 0xe8f   :  { %4302 = vmatmul.f32.vlgmr.msra.gmra.mxu0 %v4227_v11  ;;  %4482 = vmatmul.f32.vlgmr.msrb.gmra.mxu1 %v4451_v51  ;;  %v7699_v11 = vld [vmem:[#allocation9_spill] sm:$0xff] }
 0xe90   :  { %4552 = vmatpush.msra.mxu0 %v6446_v9  ;;  %4599 = vmatpush.msra.mxu2 %v6579_v24 }
 0xe91   :  { %4506 = vmatmul.f32.vlgmr.msrb.gmra.mxu2 %v4452_v42  ;;  %4638 = vmatpush.msra.mxu3 %v6622_v53 }
 0xe92   :  { %4693 = vmatpush.msrb.mxu1 %v6561_v15  ;;  %4722 = vmatpush.msrb.mxu2 %v6583_v27 }
 0xe93   :  { %4530 = vmatmul.f32.vlgmr.msrb.gmra.mxu3 %v4453_v38 }
 0xe94   :  { %4644 = vmatpush.msra.mxu3 %v6626_v56  ;;  %4695 = vmatpush.msrb.mxu1 %v6566_v18 }
 0xe95   :  { %4726 = vmatpush.msrb.mxu2 %v6591_v31 }
 0xe96   :  { %4753 = vmatpush.msrb.mxu3 %v6561_v15  ;;  %4697 = vmatpush.msrb.mxu1 %v6574_v21 }
 0xe97   :  { %4456 = vmatmul.f32.vlgmr.msrb.gmra.mxu0 %v4455_v3  ;;  %4576 = vmatmul.f32.vlgmr.msra.gmra.mxu1 %v4451_v51 }
 0xe98   :  { %4699 = vmatpush.msrb.mxu1 %v6579_v24  ;;  %4730 = vmatpush.msrb.mxu2 %v6602_v35 }
 0xe99   :  { %4605 = vmatmul.f32.vlgmr.msra.gmra.mxu2 %v4040_v10  ;;  %4755 = vmatpush.msrb.mxu3 %v6566_v18 }
 0xe9a   :  { %4664 = vmatpush.msrb.mxu0 %v6572_v20  ;;  %4734 = vmatpush.msrb.mxu2 %v6608_v39 }
 0xe9b   :  { %4646 = vmatmul.f32.vlgmr.msra.gmra.mxu3 %v7266_v44  ;;  %4854 = vmatpush.msra.mxu1 %v6496_v54 }
 0xe9c   :  { %4757 = vmatpush.msrb.mxu3 %v6574_v21  ;;  %4667 = vmatpush.msrb.mxu0 %v6577_v23 }
 0xe9d   :  { %4860 = vmatpush.msra.mxu1 %v6498_v55  ;;  %4892 = vmatpush.msra.mxu2 %v6475_v48 }
 0xe9e   :  { %4759 = vmatpush.msrb.mxu3 %v6579_v24  ;;  %4670 = vmatpush.msrb.mxu0 %v6586_v28 }
 0xe9f   :  { %4554 = vmatmul.f32.vlgmr.msra.gmra.mxu0 %v4451_v51  ;;  %4703 = vmatmul.f32.vlgmr.msrb.gmra.mxu1 %v7274_v49  ;;  %v7705_v49 = vld [vmem:[#allocation21_spill] sm:$0xff] }
 0xea0   :  { %4673 = vmatpush.msrb.mxu0 %v6594_v32  ;;  %4866 = vmatpush.msra.mxu1 %v7691_v63 }
 0xea1   :  { %4736 = vmatmul.f32.vlgmr.msrb.gmra.mxu2 %v7266_v44  ;;  %4921 = vmatpush.msra.mxu3 %v7692_v52 }
 0xea2   :  { %4895 = vmatpush.msra.mxu2 %v7693_v2  ;;  %4872 = vmatpush.msra.mxu1 %v7694_v59 }
 0xea3   :  { %4761 = vmatmul.f32.vlgmr.msrb.gmra.mxu3 %v7266_v44  ;;  %4821 = vmatpush.msra.mxu0 %v7692_v52  ;;  %v7702_v44 = vld [vmem:[#allocation5_spill] sm:$0xff] }
 0xea4   :  { %4898 = vmatpush.msra.mxu2 %v7695_v14  ;;  %4923 = vmatpush.msra.mxu3 %v7696_v50 }
 0xea5   :  { %4981 = vmatpush.msrb.mxu1 %v7692_v52  ;;  %4823 = vmatpush.msra.mxu0 %v7696_v50 }
 0xea6   :  { %4901 = vmatpush.msra.mxu2 %v7697_v58  ;;  %4925 = vmatpush.msra.mxu3 %v7698_v0 }
 0xea7   :  { %4676 = vmatmul.f32.vlgmr.msrb.gmra.mxu0 %v7269_v36  ;;  %4983 = vmatpush.msrb.mxu1 %v7696_v50  ;;  %v7704_v36 = vld [vmem:[#allocation6_spill] sm:$0xff] }
 0xea8   :  { %4927 = vmatpush.msra.mxu3 %v7699_v11  ;;  %5011 = vmatpush.msrb.mxu2 %v6700_v26 }
 0xea9   :  { %4825 = vmatpush.msra.mxu0 %v7698_v0  ;;  %4985 = vmatpush.msrb.mxu1 %v7698_v0 }
 0xeaa   :  { %5013 = vmatpush.msrb.mxu2 %v6706_v5  ;;  %5044 = vmatpush.msrb.mxu3 %v7700_v62 }
 0xeab   :  { %4827 = vmatpush.msra.mxu0 %v7699_v11  ;;  %4987 = vmatpush.msrb.mxu1 %v7699_v11 }
 0xeac   :  { %5015 = vmatpush.msrb.mxu2 %v6718_v12  ;;  %5050 = vmatpush.msrb.mxu3 %v7701_v61 }
 0xead   :  { %4950 = vmatpush.msrb.mxu0 %v7702_v44 }
 0xeae   :  { %5017 = vmatpush.msrb.mxu2 %v6732_v30  ;;  %5056 = vmatpush.msrb.mxu3 %v7703_v40 }
 0xeaf   :  { %4954 = vmatpush.msrb.mxu0 %v7704_v36 }
 0xeb0   :  { %5062 = vmatpush.msrb.mxu3 %v7705_v49 }
 0xeb1   :  { %4958 = vmatpush.msrb.mxu0 %v7706_v46 }
 0xeb3   :  { %4962 = vmatpush.msrb.mxu0 %v7707_v29 }
 0xef4   :  { %v4083_v10 = vpop.f32.mrf.mxu1 }
 0xefc   :  { %v4042_v25 = vpop.f32.mrf.mxu0  ;;  %v4113_v47 = vpop.f32.mrf.mxu2 }
 0xefd   :  { %v4198_v7 = vpop.f32.mrf.mxu1  ;;  %v4043_v42 = vadd.f32 %v7122_v17, %v4042_v25 }
 0xefe   :  { %v4140_v51 = vpop.f32.mrf.mxu3 }
 0xeff   :  { %v4084_v38 = vadd.f32 %v4083_v10, %v4043_v42 }
 0xf01   :  { %v4114_v40 = vadd.f32 %v4113_v47, %v4084_v38 }
 0xf03   :  { %v4141_v36 = vadd.f32 %v4140_v51, %v4114_v40  ;;  %v7372_v40 = vld [vmem:[%s7560_s2] ss:$0 sm:$0xff] }
 0xf04   :  { %v4173_v19 = vpop.f32.mrf.mxu0  ;;  %v4232_v3 = vpop.f32.mrf.mxu2 }
 0xf05   :  { %v4330_v61 = vpop.f32.mrf.mxu1  ;;  %v4174_v29 = vadd.f32 %v4173_v19, %v4141_v36 }
 0xf06   :  { %v4273_v44 = vpop.f32.mrf.mxu3 }
 0xf07   :  { %v4274_v62 = vadd.f32 %v4273_v44, %v4232_v3  ;;  %v4199_v59 = vadd.f32 %v4198_v7, %v4174_v29 }
 0xf0c   :  { %v4303_v49 = vpop.f32.mrf.mxu0  ;;  %v4363_v11 = vpop.f32.mrf.mxu2 }
 0xf0d   :  { %v4304_v46 = vadd.f32 %v4303_v49, %v4274_v62  ;;  %v4483_v14 = vpop.f32.mrf.mxu1 }
 0xf0e   :  { %v4388_v0 = vpop.f32.mrf.mxu3 }
 0xf0f   :  { %v4331_v58 = vadd.f32 %v4330_v61, %v4304_v46 }
 0xf11   :  { %v4364_v50 = vadd.f32 %v4363_v11, %v4331_v58 }
 0xf13   :  { %v4389_v2 = vadd.f32 %v4388_v0, %v4364_v50 }
 0xf14   :  { %v4457_v52 = vpop.f32.mrf.mxu0  ;;  %v4507_v17 = vpop.f32.mrf.mxu2 }
 0xf15   :  { %v4391_v10 = vadd.f32 %v4389_v2, %v4199_v59  ;;  %v4458_v44 = vadd.f32 %v7372_v40, %v4457_v52  ;;  %v4577_v49 = vpop.f32.mrf.mxu1 }
 0xf16   :  { %v4531_v25 = vpop.f32.mrf.mxu3 }
 0xf17   :  { %6333 = vtanh.f32 %v4391_v10  ;;  %v4484_v62 = vadd.f32 %v4483_v14, %v4458_v44  ;;  %v6232_v44 = vmul.f32 -1.442695, %v4391_v10 }
 0xf19   :  { %v4508_v50 = vadd.f32 %v4507_v17, %v4484_v62 }
 0xf1b   :  { %v4532_v11 = vadd.f32 %v4531_v25, %v4508_v50 }
 0xf1c   :  { %v4555_v36 = vpop.f32.mrf.mxu0  ;;  %v4606_v58 = vpop.f32.mrf.mxu2 }
 0xf1d   :  { %v6334_v61 = vpop.eup %6333  ;;  %v4704_v29 = vpop.f32.mrf.mxu1  ;;  %v4556_v47 = vadd.f32 %v4555_v36, %v4532_v11 }
 0xf1e   :  { %4414 = vrot.lane.b32.xlu0 %v6334_v61, %s6377_s14  ;;  %v4647_v0 = vpop.f32.mrf.mxu3 }
 0xf1f   :  { %v4648_v2 = vadd.f32 %v4647_v0, %v4606_v58  ;;  %v4578_v52 = vadd.f32 %v4577_v49, %v4556_v47 }
 0xf24   :  { %v4677_v59 = vpop.f32.mrf.mxu0  ;;  %v4737_v51 = vpop.f32.mrf.mxu2 }
 0xf25   :  { %v4678_v46 = vadd.f32 %v4677_v59, %v4648_v2 }
 0xf26   :  { %v4762_v38 = vpop.f32.mrf.mxu3 }
 0xf27   :  { %v4705_v7 = vadd.f32 %v4704_v29, %v4678_v46 }
 0xf29   :  { %v4738_v42 = vadd.f32 %v4737_v51, %v4705_v7 }
 0xf2b   :  { %v4763_v14 = vadd.f32 %v4762_v38, %v4738_v42 }
 0xf2d   :  { %v4765_v19 = vadd.f32 %v4763_v14, %v4578_v52 }
 0xf2f   :  { %6335 = vtanh.f32 %v4765_v19  ;;  %v6234_v17 = vmul.f32 -1.442695, %v4765_v19 }
 0xf30   :  { %6337 = vpow2.f32 %v6232_v44 }
 0xf31   :  { %6339 = vpow2.f32 %v6234_v17 }
 0xf35   :  { %v6336_v3 = vpop.eup %6335 }
 0xf36   :  { %4788 = vrot.lane.b32.xlu2 %v6336_v3, %s6377_s14  ;;  %v6338_v25 = vpop.eup %6337 }
 0xf37   :  { %v6340_v62 = vpop.eup %6339  ;;  %v4395_v61 = vadd.f32 1.0, %v6338_v25 }
 0xf38   :  { %v4769_v58 = vadd.f32 1.0, %v6340_v62 }
 0xf39   :  { %6341 = vrcp.f32 %v4395_v61  ;;  %vm4401_vm7 = vweird.f32 %v4395_v61  ;;  %v4407_v7 = vand.u32 2147483648, %v4395_v61  ;;  %v4405_v42 = vand.u32 2147483647, %v4395_v61 }
 0xf3a   :  { %6343 = vrcp.f32 %v4769_v58  ;;  %v4781_v47 = vand.u32 2147483648, %v4769_v58  ;;  %vm4775_vm8 = vweird.f32 %v4769_v58  ;;  %v4779_v51 = vand.u32 2147483647, %v4769_v58 }
 0xf3b   :  { %v4408_v19 = vor.u32 1.1754944e-38, %v4407_v7  ;;  %vm4406_vm12 = vcmp.eq.f32.partialorder %v4405_v42, 8.507059e+37 }
 0xf3c   :  { %v4782_v14 = vor.u32 1.1754944e-38, %v4781_v47  ;;  %vm4780_vm11 = vcmp.eq.f32.partialorder %v4779_v51, 8.507059e+37 }
 0xf3f   :  { %v6342_v36 = vpop.eup %6341 }
 0xf40   :  { %v6344_v50 = vpop.eup %6343  ;;  %v4397_v49 = vmul.f32 %v6342_v36, %v4395_v61  ;;  %vm4402_vm4 = vweird.f32 %v6342_v36 }
 0xf41   :  { %v4771_v0 = vmul.f32 %v6344_v50, %v4769_v58  ;;  %vm4776_vm5 = vweird.f32 %v6344_v50  ;;  %vm4403_vm9 = vmor %vm4401_vm7, %vm4402_vm4 }
 0xf42   :  { %v4398_v2 = vsub.f32 1.0, %v4397_v49  ;;  %vm4777_vm10 = vmor %vm4775_vm8, %vm4776_vm5 }
 0xf43   :  { %v4772_v11 = vsub.f32 1.0, %v4771_v0 }
 0xf44   :  { %v4399_v46 = vmul.f32 %v6342_v36, %v4398_v2 }
 0xf45   :  { %v4773_v59 = vmul.f32 %v6344_v50, %v4772_v11 }
 0xf46   :  { %v4400_v10 = vadd.f32 %v6342_v36, %v4399_v46 }
 0xf47   :  { %v4774_v29 = vadd.f32 %v6344_v50, %v4773_v59 }
 0xf48   :  { %v4404_v52 = vsel %vm4403_vm9, %v6342_v36, %v4400_v10 }
 0xf49   :  { %v4778_v38 = vsel %vm4777_vm10, %v6344_v50, %v4774_v29  ;;  %v4409_v25 = vsel %vm4406_vm12, %v4408_v19, %v4404_v52 }
 0xf4a   :  { %v4783_v44 = vsel %vm4780_vm11, %v4782_v14, %v4778_v38  ;;  %v4412_v58 = vmul.f32 %v4409_v25, %v7256_v57 }
 0xf4b   :  { %v4786_v50 = vmul.f32 %v4783_v44, %v7254_v60 }
 0xf90   :  { %v4789_v3 = vpop.permute.xlu2 %4788  ;;  %v4415_v17 = vpop.permute.xlu0 %4414 }
 0xf91   :  { %v4791_v62 = vmul.f32 %v4789_v3, %v4783_v44  ;;  %v4417_v0 = vmul.f32 %v4415_v17, %v4409_v25 }
 0xf93   :  { %4793 = vrot.lane.b32.xlu1 %v4791_v62, %s6378_s15  ;;  %4419 = vrot.lane.b32.xlu2 %v4417_v0, %s6378_s15  ;;  %v6236_v62 = vld [vmem:[%s7559_s0 + $0x38] sm:$0xff] }
 0xfed   :  { %v4420_v61 = vpop.permute.xlu2 %4419 }
 0xfee   :  { %v7380_v49 = vadd.f32 %v4420_v61, %v4412_v58  ;;  %v5224_v58 = vsel %vm54_vm1, %v6236_v62, 0 }
 0xfef   :  { %v5243_v61 = vand.u32 4294901760, %v5224_v58 }
 0xff0   :  { %6345 = vtanh.f32 %v7380_v49 }
 0xff6   :  { %v6346_v36 = vpop.eup %6345 }
 0xff7   :  { %4425 = vrot.lane.b32.xlu1 %v6346_v36, %s6377_s14 }
0x1005   :  { %v4794_v11 = vpop.permute.xlu1 %4793 }
0x1006   :  { %v7385_v2 = vadd.f32 %v4794_v11, %v4786_v50  ;;  %v7498_v50 = vld [vmem:[%s7563_s6] ss:$0 sm:$0xff] }
0x1008   :  { %6347 = vtanh.f32 %v7385_v2 }
0x100e   :  { %v6348_v59 = vpop.eup %6347 }
0x100f   :  { %4799 = vrot.lane.b32.xlu0 %v6348_v59, %s6377_s14 }
0x1069   :  { %v4426_v46 = vpop.permute.xlu1 %4425 }
0x106a   :  { %v4428_v57 = vmul.f32 %v4426_v46, %v4409_v25 }
0x106c   :  { %4994 = vrot.lane.b32.xlu0 %v4428_v57, %s6378_s15 }
0x1081   :  { %v4800_v29 = vpop.permute.xlu0 %4799 }
0x1082   :  { %v4802_v10 = vmul.f32 %v4800_v29, %v4783_v44 }
0x1084   :  { %4804 = vrot.lane.b32.xlu2 %v4802_v10, %s6378_s15 }
0x10de   :  { %v4805_v47 = vpop.permute.xlu2 %4804  ;;  %v4995_v7 = vpop.permute.xlu0 %4994 }
0x10df   :  { %v4806_v60 = vsel %vm242_vm6, %v4805_v47, 0  ;;  %v4996_v51 = vsel %vm242_vm6, %v4995_v7, 0 }
0x10e0   :  { %v7393_v42 = vand.u32 4294901760, %v4806_v60  ;;  %v5018_v38 = vand.u32 4294901760, %v4996_v51 }
0x10e2   :  { %v7396_v52 = vsub.f32 %v4806_v60, %v7393_v42  ;;  %v5019_v14 = vsub.f32 %v4996_v51, %v5018_v38  ;;  %4874 = vmatmul.f32.vlgmr.msra.gmra.mxu1 %v7393_v42 }
0x10e3   :  { %5111 = vmatpush.msra.mxu1 %v6700_v26 }
0x10e4   :  { %v7401_v19 = vand.u32 4294901760, %v7396_v52  ;;  %v5020_v3 = vand.u32 4294901760, %v5019_v14  ;;  %4904 = vmatmul.f32.vlgmr.msra.gmra.mxu2 %v7396_v52 }
0x10e5   :  { %5113 = vmatpush.msra.mxu1 %v6706_v5  ;;  %5140 = vmatpush.msra.mxu2 %v7643_v1 }
0x10e6   :  { %v4831_v44 = vsub.f32 %v7396_v52, %v7401_v19  ;;  %v5021_v17 = vsub.f32 %v5019_v14, %v5020_v3  ;;  %4931 = vmatmul.f32.vlgmr.msra.gmra.mxu3 %v7401_v19 }
0x10e7   :  { %5115 = vmatpush.msra.mxu1 %v6718_v12  ;;  %5144 = vmatpush.msra.mxu2 %v6730_v22 }
0x10e8   :  { %v4832_v25 = vand.u32 4294901760, %v4831_v44  ;;  %5171 = vmatpush.msra.mxu3 %v6700_v26  ;;  %v5022_v0 = vand.u32 4294901760, %v5021_v17 }
0x10e9   :  { %5117 = vmatpush.msra.mxu1 %v6732_v30  ;;  %5148 = vmatpush.msra.mxu2 %v6743_v37 }
0x10ea   :  { %4833 = vmatmul.f32.vlgmr.msra.gmra.mxu0 %v4832_v25  ;;  %4989 = vmatmul.f32.vlgmr.msrb.gmra.mxu1 %v7393_v42 }
0x10eb   :  { %5173 = vmatpush.msra.mxu3 %v6706_v5  ;;  %5082 = vmatpush.msra.mxu0 %v6709_v8 }
0x10ec   :  { %5023 = vmatmul.f32.vlgmr.msrb.gmra.mxu2 %v5022_v0  ;;  %5272 = vmatpush.msrb.mxu1 %v6451_v13  ;;  %v5244_v13 = vsub.f32 %v5224_v58, %v5243_v61 }
0x10ed   :  { %5152 = vmatpush.msra.mxu2 %v6754_v43  ;;  %5175 = vmatpush.msra.mxu3 %v6718_v12 }
0x10ee   :  { %5064 = vmatmul.f32.vlgmr.msrb.gmra.mxu3 %v5018_v38  ;;  %5085 = vmatpush.msra.mxu0 %v6721_v16  ;;  %v5245_v36 = vand.u32 4294901760, %v5244_v13 }
0x10ef   :  { %5177 = vmatpush.msra.mxu3 %v6732_v30  ;;  %5295 = vmatpush.msrb.mxu2 %v6440_v6 }
0x10f0   :  { %5088 = vmatpush.msra.mxu0 %v6735_v34  ;;  %v5246_v6 = vsub.f32 %v5244_v13, %v5245_v36 }
0x10f1   :  { %5318 = vmatpush.msrb.mxu3 %v6437_v4 }
0x10f2   :  { %4964 = vmatmul.f32.vlgmr.msrb.gmra.mxu0 %v7393_v42  ;;  %5121 = vmatmul.f32.vlgmr.msra.gmra.mxu1 %v5020_v3 }
0x10f3   :  { %5091 = vmatpush.msra.mxu0 %v6746_v33  ;;  %5366 = vmatpush.msra.mxu1 %v6437_v4 }
0x10f4   :  { %5154 = vmatmul.f32.vlgmr.msra.gmra.mxu2 %v5018_v38 }
0x10f5   :  { %5242 = vmatpush.msrb.mxu0 %v6437_v4  ;;  %5385 = vmatpush.msra.mxu2 %v6561_v15  ;;  %v5247_v4 = vand.u32 4294901760, %v5246_v6 }
0x10f6   :  { %5179 = vmatmul.f32.vlgmr.msra.gmra.mxu3 %v5018_v38 }
0x10f7   :  { %5387 = vmatpush.msra.mxu2 %v6566_v18  ;;  %5418 = vmatpush.msra.mxu3 %v6610_v41 }
0x10f9   :  { %5389 = vmatpush.msra.mxu2 %v6574_v21  ;;  %5424 = vmatpush.msra.mxu3 %v6615_v45 }
0x10fa   :  { %5094 = vmatmul.f32.vlgmr.msra.gmra.mxu0 %v5019_v14  ;;  %5274 = vmatmul.f32.vlgmr.msrb.gmra.mxu1 %v5243_v61 }
0x10fb   :  { %5344 = vmatpush.msra.mxu0 %v6446_v9  ;;  %5391 = vmatpush.msra.mxu2 %v6579_v24  ;;  %v7708_v9 = vld [vmem:[#allocation2_spill] sm:$0xff] }
0x10fc   :  { %5298 = vmatmul.f32.vlgmr.msrb.gmra.mxu2 %v5244_v13  ;;  %5430 = vmatpush.msra.mxu3 %v6622_v53 }
0x10fd   :  { %5485 = vmatpush.msrb.mxu1 %v6561_v15  ;;  %5514 = vmatpush.msrb.mxu2 %v6583_v27  ;;  %v7718_v27 = vld [vmem:[#allocation5_spill] sm:$0xff] }
0x10fe   :  { %5322 = vmatmul.f32.vlgmr.msrb.gmra.mxu3 %v5245_v36 }
0x10ff   :  { %5436 = vmatpush.msra.mxu3 %v6626_v56  ;;  %5487 = vmatpush.msrb.mxu1 %v6566_v18 }
0x1100   :  { %5518 = vmatpush.msrb.mxu2 %v6591_v31  ;;  %v7720_v31 = vld [vmem:[#allocation6_spill] sm:$0xff] }
0x1101   :  { %5545 = vmatpush.msrb.mxu3 %v6561_v15  ;;  %5489 = vmatpush.msrb.mxu1 %v6574_v21  ;;  %v7712_v15 = vld [vmem:[#allocation3_spill] sm:$0xff] }
0x1102   :  { %5248 = vmatmul.f32.vlgmr.msrb.gmra.mxu0 %v5247_v4  ;;  %5368 = vmatmul.f32.vlgmr.msra.gmra.mxu1 %v5243_v61 }
0x1103   :  { %5491 = vmatpush.msrb.mxu1 %v6579_v24  ;;  %5522 = vmatpush.msrb.mxu2 %v6602_v35  ;;  %v7722_v35 = vld [vmem:[#allocation10_spill] sm:$0xff] }
0x1104   :  { %5397 = vmatmul.f32.vlgmr.msra.gmra.mxu2 %v4832_v25  ;;  %5547 = vmatpush.msrb.mxu3 %v6566_v18  ;;  %v7713_v18 = vld [vmem:[#allocation11_spill] sm:$0xff] }
0x1105   :  { %5456 = vmatpush.msrb.mxu0 %v6572_v20  ;;  %5526 = vmatpush.msrb.mxu2 %v6608_v39  ;;  %v7714_v20 = vld [vmem:[#allocation7_spill] sm:$0xff]  ;;  %v7723_v39 = vld [vmem:[#allocation12_spill] sm:$0xff] }
0x1106   :  { %5438 = vmatmul.f32.vlgmr.msra.gmra.mxu3 %v7393_v42  ;;  %5646 = vmatpush.msra.mxu1 %v6496_v54  ;;  %v7709_v54 = vld [vmem:[#allocation4_spill] sm:$0xff] }
0x1107   :  { %5549 = vmatpush.msrb.mxu3 %v6574_v21  ;;  %5459 = vmatpush.msrb.mxu0 %v6577_v23  ;;  %v7715_v21 = vld [vmem:[#allocation9_spill] sm:$0xff]  ;;  %v7716_v23 = vld [vmem:[#allocation18_spill] sm:$0xff] }
0x1108   :  { %5652 = vmatpush.msra.mxu1 %v6498_v55  ;;  %5684 = vmatpush.msra.mxu2 %v6475_v48  ;;  %v7710_v55 = vld [vmem:[#allocation14_spill] sm:$0xff]  ;;  %v7711_v48 = vld [vmem:[#allocation8_spill] sm:$0xff] }
0x1109   :  { %5551 = vmatpush.msrb.mxu3 %v6579_v24  ;;  %5462 = vmatpush.msrb.mxu0 %v6586_v28  ;;  %v7717_v24 = vld [vmem:[#allocation19_spill] sm:$0xff]  ;;  %v7719_v28 = vld [vmem:[#allocation20_spill] sm:$0xff] }
0x110a   :  { %5346 = vmatmul.f32.vlgmr.msra.gmra.mxu0 %v5243_v61  ;;  %5495 = vmatmul.f32.vlgmr.msrb.gmra.mxu1 %v7401_v19 }
0x110b   :  { %5465 = vmatpush.msrb.mxu0 %v6594_v32  ;;  %5658 = vmatpush.msra.mxu1 %v7691_v63  ;;  %v7721_v32 = vld [vmem:[#allocation21_spill] sm:$0xff] }
0x110c   :  { %5528 = vmatmul.f32.vlgmr.msrb.gmra.mxu2 %v7393_v42  ;;  %5713 = vmatpush.msra.mxu3 %v7708_v9 }
0x110d   :  { %5687 = vmatpush.msra.mxu2 %v7709_v54  ;;  %5664 = vmatpush.msra.mxu1 %v7710_v55 }
0x110e   :  { %5553 = vmatmul.f32.vlgmr.msrb.gmra.mxu3 %v7393_v42  ;;  %5613 = vmatpush.msra.mxu0 %v7708_v9 }
0x110f   :  { %5690 = vmatpush.msra.mxu2 %v7711_v48  ;;  %5715 = vmatpush.msra.mxu3 %v7712_v15 }
0x1110   :  { %5773 = vmatpush.msrb.mxu1 %v7708_v9  ;;  %5615 = vmatpush.msra.mxu0 %v7712_v15 }
0x1111   :  { %5693 = vmatpush.msra.mxu2 %v7713_v18  ;;  %5717 = vmatpush.msra.mxu3 %v7714_v20 }
0x1112   :  { %5468 = vmatmul.f32.vlgmr.msrb.gmra.mxu0 %v7396_v52  ;;  %5775 = vmatpush.msrb.mxu1 %v7712_v15 }
0x1113   :  { %5719 = vmatpush.msra.mxu3 %v7715_v21  ;;  %5803 = vmatpush.msrb.mxu2 %v6700_v26 }
0x1114   :  { %5617 = vmatpush.msra.mxu0 %v7714_v20  ;;  %5777 = vmatpush.msrb.mxu1 %v7714_v20 }
0x1115   :  { %5805 = vmatpush.msrb.mxu2 %v6706_v5  ;;  %5836 = vmatpush.msrb.mxu3 %v7716_v23 }
0x1116   :  { %5619 = vmatpush.msra.mxu0 %v7715_v21  ;;  %5779 = vmatpush.msrb.mxu1 %v7715_v21 }
0x1117   :  { %5807 = vmatpush.msrb.mxu2 %v6718_v12  ;;  %5842 = vmatpush.msrb.mxu3 %v7717_v24 }
0x1118   :  { %5742 = vmatpush.msrb.mxu0 %v7718_v27 }
0x1119   :  { %5809 = vmatpush.msrb.mxu2 %v6732_v30  ;;  %5848 = vmatpush.msrb.mxu3 %v7719_v28 }
0x111a   :  { %5746 = vmatpush.msrb.mxu0 %v7720_v31 }
0x111b   :  { %5854 = vmatpush.msrb.mxu3 %v7721_v32 }
0x111c   :  { %5750 = vmatpush.msrb.mxu0 %v7722_v35 }
0x111e   :  { %5754 = vmatpush.msrb.mxu0 %v7723_v39 }
0x115f   :  { %v4875_v41 = vpop.f32.mrf.mxu1 }
0x1167   :  { %v4834_v45 = vpop.f32.mrf.mxu0  ;;  %v4905_v53 = vpop.f32.mrf.mxu2 }
0x1168   :  { %v4990_v56 = vpop.f32.mrf.mxu1  ;;  %v4835_v11 = vadd.f32 %v7498_v50, %v4834_v45 }
0x1169   :  { %v4932_v63 = vpop.f32.mrf.mxu3 }
0x116a   :  { %v4876_v59 = vadd.f32 %v4875_v41, %v4835_v11 }
0x116c   :  { %v4906_v10 = vadd.f32 %v4905_v53, %v4876_v59 }
0x116e   :  { %v4933_v7 = vadd.f32 %v4932_v63, %v4906_v10 }
0x116f   :  { %v4965_v46 = vpop.f32.mrf.mxu0  ;;  %v5024_v57 = vpop.f32.mrf.mxu2 }
0x1170   :  { %v5122_v47 = vpop.f32.mrf.mxu1  ;;  %v4966_v14 = vadd.f32 %v4965_v46, %v4933_v7 }
0x1171   :  { %v5065_v29 = vpop.f32.mrf.mxu3 }
0x1172   :  { %v5066_v60 = vadd.f32 %v5065_v29, %v5024_v57  ;;  %v4991_v17 = vadd.f32 %v4990_v56, %v4966_v14 }
0x1177   :  { %v5095_v51 = vpop.f32.mrf.mxu0  ;;  %v5155_v42 = vpop.f32.mrf.mxu2 }
0x1178   :  { %v5096_v38 = vadd.f32 %v5095_v51, %v5066_v60  ;;  %v5275_v44 = vpop.f32.mrf.mxu1 }
0x1179   :  { %v5180_v52 = vpop.f32.mrf.mxu3 }
0x117a   :  { %v5123_v19 = vadd.f32 %v5122_v47, %v5096_v38 }
0x117c   :  { %v5156_v3 = vadd.f32 %v5155_v42, %v5123_v19 }
0x117e   :  { %v5181_v25 = vadd.f32 %v5180_v52, %v5156_v3 }
0x117f   :  { %v5249_v62 = vpop.f32.mrf.mxu0  ;;  %v5299_v0 = vpop.f32.mrf.mxu2 }
0x1180   :  { %v5183_v58 = vadd.f32 %v5181_v25, %v4991_v17  ;;  %v5250_v13 = vadd.f32 %v7372_v40, %v5249_v62  ;;  %v5369_v6 = vpop.f32.mrf.mxu1 }
0x1181   :  { %v5323_v61 = vpop.f32.mrf.mxu3 }
0x1182   :  { %6349 = vtanh.f32 %v5183_v58  ;;  %v5276_v36 = vadd.f32 %v5275_v44, %v5250_v13  ;;  %v6235_v45 = vmul.f32 -1.442695, %v5183_v58 }
0x1184   :  { %v5300_v55 = vadd.f32 %v5299_v0, %v5276_v36 }
0x1186   :  { %v5324_v15 = vadd.f32 %v5323_v61, %v5300_v55 }
0x1187   :  { %v5347_v4 = vpop.f32.mrf.mxu0  ;;  %v5398_v54 = vpop.f32.mrf.mxu2 }
0x1188   :  { %v6350_v9 = vpop.eup %6349  ;;  %v5496_v23 = vpop.f32.mrf.mxu1  ;;  %v5348_v24 = vadd.f32 %v5347_v4, %v5324_v15 }
0x1189   :  { %5206 = vrot.lane.b32.xlu2 %v6350_v9, %s6377_s14  ;;  %v5439_v48 = vpop.f32.mrf.mxu3 }
0x118a   :  { %v5440_v18 = vadd.f32 %v5439_v48, %v5398_v54  ;;  %v5370_v40 = vadd.f32 %v5369_v6, %v5348_v24 }
0x118f   :  { %v5469_v20 = vpop.f32.mrf.mxu0  ;;  %v5529_v28 = vpop.f32.mrf.mxu2 }
0x1190   :  { %v5470_v21 = vadd.f32 %v5469_v20, %v5440_v18 }
0x1191   :  { %v5554_v32 = vpop.f32.mrf.mxu3 }
0x1192   :  { %v5497_v27 = vadd.f32 %v5496_v23, %v5470_v21 }
0x1194   :  { %v5530_v31 = vadd.f32 %v5529_v28, %v5497_v27 }
0x1196   :  { %v5555_v35 = vadd.f32 %v5554_v32, %v5530_v31 }
0x1198   :  { %v5557_v39 = vadd.f32 %v5555_v35, %v5370_v40 }
0x119a   :  { %6351 = vtanh.f32 %v5557_v39  ;;  %v6237_v38 = vmul.f32 -1.442695, %v5557_v39 }
0x119b   :  { %6353 = vpow2.f32 %v6235_v45 }
0x11a0   :  { %v6352_v41 = vpop.eup %6351 }
0x11a1   :  { %5580 = vrot.lane.b32.xlu1 %v6352_v41, %s6377_s14  ;;  %v6354_v53 = vpop.eup %6353 }
0x11a2   :  { %v5187_v56 = vadd.f32 1.0, %v6354_v53 }
0x11a4   :  { %6355 = vrcp.f32 %v5187_v56  ;;  %v5199_v29 = vand.u32 2147483648, %v5187_v56  ;;  %vm5193_vm13 = vweird.f32 %v5187_v56  ;;  %v5197_v10 = vand.u32 2147483647, %v5187_v56 }
0x11a5   :  { %6357 = vpow2.f32 %v6237_v38 }
0x11a6   :  { %v5200_v7 = vor.u32 1.1754944e-38, %v5199_v29  ;;  %vm5198_vm15 = vcmp.eq.f32.partialorder %v5197_v10, 8.507059e+37 }
0x11aa   :  { %v6356_v63 = vpop.eup %6355 }
0x11ab   :  { %v5189_v11 = vmul.f32 %v6356_v63, %v5187_v56  ;;  %vm5194_vm1 = vweird.f32 %v6356_v63  ;;  %v6358_v52 = vpop.eup %6357 }
0x11ac   :  { %vm5195_vm14 = vmor %vm5193_vm13, %vm5194_vm1  ;;  %v5561_v14 = vadd.f32 1.0, %v6358_v52 }
0x11ad   :  { %v5190_v59 = vsub.f32 1.0, %v5189_v11 }
0x11ae   :  { %6359 = vrcp.f32 %v5561_v14  ;;  %v5573_v62 = vand.u32 2147483648, %v5561_v14  ;;  %vm5567_vm2 = vweird.f32 %v5561_v14  ;;  %v5571_v0 = vand.u32 2147483647, %v5561_v14 }
0x11af   :  { %v5191_v46 = vmul.f32 %v6356_v63, %v5190_v59 }
0x11b0   :  { %v5574_v61 = vor.u32 1.1754944e-38, %v5573_v62  ;;  %vm5572_vm4 = vcmp.eq.f32.partialorder %v5571_v0, 8.507059e+37 }
0x11b1   :  { %v5192_v57 = vadd.f32 %v6356_v63, %v5191_v46 }
0x11b3   :  { %v5196_v47 = vsel %vm5195_vm14, %v6356_v63, %v5192_v57 }
0x11b4   :  { %v5201_v51 = vsel %vm5198_vm15, %v5200_v7, %v5196_v47  ;;  %v6360_v19 = vpop.eup %6359 }
0x11b5   :  { %v5563_v3 = vmul.f32 %v6360_v19, %v5561_v14  ;;  %vm5568_vm0 = vweird.f32 %v6360_v19  ;;  %v5204_v4 = vmul.f32 %v5201_v51, %v7380_v49 }
0x11b6   :  { %vm5569_vm3 = vmor %vm5567_vm2, %vm5568_vm0 }
0x11b7   :  { %v5564_v44 = vsub.f32 1.0, %v5563_v3 }
0x11b9   :  { %v5565_v17 = vmul.f32 %v6360_v19, %v5564_v44 }
0x11bb   :  { %v5566_v25 = vadd.f32 %v6360_v19, %v5565_v17 }
0x11bd   :  { %v5570_v58 = vsel %vm5569_vm3, %v6360_v19, %v5566_v25 }
0x11be   :  { %v5575_v36 = vsel %vm5572_vm4, %v5574_v61, %v5570_v58 }
0x11bf   :  { %v5578_v48 = vmul.f32 %v5575_v36, %v7385_v2 }
0x11e3   :  { %v5207_v60 = vpop.permute.xlu2 %5206 }
0x11e4   :  { %v5209_v42 = vmul.f32 %v5207_v60, %v5201_v51 }
0x11e6   :  { %5211 = vrot.lane.b32.xlu1 %v5209_v42, %s6378_s15 }
0x1213   :  { %v5581_v13 = vpop.permute.xlu1 %5580 }
0x1214   :  { %v5583_v6 = vmul.f32 %v5581_v13, %v5575_v36 }
0x1216   :  { %5585 = vrot.lane.b32.xlu0 %v5583_v6, %s6378_s15 }
0x1258   :  { %v5212_v9 = vpop.permute.xlu1 %5211 }
0x1259   :  { %v7507_v54 = vadd.f32 %v5212_v9, %v5204_v4 }
0x125b   :  { %6361 = vtanh.f32 %v7507_v54 }
0x1261   :  { %v6362_v55 = vpop.eup %6361 }
0x1262   :  { %5217 = vrot.lane.b32.xlu0 %v6362_v55, %s6377_s14 }
0x1288   :  { %v5586_v15 = vpop.permute.xlu0 %5585 }
0x1289   :  { %v5588_v18 = vadd.f32 %v5586_v15, %v5578_v48 }
0x128b   :  { %6363 = vtanh.f32 %v5588_v18 }
0x1291   :  { %v6364_v20 = vpop.eup %6363 }
0x1292   :  { %5591 = vrot.lane.b32.xlu2 %v6364_v20, %s6377_s14  ;;  %v6016_v20 = vld [vmem:[%s7565_s7 + $0x18] sm:$0xff] }
0x12d4   :  { %v5218_v21 = vpop.permute.xlu0 %5217 }
0x12d5   :  { %v5220_v23 = vmul.f32 %v5218_v21, %v5201_v51  ;;  %v6015_v21 = vld [vmem:[%s7565_s7 + $0x10] sm:$0xff] }
0x12d7   :  { %5786 = vrot.lane.b32.xlu2 %v5220_v23, %s6378_s15  ;;  %v6038_v23 = vand.u32 4294901760, %v6016_v20 }
0x12ec   :  { %v5592_v49 = vpop.permute.xlu2 %5591 }
0x12ed   :  { %v5594_v24 = vmul.f32 %v5592_v49, %v5575_v36  ;;  %v6040_v49 = vand.u32 4294901760, %v6015_v21 }
0x12ef   :  { %5596 = vrot.lane.b32.xlu1 %v5594_v24, %s6378_s15  ;;  %v6068_v24 = vsub.f32 %v6016_v20, %v6038_v23 }
0x1331   :  { %v5787_v27 = vpop.permute.xlu2 %5786 }
0x1332   :  { %v5788_v28 = vsel %vm242_vm6, %v5787_v27, 0  ;;  %v6074_v27 = vsub.f32 %v6015_v21, %v6040_v49 }
0x1333   :  { %v5810_v31 = vand.u32 4294901760, %v5788_v28 }
0x1335   :  { %v5811_v32 = vsub.f32 %v5788_v28, %v5810_v31  ;;  %v6075_v28 = vand.u32 4294901760, %v6074_v27 }
0x1337   :  { %v5812_v39 = vand.u32 4294901760, %v5811_v32 }
0x1339   :  { %v5813_v53 = vsub.f32 %v5811_v32, %v5812_v39 }
0x133b   :  { %v5814_v11 = vand.u32 4294901760, %v5813_v53  ;;  %v6013_v53 = vld [vmem:[%s7565_s7] sm:$0xff] }
0x1361   :  { %v5597_v2 = vpop.permute.xlu1 %5596 }
0x1362   :  { %v5598_v40 = vsel %vm242_vm6, %v5597_v2, 0 }
0x1363   :  { %v5620_v35 = vand.u32 4294901760, %v5598_v40 }
0x1365   :  { %v5621_v41 = vsub.f32 %v5598_v40, %v5620_v35  ;;  %5666 = vmatmul.f32.vlgmr.msra.gmra.mxu1 %v5620_v35 }
0x1366   :  { %5903 = vmatpush.msra.mxu1 %v6700_v26 }
0x1367   :  { %v5622_v45 = vand.u32 4294901760, %v5621_v41  ;;  %5696 = vmatmul.f32.vlgmr.msra.gmra.mxu2 %v5621_v41 }
0x1368   :  { %5905 = vmatpush.msra.mxu1 %v6706_v5  ;;  %5932 = vmatpush.msra.mxu2 %v7643_v1 }
0x1369   :  { %v5623_v56 = vsub.f32 %v5621_v41, %v5622_v45  ;;  %5723 = vmatmul.f32.vlgmr.msra.gmra.mxu3 %v5622_v45  ;;  %v6014_v41 = vld [vmem:[%s7565_s7 + $0x8] sm:$0xff] }
0x136a   :  { %5907 = vmatpush.msra.mxu1 %v6718_v12  ;;  %5936 = vmatpush.msra.mxu2 %v6730_v22  ;;  %v6042_v45 = vand.u32 4294901760, %v6014_v41 }
0x136b   :  { %v5624_v63 = vand.u32 4294901760, %v5623_v56  ;;  %5963 = vmatpush.msra.mxu3 %v6700_v26 }
0x136c   :  { %5909 = vmatpush.msra.mxu1 %v6732_v30  ;;  %5940 = vmatpush.msra.mxu2 %v6743_v37  ;;  %v6080_v56 = vsub.f32 %v6014_v41, %v6042_v45 }
0x136d   :  { %5625 = vmatmul.f32.vlgmr.msra.gmra.mxu0 %v5624_v63  ;;  %5781 = vmatmul.f32.vlgmr.msrb.gmra.mxu1 %v5620_v35  ;;  %v6044_v63 = vand.u32 4294901760, %v6013_v53 }
0x136e   :  { %5965 = vmatpush.msra.mxu3 %v6706_v5  ;;  %5874 = vmatpush.msra.mxu0 %v6709_v8 }
0x136f   :  { %5815 = vmatmul.f32.vlgmr.msrb.gmra.mxu2 %v5814_v11  ;;  %v6081_v11 = vand.u32 4294901760, %v6080_v56 }
0x1370   :  { %5944 = vmatpush.msra.mxu2 %v6754_v43  ;;  %5967 = vmatpush.msra.mxu3 %v6718_v12 }
0x1371   :  { %5856 = vmatmul.f32.vlgmr.msrb.gmra.mxu3 %v5810_v31  ;;  %5877 = vmatpush.msra.mxu0 %v6721_v16 }
0x1372   :  { %5969 = vmatpush.msra.mxu3 %v6732_v30  ;;  %6110 = vmatpush.msrb.mxu2 %v6068_v24 }
0x1373   :  { %5880 = vmatpush.msra.mxu0 %v6735_v34 }
0x1374   :  { %6139 = vmatpush.msrb.mxu3 %v6038_v23  ;;  %6113 = vmatpush.msrb.mxu2 %v6074_v27 }
0x1375   :  { %5756 = vmatmul.f32.vlgmr.msrb.gmra.mxu0 %v5620_v35  ;;  %5913 = vmatmul.f32.vlgmr.msra.gmra.mxu1 %v5812_v39 }
0x1376   :  { %5883 = vmatpush.msra.mxu0 %v6746_v33  ;;  %6141 = vmatpush.msrb.mxu3 %v6040_v49 }
0x1377   :  { %5946 = vmatmul.f32.vlgmr.msra.gmra.mxu2 %v5810_v31 }
0x1378   :  { %6039 = vmatpush.msrb.mxu0 %v6038_v23  ;;  %6143 = vmatpush.msrb.mxu3 %v6042_v45 }
0x1379   :  { %5971 = vmatmul.f32.vlgmr.msra.gmra.mxu3 %v5810_v31  ;;  %6116 = vmatpush.msrb.mxu2 %v6080_v56 }
0x137a   :  { %6041 = vmatpush.msrb.mxu0 %v6040_v49  ;;  %6145 = vmatpush.msrb.mxu3 %v6044_v63 }
0x137c   :  { %6043 = vmatpush.msrb.mxu0 %v6042_v45 }
0x137d   :  { %5886 = vmatmul.f32.vlgmr.msra.gmra.mxu0 %v5811_v32  ;;  %v6076_v32 = vsub.f32 %v6074_v27, %v6075_v28 }
0x137e   :  { %6045 = vmatpush.msrb.mxu0 %v6044_v63 }
0x137f   :  { %v6077_v40 = vand.u32 4294901760, %v6076_v32 }
0x13e2   :  { %v5667_v26 = vpop.f32.mrf.mxu1 }
0x13ea   :  { %v5626_v5 = vpop.f32.mrf.mxu0  ;;  %v5697_v8 = vpop.f32.mrf.mxu2 }
0x13eb   :  { %v5627_v12 = vadd.f32 %v7498_v50, %v5626_v5  ;;  %v5782_v43 = vpop.f32.mrf.mxu1  ;;  %v6082_v5 = vsub.f32 %v6080_v56, %v6081_v11 }
0x13ec   :  { %v5724_v22 = vpop.f32.mrf.mxu3 }
0x13ed   :  { %v5668_v37 = vadd.f32 %v5667_v26, %v5627_v12  ;;  %v6086_v26 = vsub.f32 %v6013_v53, %v6044_v63 }
0x13ef   :  { %v5698_v30 = vadd.f32 %v5697_v8, %v5668_v37  ;;  %v6087_v8 = vand.u32 4294901760, %v6086_v26  ;;  %6119 = vmatpush.msrb.mxu2 %v6086_v26 }
0x13f1   :  { %v5725_v34 = vadd.f32 %v5724_v22, %v5698_v30  ;;  %v6083_v22 = vand.u32 4294901760, %v6082_v5  ;;  %v6088_v12 = vsub.f32 %v6086_v26, %v6087_v8 }
0x13f2   :  { %v5757_v16 = vpop.f32.mrf.mxu0  ;;  %v5816_v1 = vpop.f32.mrf.mxu2 }
0x13f3   :  { %v5914_v33 = vpop.f32.mrf.mxu1  ;;  %v5758_v10 = vadd.f32 %v5757_v16, %v5725_v34  ;;  %v6089_v37 = vand.u32 4294901760, %v6088_v12 }
0x13f4   :  { %v5857_v59 = vpop.f32.mrf.mxu3 }
0x13f5   :  { %v5858_v46 = vadd.f32 %v5857_v59, %v5816_v1  ;;  %v5783_v42 = vadd.f32 %v5782_v43, %v5758_v10 }
0x13fa   :  { %v5887_v57 = vpop.f32.mrf.mxu0  ;;  %v5947_v7 = vpop.f32.mrf.mxu2 }
0x13fb   :  { %v5888_v29 = vadd.f32 %v5887_v57, %v5858_v46  ;;  %v6244_v57 = vld [vmem:[%s7566_s8] ss:$0 sm:$0xff] }
0x13fc   :  { %v5972_v51 = vpop.f32.mrf.mxu3 }
0x13fd   :  { %v5915_v47 = vadd.f32 %v5914_v33, %v5888_v29 }
0x13ff   :  { %v5948_v60 = vadd.f32 %v5947_v7, %v5915_v47 }
0x1401   :  { %v5973_v38 = vadd.f32 %v5972_v51, %v5948_v60 }
0x1403   :  { %v5975_v52 = vadd.f32 %v5973_v38, %v5783_v42 }
0x1405   :  { %6365 = vtanh.f32 %v5975_v52  ;;  %v6238_v14 = vmul.f32 -1.442695, %v5975_v52 }
0x1407   :  { %6367 = vpow2.f32 %v6238_v14 }
0x140b   :  { %v6366_v50 = vpop.eup %6365 }
0x140c   :  { %5998 = vrot.lane.b32.xlu0 %v6366_v50, %s6377_s14 }
0x140d   :  { %v6368_v19 = vpop.eup %6367 }
0x140e   :  { %v5979_v3 = vadd.f32 1.0, %v6368_v19 }
0x1410   :  { %6369 = vrcp.f32 %v5979_v3  ;;  %v5991_v58 = vand.u32 2147483648, %v5979_v3  ;;  %vm5985_vm7 = vweird.f32 %v5979_v3  ;;  %v5989_v61 = vand.u32 2147483647, %v5979_v3 }
0x1412   :  { %v5992_v36 = vor.u32 1.1754944e-38, %v5991_v58  ;;  %vm5990_vm9 = vcmp.eq.f32.partialorder %v5989_v61, 8.507059e+37 }
0x1416   :  { %v6370_v44 = vpop.eup %6369 }
0x1417   :  { %v5981_v17 = vmul.f32 %v6370_v44, %v5979_v3  ;;  %vm5986_vm5 = vweird.f32 %v6370_v44 }
0x1418   :  { %vm5987_vm8 = vmor %vm5985_vm7, %vm5986_vm5 }
0x1419   :  { %v5982_v25 = vsub.f32 1.0, %v5981_v17 }
0x141b   :  { %v5983_v62 = vmul.f32 %v6370_v44, %v5982_v25 }
0x141d   :  { %v5984_v0 = vadd.f32 %v6370_v44, %v5983_v62 }
0x141f   :  { %v5988_v13 = vsel %vm5987_vm8, %v6370_v44, %v5984_v0 }
0x1420   :  { %v5993_v4 = vsel %vm5990_vm9, %v5992_v36, %v5988_v13 }
0x1421   :  { %v5996_v55 = vmul.f32 %v5993_v4, %v7507_v54  ;;  %v6069_v54 = vand.u32 4294901760, %v6068_v24 }
0x1423   :  { %v6070_v31 = vsub.f32 %v6068_v24, %v6069_v54  ;;  %6168 = vmatpush.msra.mxu0 %v6069_v54 }
0x1425   :  { %v6071_v2 = vand.u32 4294901760, %v6070_v31  ;;  %6172 = vmatpush.msra.mxu0 %v6075_v28 }
0x1427   :  { %6072 = vmatpush.msrb.mxu1 %v6071_v2  ;;  %6176 = vmatpush.msra.mxu0 %v6081_v11 }
0x1429   :  { %6078 = vmatpush.msrb.mxu1 %v6077_v40  ;;  %6180 = vmatpush.msra.mxu0 %v6087_v8 }
0x142b   :  { %6084 = vmatpush.msrb.mxu1 %v6083_v22 }
0x142d   :  { %6090 = vmatpush.msrb.mxu1 %v6089_v37 }
0x142f   :  { %6199 = vmatpush.msra.mxu1 %v6038_v23 }
0x1431   :  { %6201 = vmatpush.msra.mxu1 %v6040_v49 }
0x1433   :  { %6203 = vmatpush.msra.mxu1 %v6042_v45 }
0x1435   :  { %6205 = vmatpush.msra.mxu1 %v6044_v63 }
0x147e   :  { %v5999_v6 = vpop.permute.xlu0 %5998 }
0x147f   :  { %v6001_v9 = vmul.f32 %v5999_v6, %v5993_v4 }
0x1481   :  { %6003 = vrot.lane.b32.xlu1 %v6001_v9, %s6378_s15 }
0x14f3   :  { %v6004_v48 = vpop.permute.xlu1 %6003 }
0x14f4   :  { %v6006_v15 = vadd.f32 %v6004_v48, %v5996_v55 }
0x14f6   :  { %6371 = vtanh.f32 %v6006_v15 }
0x14fc   :  { %v6372_v18 = vpop.eup %6371 }
0x14fd   :  { %6009 = vrot.lane.b32.xlu2 %v6372_v18, %s6377_s14 }
0x1557   :  { %v6010_v35 = vpop.permute.xlu2 %6009 }
0x1558   :  { %v6012_v39 = vmul.f32 %v6010_v35, %v5993_v4 }
0x155a   :  { %6022 = vrot.lane.b32.xlu0 %v6012_v39, %s6378_s15 }
0x15cc   :  { %v6023_v43 = vpop.permute.xlu0 %6022 }
0x15cd   :  { %v6024_v16 = vsel %vm242_vm6, %v6023_v43, 0 }
0x15ce   :  { %v6046_v1 = vand.u32 4294901760, %v6024_v16 }
0x15d0   :  { %v6047_v30 = vsub.f32 %v6024_v16, %v6046_v1  ;;  %6092 = vmatmul.f32.vlgmr.msrb.gmra.mxu1 %v6046_v1 }
0x15d2   :  { %v6048_v59 = vand.u32 4294901760, %v6047_v30  ;;  %6122 = vmatmul.f32.vlgmr.msrb.gmra.mxu2 %v6047_v30 }
0x15d4   :  { %v6049_v34 = vsub.f32 %v6047_v30, %v6048_v59  ;;  %6149 = vmatmul.f32.vlgmr.msrb.gmra.mxu3 %v6048_v59 }
0x15d6   :  { %v6050_v46 = vand.u32 4294901760, %v6049_v34 }
0x15d8   :  { %6051 = vmatmul.f32.vlgmr.msrb.gmra.mxu0 %v6050_v46  ;;  %6207 = vmatmul.f32.vlgmr.msra.gmra.mxu1 %v6046_v1 }
0x15e0   :  { %6182 = vmatmul.f32.vlgmr.msra.gmra.mxu0 %v6046_v1 }
0x164d   :  { %v6093_v29 = vpop.f32.mrf.mxu1 }
0x1655   :  { %v6052_v33 = vpop.f32.mrf.mxu0  ;;  %v6123_v7 = vpop.f32.mrf.mxu2 }
0x1656   :  { %v6053_v10 = vadd.f32 %v6244_v57, %v6052_v33  ;;  %v6208_v50 = vpop.f32.mrf.mxu1 }
0x1657   :  { %v6150_v51 = vpop.f32.mrf.mxu3 }
0x1658   :  { %v6094_v47 = vadd.f32 %v6093_v29, %v6053_v10 }
0x165a   :  { %v6124_v60 = vadd.f32 %v6123_v7, %v6094_v47 }
0x165c   :  { %v6151_v42 = vadd.f32 %v6150_v51, %v6124_v60 }
0x165d   :  { %v6183_v38 = vpop.f32.mrf.mxu0 }
0x165e   :  { %v6184_v52 = vadd.f32 %v6183_v38, %v6151_v42 }
0x1660   :  { %v6209_v14 = vadd.f32 %v6208_v50, %v6184_v52 }
0x1662   :  { %6211 = vst [vmem:[%s7567_s9] sm:$0xff] %v6209_v14 }

</bundles_post_ra>
